<compile_context>
chip_gen: v7x
topology: tpu7x:2x2x1
jax: 0.10.0
libtpu: 0.0.40
codegen_flags: <defaults>
</compile_context>

<pallas_src>
import functools
import math

import jax
import jax.numpy as jnp
from jax import lax
from jax.experimental import pallas as pl
from jax.experimental.pallas import tpu as pltpu


_ACT_DEF_GAIN = {"linear": 1.0, "relu": math.sqrt(2.0), "lrelu": math.sqrt(2.0)}


# ---------------------------------------------------------------------------
# Pallas kernel: fused k x k conv (as shifted-tap matmuls) + bias + act + gain + clamp
# ---------------------------------------------------------------------------
def _conv_bias_act_kernel(x_ref, w_ref, b_ref, o_ref, *, th, out_w, kh, kw,
                          act, act_gain, act_clamp):
    """x_ref: (1, Hp, Wp, Cin) zero-padded image for this batch element (bf16, resident).
       w_ref: (kh*kw, Cin, Cout) bf16 weights (resident).
       b_ref: (1, Cout) f32 bias.
       o_ref: (1, th*out_w, Cout) f32 output rows (flattened (h, w) pixels of this row tile)."""
    i = pl.program_id(1)
    row0 = i * th
    cout = o_ref.shape[-1]
    rows = th * out_w

    acc = jnp.zeros((rows, cout), jnp.float32)
    for ky in range(kh):
        for kx in range(kw):
            patch = x_ref[0, pl.ds(row0 + ky, th), pl.ds(kx, out_w), :]   # (th, out_w, Cin)
            patch = patch.reshape(rows, patch.shape[-1])                  # (rows, Cin)
            acc = acc + jnp.dot(patch, w_ref[ky * kw + kx],
                                preferred_element_type=jnp.float32)

    # bias_act epilogue (runs on VPU slots while MXU is busy on other steps)
    acc = acc + b_ref[...]                       # (1, Cout) broadcasts over rows
    if act == "lrelu":
        acc = jnp.where(acc >= 0.0, acc, 0.2 * acc)
    elif act == "relu":
        acc = jnp.maximum(acc, 0.0)
    if act_gain != 1.0:
        acc = acc * act_gain
    if act_clamp is not None:
        acc = jnp.clip(acc, -act_clamp, act_clamp)

    o_ref[0] = acc


def _pick_row_tile(H, W, target_rows=512):
    """Largest divisor of H whose tile has <= target_rows pixel rows (>= W)."""
    th = 1
    for cand in range(1, H + 1):
        if H % cand == 0 and cand * W <= max(target_rows, W):
            th = cand
    return th


# ---------------------------------------------------------------------------
# Wrapper: Conv2dLayer.forward
# ---------------------------------------------------------------------------
def conv2d_layer(x, weight, bias=None, *, activation="linear", up=1, down=1,
                 conv_clamp=None, gain=1.0, row_tile=None):
    """x: (N, Cin, H, W) f32.  weight: (Cout, Cin, k, k) (PyTorch layout).  bias: (Cout,) or None."""
    if up != 1 or down != 1:
        # TODO(synk): upfirdn2d-based up/down resampling not implemented.
        raise NotImplementedError("conv2d_layer: only up == down == 1 is supported")

    N, Cin, H, W = x.shape
    Cout, Cin_w, kh, kw = weight.shape
    assert Cin_w == Cin and kh == kw
    pad = kh // 2

    weight_gain = 1.0 / math.sqrt(Cin * kh * kw)
    act_gain = _ACT_DEF_GAIN[activation] * gain
    act_clamp = (conv_clamp * gain) if conv_clamp is not None else None

    # NCHW -> NHWC, zero-pad spatially, cast to bf16 (MXU-native, halves HBM/VMEM bytes).
    x_nhwc = jnp.transpose(x.astype(jnp.float32), (0, 2, 3, 1))
    xp = jnp.pad(x_nhwc, ((0, 0), (pad, pad), (pad, pad), (0, 0))).astype(jnp.bfloat16)
    Hp, Wp = H + 2 * pad, W + 2 * pad

    # (Cout, Cin, kh, kw) -> (kh*kw, Cin, Cout), weight_gain folded in, bf16.
    w_mat = jnp.transpose(weight.astype(jnp.float32), (2, 3, 1, 0)) * weight_gain
    w_mat = w_mat.reshape(kh * kw, Cin, Cout).astype(jnp.bfloat16)

    b = jnp.zeros((Cout,), jnp.float32) if bias is None else bias.astype(jnp.float32)
    b = b.reshape(1, Cout)

    th = row_tile if row_tile is not None else _pick_row_tile(H, W)
    assert H % th == 0, "row tile must divide H"
    gh = H // th
    rows = th * W
    assert rows % 8 == 0 or rows == H * W, "row tile must map cleanly onto sublanes"

    kernel = functools.partial(
        _conv_bias_act_kernel, th=th, out_w=W, kh=kh, kw=kw,
        act=activation, act_gain=act_gain, act_clamp=act_clamp)

    out = pl.pallas_call(
        kernel,
        out_shape=jax.ShapeDtypeStruct((N, H * W, Cout), jnp.float32),
        grid=(N, gh),
        in_specs=[
            # whole padded image for batch n stays resident across the h-tiles (no re-DMA)
            pl.BlockSpec((1, Hp, Wp, Cin), lambda n, i: (n, 0, 0, 0)),
            pl.BlockSpec((kh * kw, Cin, Cout), lambda n, i: (0, 0, 0)),
            pl.BlockSpec((1, Cout), lambda n, i: (0, 0)),
        ],
        out_specs=pl.BlockSpec((1, rows, Cout), lambda n, i: (n, i, 0)),
        compiler_params=pltpu.CompilerParams(
            dimension_semantics=("parallel", "parallel")),
    )(xp, w_mat, b)

    out = out.reshape(N, H, W, Cout)
    return jnp.transpose(out, (0, 3, 1, 2))


# ---------------------------------------------------------------------------
# Pure-JAX reference (same bf16 rounding of the MXU operands, f32 math)
# ---------------------------------------------------------------------------
def _reference(x, weight, bias, activation, gain, conv_clamp):
    N, Cin, H, W = x.shape
    Cout, _, kh, kw = weight.shape
    wg = 1.0 / math.sqrt(Cin * kh * kw)
    xq = x.astype(jnp.bfloat16).astype(jnp.float32)
    wq = (weight.astype(jnp.float32) * wg).astype(jnp.bfloat16).astype(jnp.float32)
    y = lax.conv_general_dilated(
        xq, wq, window_strides=(1, 1),
        padding=[(kh // 2, kh // 2), (kw // 2, kw // 2)],
        dimension_numbers=("NCHW", "OIHW", "NCHW"),
        precision=lax.Precision.HIGHEST)
    if bias is not None:
        y = y + bias.astype(jnp.float32).reshape(1, -1, 1, 1)
    if activation == "relu":
        y = jnp.maximum(y, 0.0)
    elif activation == "lrelu":
        y = jnp.where(y >= 0.0, y, 0.2 * y)
    y = y * (_ACT_DEF_GAIN[activation] * gain)
    if conv_clamp is not None:
        c = conv_clamp * gain
        y = jnp.clip(y, -c, c)
    return y


if __name__ == "__main__":
    key = jax.random.PRNGKey(0)
    N, Cin, H, W = 2, 4, 16, 16
    Cout, k = 32, 3
    kx_, kw_, kb_ = jax.random.split(key, 3)
    x = jax.random.normal(kx_, (N, Cin, H, W), jnp.float32)
    weight = jax.random.normal(kw_, (Cout, Cin, k, k), jnp.float32)
    bias = 0.1 * jax.random.normal(kb_, (Cout,), jnp.float32)

    # config 1: kernel_size=3, bias, lrelu activation (def_gain sqrt(2)), no clamp
    fwd = jax.jit(functools.partial(conv2d_layer, activation="lrelu",
                                    gain=1.0, conv_clamp=None))
    out = jax.block_until_ready(fwd(x, weight, bias))
    ref = _reference(x, weight, bias, "lrelu", 1.0, None)
    assert out.shape == (N, Cout, H, W) and out.dtype == jnp.float32
    assert bool(jnp.isfinite(out).all())
    err = float(jnp.max(jnp.abs(out - ref)))
    assert err < 1e-2, f"conv3x3 lrelu: max abs err {err}"

    # config 2: kernel_size=1, no bias, linear activation
    w1 = jax.random.normal(jax.random.PRNGKey(1), (Cout, Cin, 1, 1), jnp.float32)
    fwd1 = jax.jit(functools.partial(conv2d_layer, activation="linear",
                                     gain=1.0, conv_clamp=None))
    out1 = jax.block_until_ready(fwd1(x, w1, None))
    ref1 = _reference(x, w1, None, "linear", 1.0, None)
    assert out1.shape == (N, Cout, H, W)
    err1 = float(jnp.max(jnp.abs(out1 - ref1)))
    assert err1 < 1e-2, f"conv1x1 linear: max abs err {err1}"

    print("KERNEL_OK")
</pallas_src>

<mosaic_0001>
module attributes {stable_mosaic.version = 11 : i64} {
  func.func @_conv_bias_act_kernel(%arg0: i32, %arg1: i32, %arg2: memref<1x18x18x4xbf16, #tpu.memory_space<vmem>>, %arg3: memref<9x4x32xbf16, #tpu.memory_space<vmem>>, %arg4: memref<1x32xf32, #tpu.memory_space<vmem>>, %arg5: memref<1x256x32xf32, #tpu.memory_space<vmem>>) attributes {dimension_semantics = [#tpu.dimension_semantics<parallel>, #tpu.dimension_semantics<parallel>], iteration_bounds = array<i64: 2, 1>, scalar_prefetch = 0 : i64, scratch_operands = 0 : i64, tpu.core_type = #tpu.core_type<tc>, window_params = [{transform_indices = @transform_0, window_bounds = array<i64: 1, 18, 18, 4>}, {pipeline_mode = #tpu.pipeline_mode<synchronous>, transform_indices = @transform_1, window_bounds = array<i64: 9, 4, 32>}, {pipeline_mode = #tpu.pipeline_mode<synchronous>, transform_indices = @transform_2, window_bounds = array<i64: 1, 32>}, {transform_indices = @transform_3, window_bounds = array<i64: 1, 256, 32>}]} {
    %c16_i32 = arith.constant 16 : i32
    %0 = arith.muli %arg1, %c16_i32 : i32
    %cst = arith.constant 0.000000e+00 : f32
    %1 = vector.broadcast %cst : f32 to vector<256x32xf32>
    %c0_i32 = arith.constant 0 : i32
    %2 = arith.addi %0, %c0_i32 : i32
    %c0 = arith.constant 0 : index
    %3 = arith.index_cast %2 : i32 to index
    %c0_0 = arith.constant 0 : index
    %c0_1 = arith.constant 0 : index
    %4 = vector.load %arg2[%c0, %3, %c0_0, %c0_1] : memref<1x18x18x4xbf16, #tpu.memory_space<vmem>>, vector<1x16x16x4xbf16>
    %5 = vector.shape_cast %4 : vector<1x16x16x4xbf16> to vector<16x16x4xbf16>
    %6 = vector.shape_cast %5 : vector<16x16x4xbf16> to vector<256x4xbf16>
    %c0_2 = arith.constant 0 : index
    %c0_3 = arith.constant 0 : index
    %c0_4 = arith.constant 0 : index
    %7 = vector.load %arg3[%c0_2, %c0_3, %c0_4] : memref<9x4x32xbf16, #tpu.memory_space<vmem>>, vector<1x4x32xbf16>
    %8 = vector.shape_cast %7 : vector<1x4x32xbf16> to vector<4x32xbf16>
    %cst_5 = arith.constant dense<0.000000e+00> : vector<256x32xf32>
    %9 = tpu.matmul %6, %8, %cst_5 {dimension_numbers = #tpu.dot_dimension_numbers<[1], [0], [0], [1], [0, 0, 1, 1], [], []>} : vector<256x4xbf16>, vector<4x32xbf16>, vector<256x32xf32> -> vector<256x32xf32>
    %10 = arith.addf %1, %9 : vector<256x32xf32>
    %c0_i32_6 = arith.constant 0 : i32
    %11 = arith.addi %0, %c0_i32_6 : i32
    %c0_7 = arith.constant 0 : index
    %12 = arith.index_cast %11 : i32 to index
    %c1 = arith.constant 1 : index
    %c0_8 = arith.constant 0 : index
    %13 = vector.load %arg2[%c0_7, %12, %c1, %c0_8] : memref<1x18x18x4xbf16, #tpu.memory_space<vmem>>, vector<1x16x16x4xbf16>
    %14 = vector.shape_cast %13 : vector<1x16x16x4xbf16> to vector<16x16x4xbf16>
    %15 = vector.shape_cast %14 : vector<16x16x4xbf16> to vector<256x4xbf16>
    %c1_9 = arith.constant 1 : index
    %c0_10 = arith.constant 0 : index
    %c0_11 = arith.constant 0 : index
    %16 = vector.load %arg3[%c1_9, %c0_10, %c0_11] : memref<9x4x32xbf16, #tpu.memory_space<vmem>>, vector<1x4x32xbf16>
    %17 = vector.shape_cast %16 : vector<1x4x32xbf16> to vector<4x32xbf16>
    %cst_12 = arith.constant dense<0.000000e+00> : vector<256x32xf32>
    %18 = tpu.matmul %15, %17, %cst_12 {dimension_numbers = #tpu.dot_dimension_numbers<[1], [0], [0], [1], [0, 0, 1, 1], [], []>} : vector<256x4xbf16>, vector<4x32xbf16>, vector<256x32xf32> -> vector<256x32xf32>
    %19 = arith.addf %10, %18 : vector<256x32xf32>
    %c0_i32_13 = arith.constant 0 : i32
    %20 = arith.addi %0, %c0_i32_13 : i32
    %c0_14 = arith.constant 0 : index
    %21 = arith.index_cast %20 : i32 to index
    %c2 = arith.constant 2 : index
    %c0_15 = arith.constant 0 : index
    %22 = vector.load %arg2[%c0_14, %21, %c2, %c0_15] : memref<1x18x18x4xbf16, #tpu.memory_space<vmem>>, vector<1x16x16x4xbf16>
    %23 = vector.shape_cast %22 : vector<1x16x16x4xbf16> to vector<16x16x4xbf16>
    %24 = vector.shape_cast %23 : vector<16x16x4xbf16> to vector<256x4xbf16>
    %c2_16 = arith.constant 2 : index
    %c0_17 = arith.constant 0 : index
    %c0_18 = arith.constant 0 : index
    %25 = vector.load %arg3[%c2_16, %c0_17, %c0_18] : memref<9x4x32xbf16, #tpu.memory_space<vmem>>, vector<1x4x32xbf16>
    %26 = vector.shape_cast %25 : vector<1x4x32xbf16> to vector<4x32xbf16>
    %cst_19 = arith.constant dense<0.000000e+00> : vector<256x32xf32>
    %27 = tpu.matmul %24, %26, %cst_19 {dimension_numbers = #tpu.dot_dimension_numbers<[1], [0], [0], [1], [0, 0, 1, 1], [], []>} : vector<256x4xbf16>, vector<4x32xbf16>, vector<256x32xf32> -> vector<256x32xf32>
    %28 = arith.addf %19, %27 : vector<256x32xf32>
    %c1_i32 = arith.constant 1 : i32
    %29 = arith.addi %0, %c1_i32 : i32
    %c0_20 = arith.constant 0 : index
    %30 = arith.index_cast %29 : i32 to index
    %c0_21 = arith.constant 0 : index
    %c0_22 = arith.constant 0 : index
    %31 = vector.load %arg2[%c0_20, %30, %c0_21, %c0_22] : memref<1x18x18x4xbf16, #tpu.memory_space<vmem>>, vector<1x16x16x4xbf16>
    %32 = vector.shape_cast %31 : vector<1x16x16x4xbf16> to vector<16x16x4xbf16>
    %33 = vector.shape_cast %32 : vector<16x16x4xbf16> to vector<256x4xbf16>
    %c3 = arith.constant 3 : index
    %c0_23 = arith.constant 0 : index
    %c0_24 = arith.constant 0 : index
    %34 = vector.load %arg3[%c3, %c0_23, %c0_24] : memref<9x4x32xbf16, #tpu.memory_space<vmem>>, vector<1x4x32xbf16>
    %35 = vector.shape_cast %34 : vector<1x4x32xbf16> to vector<4x32xbf16>
    %cst_25 = arith.constant dense<0.000000e+00> : vector<256x32xf32>
    %36 = tpu.matmul %33, %35, %cst_25 {dimension_numbers = #tpu.dot_dimension_numbers<[1], [0], [0], [1], [0, 0, 1, 1], [], []>} : vector<256x4xbf16>, vector<4x32xbf16>, vector<256x32xf32> -> vector<256x32xf32>
    %37 = arith.addf %28, %36 : vector<256x32xf32>
    %c1_i32_26 = arith.constant 1 : i32
    %38 = arith.addi %0, %c1_i32_26 : i32
    %c0_27 = arith.constant 0 : index
    %39 = arith.index_cast %38 : i32 to index
    %c1_28 = arith.constant 1 : index
    %c0_29 = arith.constant 0 : index
    %40 = vector.load %arg2[%c0_27, %39, %c1_28, %c0_29] : memref<1x18x18x4xbf16, #tpu.memory_space<vmem>>, vector<1x16x16x4xbf16>
    %41 = vector.shape_cast %40 : vector<1x16x16x4xbf16> to vector<16x16x4xbf16>
    %42 = vector.shape_cast %41 : vector<16x16x4xbf16> to vector<256x4xbf16>
    %c4 = arith.constant 4 : index
    %c0_30 = arith.constant 0 : index
    %c0_31 = arith.constant 0 : index
    %43 = vector.load %arg3[%c4, %c0_30, %c0_31] : memref<9x4x32xbf16, #tpu.memory_space<vmem>>, vector<1x4x32xbf16>
    %44 = vector.shape_cast %43 : vector<1x4x32xbf16> to vector<4x32xbf16>
    %cst_32 = arith.constant dense<0.000000e+00> : vector<256x32xf32>
    %45 = tpu.matmul %42, %44, %cst_32 {dimension_numbers = #tpu.dot_dimension_numbers<[1], [0], [0], [1], [0, 0, 1, 1], [], []>} : vector<256x4xbf16>, vector<4x32xbf16>, vector<256x32xf32> -> vector<256x32xf32>
    %46 = arith.addf %37, %45 : vector<256x32xf32>
    %c1_i32_33 = arith.constant 1 : i32
    %47 = arith.addi %0, %c1_i32_33 : i32
    %c0_34 = arith.constant 0 : index
    %48 = arith.index_cast %47 : i32 to index
    %c2_35 = arith.constant 2 : index
    %c0_36 = arith.constant 0 : index
    %49 = vector.load %arg2[%c0_34, %48, %c2_35, %c0_36] : memref<1x18x18x4xbf16, #tpu.memory_space<vmem>>, vector<1x16x16x4xbf16>
    %50 = vector.shape_cast %49 : vector<1x16x16x4xbf16> to vector<16x16x4xbf16>
    %51 = vector.shape_cast %50 : vector<16x16x4xbf16> to vector<256x4xbf16>
    %c5 = arith.constant 5 : index
    %c0_37 = arith.constant 0 : index
    %c0_38 = arith.constant 0 : index
    %52 = vector.load %arg3[%c5, %c0_37, %c0_38] : memref<9x4x32xbf16, #tpu.memory_space<vmem>>, vector<1x4x32xbf16>
    %53 = vector.shape_cast %52 : vector<1x4x32xbf16> to vector<4x32xbf16>
    %cst_39 = arith.constant dense<0.000000e+00> : vector<256x32xf32>
    %54 = tpu.matmul %51, %53, %cst_39 {dimension_numbers = #tpu.dot_dimension_numbers<[1], [0], [0], [1], [0, 0, 1, 1], [], []>} : vector<256x4xbf16>, vector<4x32xbf16>, vector<256x32xf32> -> vector<256x32xf32>
    %55 = arith.addf %46, %54 : vector<256x32xf32>
    %c2_i32 = arith.constant 2 : i32
    %56 = arith.addi %0, %c2_i32 : i32
    %c0_40 = arith.constant 0 : index
    %57 = arith.index_cast %56 : i32 to index
    %c0_41 = arith.constant 0 : index
    %c0_42 = arith.constant 0 : index
    %58 = vector.load %arg2[%c0_40, %57, %c0_41, %c0_42] : memref<1x18x18x4xbf16, #tpu.memory_space<vmem>>, vector<1x16x16x4xbf16>
    %59 = vector.shape_cast %58 : vector<1x16x16x4xbf16> to vector<16x16x4xbf16>
    %60 = vector.shape_cast %59 : vector<16x16x4xbf16> to vector<256x4xbf16>
    %c6 = arith.constant 6 : index
    %c0_43 = arith.constant 0 : index
    %c0_44 = arith.constant 0 : index
    %61 = vector.load %arg3[%c6, %c0_43, %c0_44] : memref<9x4x32xbf16, #tpu.memory_space<vmem>>, vector<1x4x32xbf16>
    %62 = vector.shape_cast %61 : vector<1x4x32xbf16> to vector<4x32xbf16>
    %cst_45 = arith.constant dense<0.000000e+00> : vector<256x32xf32>
    %63 = tpu.matmul %60, %62, %cst_45 {dimension_numbers = #tpu.dot_dimension_numbers<[1], [0], [0], [1], [0, 0, 1, 1], [], []>} : vector<256x4xbf16>, vector<4x32xbf16>, vector<256x32xf32> -> vector<256x32xf32>
    %64 = arith.addf %55, %63 : vector<256x32xf32>
    %c2_i32_46 = arith.constant 2 : i32
    %65 = arith.addi %0, %c2_i32_46 : i32
    %c0_47 = arith.constant 0 : index
    %66 = arith.index_cast %65 : i32 to index
    %c1_48 = arith.constant 1 : index
    %c0_49 = arith.constant 0 : index
    %67 = vector.load %arg2[%c0_47, %66, %c1_48, %c0_49] : memref<1x18x18x4xbf16, #tpu.memory_space<vmem>>, vector<1x16x16x4xbf16>
    %68 = vector.shape_cast %67 : vector<1x16x16x4xbf16> to vector<16x16x4xbf16>
    %69 = vector.shape_cast %68 : vector<16x16x4xbf16> to vector<256x4xbf16>
    %c7 = arith.constant 7 : index
    %c0_50 = arith.constant 0 : index
    %c0_51 = arith.constant 0 : index
    %70 = vector.load %arg3[%c7, %c0_50, %c0_51] : memref<9x4x32xbf16, #tpu.memory_space<vmem>>, vector<1x4x32xbf16>
    %71 = vector.shape_cast %70 : vector<1x4x32xbf16> to vector<4x32xbf16>
    %cst_52 = arith.constant dense<0.000000e+00> : vector<256x32xf32>
    %72 = tpu.matmul %69, %71, %cst_52 {dimension_numbers = #tpu.dot_dimension_numbers<[1], [0], [0], [1], [0, 0, 1, 1], [], []>} : vector<256x4xbf16>, vector<4x32xbf16>, vector<256x32xf32> -> vector<256x32xf32>
    %73 = arith.addf %64, %72 : vector<256x32xf32>
    %c2_i32_53 = arith.constant 2 : i32
    %74 = arith.addi %0, %c2_i32_53 : i32
    %c0_54 = arith.constant 0 : index
    %75 = arith.index_cast %74 : i32 to index
    %c2_55 = arith.constant 2 : index
    %c0_56 = arith.constant 0 : index
    %76 = vector.load %arg2[%c0_54, %75, %c2_55, %c0_56] : memref<1x18x18x4xbf16, #tpu.memory_space<vmem>>, vector<1x16x16x4xbf16>
    %77 = vector.shape_cast %76 : vector<1x16x16x4xbf16> to vector<16x16x4xbf16>
    %78 = vector.shape_cast %77 : vector<16x16x4xbf16> to vector<256x4xbf16>
    %c8 = arith.constant 8 : index
    %c0_57 = arith.constant 0 : index
    %c0_58 = arith.constant 0 : index
    %79 = vector.load %arg3[%c8, %c0_57, %c0_58] : memref<9x4x32xbf16, #tpu.memory_space<vmem>>, vector<1x4x32xbf16>
    %80 = vector.shape_cast %79 : vector<1x4x32xbf16> to vector<4x32xbf16>
    %cst_59 = arith.constant dense<0.000000e+00> : vector<256x32xf32>
    %81 = tpu.matmul %78, %80, %cst_59 {dimension_numbers = #tpu.dot_dimension_numbers<[1], [0], [0], [1], [0, 0, 1, 1], [], []>} : vector<256x4xbf16>, vector<4x32xbf16>, vector<256x32xf32> -> vector<256x32xf32>
    %82 = arith.addf %73, %81 : vector<256x32xf32>
    %c0_60 = arith.constant 0 : index
    %c0_61 = arith.constant 0 : index
    %83 = vector.load %arg4[%c0_60, %c0_61] : memref<1x32xf32, #tpu.memory_space<vmem>>, vector<1x32xf32>
    %84 = vector.broadcast %83 : vector<1x32xf32> to vector<256x32xf32>
    %85 = arith.addf %82, %84 : vector<256x32xf32>
    %cst_62 = arith.constant 0.000000e+00 : f32
    %86 = vector.broadcast %cst_62 : f32 to vector<256x32xf32>
    %87 = arith.cmpf oge, %85, %86 : vector<256x32xf32>
    %cst_63 = arith.constant 2.000000e-01 : f32
    %88 = vector.broadcast %cst_63 : f32 to vector<256x32xf32>
    %89 = arith.mulf %88, %85 : vector<256x32xf32>
    %90 = arith.select %87, %85, %89 : vector<256x32xi1>, vector<256x32xf32>
    %cst_64 = arith.constant 1.41421354 : f32
    %91 = vector.broadcast %cst_64 : f32 to vector<256x32xf32>
    %92 = arith.mulf %90, %91 : vector<256x32xf32>
    %c0_65 = arith.constant 0 : index
    %c0_66 = arith.constant 0 : index
    %c0_67 = arith.constant 0 : index
    %93 = vector.load %arg5[%c0_65, %c0_66, %c0_67] : memref<1x256x32xf32, #tpu.memory_space<vmem>>, vector<1x256x32xf32>
    %94 = vector.shape_cast %93 : vector<1x256x32xf32> to vector<256x32xf32>
    %95 = vector.shape_cast %92 : vector<256x32xf32> to vector<1x256x32xf32>
    tpu.vector_store %arg5[%c0_65, %c0_66, %c0_67], %95 {strides = array<i32>} : memref<1x256x32xf32, #tpu.memory_space<vmem>>, vector<1x256x32xf32>,
    return
  }
  func.func @transform_0(%arg0: i32, %arg1: i32) -> (i32, i32, i32, i32) {
    %c0_i32 = arith.constant 0 : i32
    %c0_i32_0 = arith.constant 0 : i32
    %c0_i32_1 = arith.constant 0 : i32
    %c0_i32_2 = arith.constant 0 : i32
    return %arg0, %c0_i32, %c0_i32_0, %c0_i32_1 : i32, i32, i32, i32
  }
  func.func @transform_1(%arg0: i32, %arg1: i32) -> (i32, i32, i32) {
    %c0_i32 = arith.constant 0 : i32
    %c0_i32_0 = arith.constant 0 : i32
    %c0_i32_1 = arith.constant 0 : i32
    %c0_i32_2 = arith.constant 0 : i32
    return %c0_i32, %c0_i32_0, %c0_i32_1 : i32, i32, i32
  }
  func.func @transform_2(%arg0: i32, %arg1: i32) -> (i32, i32) {
    %c0_i32 = arith.constant 0 : i32
    %c0_i32_0 = arith.constant 0 : i32
    %c0_i32_1 = arith.constant 0 : i32
    return %c0_i32, %c0_i32_0 : i32, i32
  }
  func.func @transform_3(%arg0: i32, %arg1: i32) -> (i32, i32, i32) {
    %c0_i32 = arith.constant 0 : i32
    %c0_i32_0 = arith.constant 0 : i32
    return %arg0, %arg1, %c0_i32 : i32, i32, i32
  }
}

</mosaic_0001>

<bundles_post_ra>
// kernel: conv2d_layer.1
= control target key start
LH: loop header
LB: loop body
LE: loop exit
PB: predicated region body
PF: predicated region fallthrough
CT: control target
= control target key end

     0   :  { %8 = vsyncpa [#allocation3], 0  ;;  %s8540_s0 = inlined_call_operand.vmem [shape: bf16[2,18,18,4], index: 0, kind: input, shape index: {}]   ;;  %s8541_s1 = inlined_call_operand.vmem [shape: bf16[9,4,32], index: 1, kind: input, shape index: {}]   ;;  %s8542_s2 = inlined_call_operand.vmem [shape: f32[1,32], index: 2, kind: input, shape index: {}]   ;;  %s8543_s3 = inlined_call_operand.hbm [shape: f32[2,256,32], index: 3, kind: output, shape index: {}]  }
   0x1   :  { %10 = vsyncpa [#allocation3 + $0x1], 0  ;;  %s6596_s12 = smov 0   ;;  %s6598_s13 = smov 0  }
   0x2   :  { %s6600_s14 = smov 0   ;;  %s6602_s15 = smov 0  }
   0x3   :  { %s6604_s16 = smov 0   ;;  %s6606_s17 = smov 0  }
   0x4 LB: > { %s5053_s18 = sadd.s32 4294967295, %s6571_s17   ;;  %s5054_s19 = sadd.s32 4294967294, %s6571_s17   ;;  %s6571_s17 = sphi %s6606_s17, %s16_s17   ;;  %s6567_s16 = sphi %s6604_s16, %s8617_s16   ;;  %s6563_s15 = sphi %s6602_s15, %s8616_s15   ;;  %s6559_s14 = sphi %s6600_s14, %s8615_s14   ;;  %s6555_s13 = sphi %s6598_s13, %s8614_s13   ;;  %s6551_s12 = sphi %s6596_s12, %s8613_s12  }
   0x5   : > { %s28_s20 = sadd.s32 1, %s6567_s16  ;;  %s105_s21 = sadd.s32 1, %s6559_s14 }
   0x6   : > { %p30_p0 = scmp.ge.s32.totalorder %s28_s20, 2  ;;  %p115_p1 = scmp.ne.s32.totalorder %s6559_s14, %s6555_s13 }
   0x7   : > { %p116_p2 = scmp.eq.s32.totalorder %s5053_s18, 1  ;;  %p121_p3 = scmp.ne.s32.totalorder %s6555_s13, %s6551_s12 }
   0x8   : > { %s8619_s20 = smov (%p30_p0, %s28_s20), 0  ;;  %p122_p5 = scmp.eq.s32.totalorder %s5054_s19, 1 }
   0x9   : > { %p6636_p4 = por %p116_p2, %p115_p1  ;;  %s100_s23 = ssub.s32 %s6567_s16, %s8619_s20 }
   0xa   : > { %p5057_p6 = scmp.ge.s32.totalorder %s6571_s17, 1  ;;  %p103_p7 = scmp.eq.s32.totalorder %s100_s23, 0 }
   0xb   : > { %p6643_p8 = por %p122_p5, %p121_p3  ;;  %p154_p9 = scmp.lt.s32.totalorder %s6571_s17, 3 }
   0xc   : > { %s6649_s25 = scalar_select %p103_p7, %s6559_s14, %s105_s21  }
   0xd   : > { %p155_p10 = pnand %p5057_p6, %p154_p9 }
   0xf   : > { %158 = sbr.rel (%p155_p10) target bundleno = 614 (0x266), region = 32 }
  0x16   : > { %v5060_v0 = vld [vmem:[%s8541_s1 + $0x2] sm:$0x3]  ;;  %vm724_vm0 = vcmask 1041408   ;;  %v5287_v1 = vld [vmem:[%s8541_s1 + $0x8] sm:$0x3]  ;;  %p178_p11 = scmp.lt.s32.totalorder %s6563_s15, 1 }
  0x17   : > { %6320 = vmatprep.subr.msk.bf16.mxu1 %vm724_vm0, %v5060_v0  ;;  %6324 = vmatprep.subr.msk.bf16.mxu0 %vm724_vm0, %v5287_v1  ;;  %v726_v2 = vsel %vm724_vm0, %v5060_v0, 0  ;;  %v6662_v3 = vsel %vm724_vm0, %v5287_v1, 0  ;;  %v221_v4 = vld [vmem:[%s8541_s1] sm:$0x3]  ;;  %v5352_v5 = vld [vmem:[%s8541_s1 + $0xa] sm:$0x3] }
  0x18   : > { %8559 = vst [vmem:[#allocation5_spill] sm:$0xff] %v6662_v3  ;;  %5757 = vmatpush3.bf16.msra.mxu1 %v726_v2  ;;  %5893 = vmatpush3.bf16.msra.mxu0 %v6662_v3  ;;  %s179_s30 = scalar_select %p178_p11, %s6563_s15, 1  ;;  %vm238_vm1 = vsmask.f32 3328  ;;  %vm239_vm2 = vsmask.f32 7440 }
  0x19   : > { %6321 = vmatprep.subr.msk.bf16.mxu1 %vm724_vm0, %v221_v4  ;;  %6326 = vmatprep.subr.msk.bf16.mxu0 %vm724_vm0, %v5352_v5  ;;  %vm675_vm3 = vcmask 31744   ;;  %v6690_v17 = vsel %vm724_vm0, %v221_v4, 0  ;;  %v6696_v26 = vld [vmem:[%s8541_s1 + $0xc] sm:$0x3]  ;;  %vm6703_vm4 = vmor %vm238_vm1, %vm239_vm2  ;;  %v6709_v37 = vsel %vm724_vm0, %v5352_v5, 0  ;;  %vm1229_vm5 = vcmask 1042432  }
  0x1a   : > { %s6330_s8 = smul.u32 216, %s179_s30  ;;  %v6713_v41 = vsel %vm724_vm0, %v6696_v26, 0  ;;  %vm1230_vm6 = vcmask 1046532   ;;  %vm4921_vm10 = vcmask 261120   ;;  %s5602_s21 = sshll.u32 %s6563_s15, 12 }
  0x1b   : > { %vm6929_vm7 = vmor %vm1229_vm5, %vm1230_vm6  ;;  %s8482_s28 = scalar_lea.hbm %s8543_s3, %s5602_s21  ;;  %s6573_s30 = smov [#allocation2]  }
  0x1c   : > { %s6677_s11 = scalar_lea.vmem %s8540_s0, %s6330_s8  ;;  %s6497_s4 = sshll.u32 %s6573_s30, 4  ;;  %s6498_s4 = int_to_ptr.vmem [resolvable:$false] %s6497_s4 }
  0x1d   : > { %v189_v6 = vld [vmem:[%s6677_s11] sm:$0xf]  ;;  %v190_v7 = vld [vmem:[%s6677_s11 + $0x4] sm:$0xf]  ;;  %v222_v8 = vld [vmem:[%s6677_s11 + $0x8] sm:$0x1] }
  0x1e   : > { %v242_v9 = vshrl.u32 %v189_v6, 16  ;;  %v245_v10 = vshll.u32 %v189_v6, 16  ;;  %v251_v11 = vshll.u32 %v190_v7, 16  ;;  %v255_v12 = vshrl.u32 %v190_v7, 16  ;;  %v5239_v13 = vld [vmem:[%s6677_s11 + $0xc] sm:$0xf] }
  0x1f   : > { %v261_v14 = vshll.u32 %v222_v8, 16  ;;  %v6684_v15 = vld [vmem:[%s6677_s11 + $0x10] sm:$0xf]  ;;  %v6687_v16 = vld [vmem:[%s6677_s11 + $0x14] sm:$0x1]  ;;  %v2049_v23 = vshrl.u32 %v5239_v13, 16 }
  0x20   : > { %v244_v18 = vrot.slane %v242_v9, 4  ;;  %v247_v19 = vrot.slane %v245_v10, 5  ;;  %v253_v20 = vrot.slane %v251_v11, 5  ;;  %v257_v21 = vrot.slane %v255_v12, 4  ;;  %v191_v31 = vld [vmem:[%s6677_s11 + $0xc] sm:$0xf] }
  0x21   : > { %v263_v22 = vrot.slane %v261_v14, 5  ;;  %v2052_v24 = vshll.u32 %v5239_v13, 16  ;;  %v2058_v25 = vshll.u32 %v6684_v15, 16  ;;  %v2062_v29 = vshrl.u32 %v6684_v15, 16  ;;  %v192_v36 = vld [vmem:[%s6677_s11 + $0x10] sm:$0xf] }
  0x22   : > { %v248_v27 = vor.u32 %v247_v19, %v244_v18  ;;  %v258_v28 = vor.u32 %v257_v21, %v253_v20  ;;  %v2068_v30 = vshll.u32 %v6687_v16, 16  ;;  %v2051_v33 = vrot.slane %v2049_v23, 4  ;;  %v223_v44 = vld [vmem:[%s6677_s11 + $0x14] sm:$0x1]  ;;  %v5242_v55 = vld [vmem:[%s6677_s11 + $0x18] sm:$0xf] }
  0x23   : > { %v2054_v34 = vrot.slane %v2052_v24, 5  ;;  %v2060_v35 = vrot.slane %v2058_v25, 5  ;;  %v2064_v40 = vrot.slane %v2062_v29, 4  ;;  %v266_v45 = vshrl.u32 %v191_v31, 16  ;;  %v6722_v60 = vld [vmem:[%s6677_s11 + $0x1c] sm:$0xf] }
  0x24   : > { %v249_v38 = vrot.slane %v248_v27, 4  ;;  %v259_v39 = vrot.slane %v258_v28, 4  ;;  %v2070_v43 = vrot.slane %v2068_v30, 5  ;;  %v269_v46 = vshll.u32 %v191_v31, 16  ;;  %v6730_v1 = vld [vmem:[%s6677_s11 + $0x20] sm:$0x1] }
  0x25   : > { %v2055_v42 = vor.u32 %v2054_v34, %v2051_v33  ;;  %v2065_v49 = vor.u32 %v2064_v40, %v2060_v35  ;;  %v275_v50 = vshll.u32 %v192_v36, 16  ;;  %v268_v53 = vrot.slane %v266_v45, 4  ;;  %v193_v18 = vld [vmem:[%s6677_s11 + $0x18] sm:$0xf]  ;;  %v194_v23 = vld [vmem:[%s6677_s11 + $0x1c] sm:$0xf] }
  0x26   : > { %v254_v47 = vsel %vm6703_vm4, %v249_v38, %v253_v20  ;;  %v264_v48 = vsel %vm6703_vm4, %v259_v39, %v263_v22  ;;  %v271_v54 = vrot.slane %v269_v46, 5  ;;  %v279_v58 = vshrl.u32 %v192_v36, 16  ;;  %v224_v31 = vld [vmem:[%s6677_s11 + $0x20] sm:$0x1]  ;;  %v5245_v40 = vld [vmem:[%s6677_s11 + $0x24] sm:$0xf] }
  0x27   : > { %v5061_v51 = vcombine.low %v254_v47, %v264_v48  ;;  %v2056_v52 = vrot.slane %v2055_v42, 4  ;;  %v2066_v56 = vrot.slane %v2065_v49, 4  ;;  %v277_v57 = vrot.slane %v275_v50, 5  ;;  %v6753_v46 = vld [vmem:[%s6677_s11 + $0x28] sm:$0xf]  ;;  %s6499_s5 = scalar_lea.vmem %s6498_s4, 8192 }
  0x28   : > { %v285_v59 = vshll.u32 %v223_v44, 16  ;;  %v2792_v62 = vrot.slane %v6684_v15, 5  ;;  %v2795_v63 = vrot.slane %v6687_v16, 5  ;;  %v272_v0 = vor.u32 %v271_v54, %v268_v53  ;;  %v6762_v54 = vld [vmem:[%s6677_s11 + $0x2c] sm:$0x1] }
  0x29   : > { %5758 = vmatprep.mubr.msk.bf16.mxu1 %vm675_vm3, %v5061_v51  ;;  %v2061_v61 = vsel %vm6703_vm4, %v2056_v52, %v2060_v35  ;;  %v2071_v2 = vsel %vm6703_vm4, %v2066_v56, %v2070_v43  ;;  %v281_v4 = vrot.slane %v279_v58, 4  ;;  %v2073_v6 = vshrl.u32 %v5242_v55, 16  ;;  %v5141_v51 = vld [vmem:[%s8541_s1 + $0x4] sm:$0x3]  ;;  %v6962_v16 = vld [vmem:[%s6677_s11 + $0x7c] sm:$0xf] }
  0x2a   : > { %v287_v5 = vrot.slane %v285_v59, 5  ;;  %v5288_v7 = vcombine.low %v2061_v61, %v2071_v2  ;;  %v273_v8 = vrot.slane %v272_v0, 4  ;;  %v2076_v9 = vshll.u32 %v5242_v55, 16  ;;  %v195_v0 = vld [vmem:[%s6677_s11 + $0x24] sm:$0xf] }
  0x2b   : > { %v2082_v10 = vshll.u32 %v6722_v60, 16  ;;  %v282_v11 = vor.u32 %v281_v4, %v277_v57  ;;  %v2075_v12 = vrot.slane %v2073_v6, 4  ;;  %v2086_v13 = vshrl.u32 %v6722_v60, 16 }
  0x2c   : > { %v2092_v14 = vshll.u32 %v6730_v1, 16  ;;  %5894 = vmatprep.mubr.msk.bf16.mxu0 %vm675_vm3, %v5288_v7  ;;  %v278_v19 = vsel %vm6703_vm4, %v273_v8, %v277_v57  ;;  %v2078_v20 = vrot.slane %v2076_v9, 5  ;;  %v2799_v22 = vrot.slane %v6722_v60, 5  ;;  %v196_v7 = vld [vmem:[%s6677_s11 + $0x28] sm:$0xf] }
  0x2d   : > { %v2084_v21 = vrot.slane %v2082_v10, 5  ;;  %v283_v24 = vrot.slane %v282_v11, 4  ;;  %v2088_v25 = vrot.slane %v2086_v13, 4  ;;  %v2802_v28 = vrot.slane %v6730_v1, 5  ;;  %v225_v13 = vld [vmem:[%s6677_s11 + $0x2c] sm:$0x1] }
  0x2e   : > { %v2094_v27 = vrot.slane %v2092_v14, 5  ;;  %v2079_v29 = vor.u32 %v2078_v20, %v2075_v12  ;;  %v6746_v30 = vrot.slane %v2799_v22, 4  ;;  %v290_v33 = vshrl.u32 %v193_v18, 16 }
  0x2f   : > { %v293_v34 = vshll.u32 %v193_v18, 16  ;;  %v288_v35 = vsel %vm6703_vm4, %v283_v24, %v287_v5  ;;  %v2089_v36 = vor.u32 %v2088_v25, %v2084_v21  ;;  %v299_v38 = vshll.u32 %v194_v23, 16  ;;  %v5248_v24 = vld [vmem:[%s6677_s11 + $0x30] sm:$0xf] }
  0x30   : > { %v303_v39 = vshrl.u32 %v194_v23, 16  ;;  %v5062_v42 = vcombine.low %v278_v19, %v288_v35  ;;  %v2080_v43 = vrot.slane %v2079_v29, 4  ;;  %v292_v44 = vrot.slane %v290_v33, 4  ;;  %v6782_v33 = vld [vmem:[%s6677_s11 + $0x34] sm:$0xf] }
  0x31   : > { %v295_v45 = vrot.slane %v293_v34, 5  ;;  %v2090_v47 = vrot.slane %v2089_v36, 4  ;;  %v301_v48 = vrot.slane %v299_v38, 5  ;;  %v309_v50 = vshll.u32 %v224_v31, 16 }
  0x32   : > { %v305_v49 = vrot.slane %v303_v39, 4  ;;  %5759 = vmatmul.mubr.msk.bf16.vlgmr.msra.gmra.mrb[0].mxu1 %vm675_vm3, %v5062_v42  ;;  %v2085_v52 = vsel %vm6703_vm4, %v2080_v43, %v2084_v21  ;;  %v2097_v55 = vshrl.u32 %v5245_v40, 16  ;;  %v2100_v56 = vshll.u32 %v5245_v40, 16  ;;  %v6790_v40 = vld [vmem:[%s6677_s11 + $0x38] sm:$0x1] }
  0x33   : > { %v296_v53 = vor.u32 %v295_v45, %v292_v44  ;;  %5791 = vmatpush3.bf16.msra.mxu1 %v6690_v17  ;;  %v2095_v57 = vsel %vm6703_vm4, %v2090_v47, %v2094_v27  ;;  %v311_v59 = vrot.slane %v309_v50, 5  ;;  %v2106_v61 = vshll.u32 %v6753_v46, 16 }
  0x34   : > { %v306_v58 = vor.u32 %v305_v49, %v301_v48  ;;  %v5289_v2 = vcombine.low %v2085_v52, %v2095_v57  ;;  %v2099_v5 = vrot.slane %v2097_v55, 4  ;;  %v2102_v6 = vrot.slane %v2100_v56, 5  ;;  %6322 = vmatprep.subr.msk.bf16.mxu1 %vm724_vm0, %v5141_v51  ;;  %v197_v52 = vld [vmem:[%s6677_s11 + $0x30] sm:$0xf] }
  0x35   : > { %v297_v4 = vrot.slane %v296_v53, 4  ;;  %v2108_v9 = vrot.slane %v2106_v61, 5  ;;  %v2110_v17 = vshrl.u32 %v6753_v46, 16  ;;  %v2116_v10 = vshll.u32 %v6762_v54, 16 }
  0x36   : > { %v307_v8 = vrot.slane %v306_v58, 4  ;;  %5895 = vmatmul.mubr.msk.bf16.vlgmr.msra.gmra.mrb[0].mxu0 %vm675_vm3, %v5289_v2  ;;  %v2103_v12 = vor.u32 %v2102_v6, %v2099_v5  ;;  %v314_v14 = vshrl.u32 %v195_v0, 16  ;;  %v317_v18 = vshll.u32 %v195_v0, 16  ;;  %v198_v58 = vld [vmem:[%s6677_s11 + $0x34] sm:$0xf] }
  0x37   : > { %v302_v11 = vsel %vm6703_vm4, %v297_v4, %v301_v48  ;;  %5927 = vmatpush3.bf16.msra.mxu0 %v6709_v37  ;;  %v2112_v20 = vrot.slane %v2110_v17, 4  ;;  %v2118_v21 = vrot.slane %v2116_v10, 5  ;;  %v323_v23 = vshll.u32 %v196_v7, 16  ;;  %v226_v4 = vld [vmem:[%s6677_s11 + $0x38] sm:$0x1] }
  0x38   : > { %v312_v19 = vsel %vm6703_vm4, %v307_v8, %v311_v59  ;;  %v2104_v27 = vrot.slane %v2103_v12, 4  ;;  %v316_v29 = vrot.slane %v314_v14, 4  ;;  %v319_v31 = vrot.slane %v317_v18, 5  ;;  %6327 = vmatprep.subr.msk.bf16.mxu0 %vm724_vm0, %v6696_v26  ;;  %v5251_v12 = vld [vmem:[%s6677_s11 + $0x3c] sm:$0xf] }
  0x39   : > { %v5063_v25 = vcombine.low %v302_v11, %v312_v19  ;;  %v2113_v34 = vor.u32 %v2112_v20, %v2108_v9  ;;  %v325_v35 = vrot.slane %v323_v23, 5  ;;  %v327_v37 = vshrl.u32 %v196_v7, 16  ;;  %v6807_v20 = vld [vmem:[%s6677_s11 + $0x40] sm:$0xf] }
  0x3a   : > { %v333_v36 = vshll.u32 %v225_v13, 16  ;;  %v2109_v38 = vsel %vm6703_vm4, %v2104_v27, %v2108_v9  ;;  %v320_v39 = vor.u32 %v319_v31, %v316_v29  ;;  %v2121_v42 = vshrl.u32 %v5248_v24, 16 }
  0x3b   : > { %5762 = vmatprep.mubr.msk.bf16.mxu1 %vm675_vm3, %v5063_v25  ;;  %v2124_v43 = vshll.u32 %v5248_v24, 16  ;;  %v2114_v44 = vrot.slane %v2113_v34, 4  ;;  %v329_v45 = vrot.slane %v327_v37, 4  ;;  %v2130_v26 = vshll.u32 %v6782_v33, 16  ;;  %v6812_v34 = vld [vmem:[%s6677_s11 + $0x44] sm:$0x1] }
  0x3c   : > { %v335_v47 = vrot.slane %v333_v36, 5  ;;  %v321_v48 = vrot.slane %v320_v39, 4  ;;  %v2123_v49 = vrot.slane %v2121_v42, 4  ;;  %v2134_v51 = vshrl.u32 %v6782_v33, 16  ;;  %v199_v42 = vld [vmem:[%s6677_s11 + $0x3c] sm:$0xf] }
  0x3d   : > { %v2126_v50 = vrot.slane %v2124_v43, 5  ;;  %v2119_v53 = vsel %vm6703_vm4, %v2114_v44, %v2118_v21  ;;  %v330_v55 = vor.u32 %v329_v45, %v325_v35  ;;  %v2132_v56 = vrot.slane %v2130_v26, 5  ;;  %v200_v26 = vld [vmem:[%s6677_s11 + $0x40] sm:$0xf] }
  0x3e   : > { %v2140_v57 = vshll.u32 %v6790_v40, 16  ;;  %v5290_v59 = vcombine.low %v2109_v38, %v2119_v53  ;;  %v326_v61 = vsel %vm6703_vm4, %v321_v48, %v325_v35  ;;  %v2136_v2 = vrot.slane %v2134_v51, 4 }
  0x3f   : > { %v2127_v0 = vor.u32 %v2126_v50, %v2123_v49  ;;  %v331_v5 = vrot.slane %v330_v55, 4  ;;  %v338_v7 = vshrl.u32 %v197_v52, 16  ;;  %v341_v8 = vshll.u32 %v197_v52, 16 }
  0x40   : > { %v2142_v6 = vrot.slane %v2140_v57, 5  ;;  %5898 = vmatprep.mubr.msk.bf16.mxu0 %vm675_vm3, %v5290_v59  ;;  %v2137_v17 = vor.u32 %v2136_v2, %v2132_v56  ;;  %v347_v10 = vshll.u32 %v198_v58, 16  ;;  %v351_v11 = vshrl.u32 %v198_v58, 16  ;;  %v5254_v2 = vld [vmem:[%s6677_s11 + $0x48] sm:$0xf] }
  0x41   : > { %v2128_v9 = vrot.slane %v2127_v0, 4  ;;  %v336_v13 = vsel %vm6703_vm4, %v331_v5, %v335_v47  ;;  %v340_v14 = vrot.slane %v338_v7, 4  ;;  %v343_v18 = vrot.slane %v341_v8, 5  ;;  %v6830_v8 = vld [vmem:[%s6677_s11 + $0x4c] sm:$0xf] }
  0x42   : > { %v357_v19 = vshll.u32 %v226_v4, 16  ;;  %v5064_v21 = vcombine.low %v326_v61, %v336_v13  ;;  %v2138_v24 = vrot.slane %v2137_v17, 4  ;;  %v349_v25 = vrot.slane %v347_v10, 5  ;;  %v227_v61 = vld [vmem:[%s6677_s11 + $0x44] sm:$0x1] }
  0x43   : > { %v2133_v23 = vsel %vm6703_vm4, %v2128_v9, %v2132_v56  ;;  %v344_v27 = vor.u32 %v343_v18, %v340_v14  ;;  %v353_v29 = vrot.slane %v351_v11, 4  ;;  %v2145_v35 = vshrl.u32 %v5251_v12, 16 }
  0x44   : > { %v359_v31 = vrot.slane %v357_v19, 5  ;;  %5763 = vmatmul.mubr.msk.bf16.gmra.mrb[4].mxu1 %vm675_vm3, %v5064_v21  ;;  %v2143_v37 = vsel %vm6703_vm4, %v2138_v24, %v2142_v6  ;;  %v2148_v36 = vshll.u32 %v5251_v12, 16  ;;  %v2154_v38 = vshll.u32 %v6807_v20, 16 }
  0x45   : > { %v2158_v39 = vshrl.u32 %v6807_v20, 16  ;;  %v5291_v43 = vcombine.low %v2133_v23, %v2143_v37  ;;  %v345_v44 = vrot.slane %v344_v27, 4  ;;  %v354_v45 = vor.u32 %v353_v29, %v349_v25  ;;  %v6838_v23 = vld [vmem:[%s6677_s11 + $0x50] sm:$0x1]  ;;  %v6842_v27 = vld [vmem:[%s6677_s11 + $0x48] sm:$0xf] }
  0x46   : > { %v2147_v47 = vrot.slane %v2145_v35, 4  ;;  %v2150_v48 = vrot.slane %v2148_v36, 5  ;;  %v2156_v49 = vrot.slane %v2154_v38, 5  ;;  %v2164_v51 = vshll.u32 %v6812_v34, 16  ;;  %v6845_v36 = vld [vmem:[%s6677_s11 + $0x4c] sm:$0xf] }
  0x47   : > { %v2160_v50 = vrot.slane %v2158_v39, 4  ;;  %5899 = vmatmul.mubr.msk.bf16.gmra.mrb[4].mxu0 %vm675_vm3, %v5291_v43  ;;  %v350_v52 = vsel %vm6703_vm4, %v345_v44, %v349_v25  ;;  %v355_v53 = vrot.slane %v354_v45, 4  ;;  %v362_v55 = vshrl.u32 %v199_v42, 16 }
  0x48   : > { %v365_v56 = vshll.u32 %v199_v42, 16  ;;  %v2151_v57 = vor.u32 %v2150_v48, %v2147_v47  ;;  %v2166_v59 = vrot.slane %v2164_v51, 5  ;;  %v371_v0 = vshll.u32 %v200_v26, 16 }
  0x49   : > { %v2161_v58 = vor.u32 %v2160_v50, %v2156_v49  ;;  %v360_v4 = vsel %vm6703_vm4, %v355_v53, %v359_v31  ;;  %v364_v5 = vrot.slane %v362_v55, 4  ;;  %v375_v7 = vshrl.u32 %v200_v26, 16  ;;  %v228_v26 = vld [vmem:[%s6677_s11 + $0x50] sm:$0x1]  ;;  %v5257_v53 = vld [vmem:[%s6677_s11 + $0x54] sm:$0xf] }
  0x4a   : > { %v367_v6 = vrot.slane %v365_v56, 5  ;;  %v5065_v9 = vcombine.low %v350_v52, %v360_v4  ;;  %v2152_v17 = vrot.slane %v2151_v57, 4  ;;  %v373_v11 = vrot.slane %v371_v0, 5  ;;  %v6861_v4 = vld [vmem:[%s6677_s11 + $0x58] sm:$0xf] }
  0x4b   : > { %v2162_v10 = vrot.slane %v2161_v58, 4  ;;  %v377_v13 = vrot.slane %v375_v7, 4  ;;  %v381_v14 = vshll.u32 %v227_v61, 16  ;;  %v2169_v18 = vshrl.u32 %v5254_v2, 16 }
  0x4c   : > { %v368_v12 = vor.u32 %v367_v6, %v364_v5  ;;  %5766 = vmatprep.mubr.msk.bf16.mxu1 %vm675_vm3, %v5065_v9  ;;  %v2157_v19 = vsel %vm6703_vm4, %v2152_v17, %v2156_v49  ;;  %v2172_v24 = vshll.u32 %v5254_v2, 16  ;;  %v2178_v25 = vshll.u32 %v6830_v8, 16 }
  0x4d   : > { %v2167_v21 = vsel %vm6703_vm4, %v2162_v10, %v2166_v59  ;;  %v378_v35 = vor.u32 %v377_v13, %v373_v11  ;;  %v383_v37 = vrot.slane %v381_v14, 5  ;;  %v2171_v38 = vrot.slane %v2169_v18, 4 }
  0x4e   : > { %v5292_v29 = vcombine.low %v2157_v19, %v2167_v21  ;;  %v369_v31 = vrot.slane %v368_v12, 4  ;;  %v2174_v39 = vrot.slane %v2172_v24, 5  ;;  %v2180_v42 = vrot.slane %v2178_v25, 5  ;;  %v6867_v12 = vld [vmem:[%s6677_s11 + $0x5c] sm:$0x1] }
  0x4f   : > { %v2182_v43 = vshrl.u32 %v6830_v8, 16  ;;  %v379_v45 = vrot.slane %v378_v35, 4  ;;  %v2188_v47 = vshll.u32 %v6838_v23, 16  ;;  %v386_v48 = vshrl.u32 %v6842_v27, 16  ;;  %v6871_v24 = vld [vmem:[%s6677_s11 + $0x54] sm:$0xf] }
  0x50   : > { %5902 = vmatprep.mubr.msk.bf16.mxu0 %vm675_vm3, %v5292_v29  ;;  %v374_v44 = vsel %vm6703_vm4, %v369_v31, %v373_v11  ;;  %v2175_v49 = vor.u32 %v2174_v39, %v2171_v38  ;;  %v389_v51 = vshll.u32 %v6842_v27, 16  ;;  %v395_v52 = vshll.u32 %v6845_v36, 16 }
  0x51   : > { %v2184_v50 = vrot.slane %v2182_v43, 4  ;;  %v384_v55 = vsel %vm6703_vm4, %v379_v45, %v383_v37  ;;  %v2190_v56 = vrot.slane %v2188_v47, 5  ;;  %v388_v57 = vrot.slane %v386_v48, 4  ;;  %v6877_v37 = vld [vmem:[%s6677_s11 + $0x58] sm:$0xf] }
  0x52   : > { %v399_v58 = vshrl.u32 %v6845_v36, 16  ;;  %v5066_v59 = vcombine.low %v374_v44, %v384_v55  ;;  %v2176_v61 = vrot.slane %v2175_v49, 4  ;;  %v391_v2 = vrot.slane %v389_v51, 5 }
  0x53   : > { %v2185_v0 = vor.u32 %v2184_v50, %v2180_v42  ;;  %v397_v5 = vrot.slane %v395_v52, 5  ;;  %v405_v7 = vshll.u32 %v228_v26, 16  ;;  %v2193_v9 = vshrl.u32 %v5257_v53, 16  ;;  %v229_v26 = vld [vmem:[%s6677_s11 + $0x5c] sm:$0x1] }
  0x54   : > { %v401_v6 = vrot.slane %v399_v58, 4  ;;  %5767 = vmatmul.mubr.msk.bf16.gmra.mrb[8].mxu1 %vm675_vm3, %v5066_v59  ;;  %v2181_v17 = vsel %vm6703_vm4, %v2176_v61, %v2180_v42  ;;  %v392_v11 = vor.u32 %v391_v2, %v388_v57  ;;  %v2196_v13 = vshll.u32 %v5257_v53, 16  ;;  %v5260_v53 = vld [vmem:[%s6677_s11 + $0x60] sm:$0xf]  ;;  %v6891_v59 = vld [vmem:[%s6677_s11 + $0x64] sm:$0xf] }
  0x55   : > { %v2186_v10 = vrot.slane %v2185_v0, 4  ;;  %v407_v18 = vrot.slane %v405_v7, 5  ;;  %v2195_v19 = vrot.slane %v2193_v9, 4  ;;  %v2202_v21 = vshll.u32 %v6861_v4, 16  ;;  %v6898_v9 = vld [vmem:[%s6677_s11 + $0x68] sm:$0x1] }
  0x56   : > { %v402_v14 = vor.u32 %v401_v6, %v397_v5  ;;  %v393_v29 = vrot.slane %v392_v11, 4  ;;  %v2198_v31 = vrot.slane %v2196_v13, 5  ;;  %v2206_v35 = vshrl.u32 %v6861_v4, 16 }
  0x57   : > { %v2191_v25 = vsel %vm6703_vm4, %v2186_v10, %v2190_v56  ;;  %v2204_v42 = vrot.slane %v2202_v21, 5  ;;  %v2212_v43 = vshll.u32 %v6867_v12, 16  ;;  %v410_v48 = vshrl.u32 %v6871_v24, 16 }
  0x58   : > { %v5293_v38 = vcombine.low %v2181_v17, %v2191_v25  ;;  %v403_v39 = vrot.slane %v402_v14, 4  ;;  %v398_v44 = vsel %vm6703_vm4, %v393_v29, %v397_v5  ;;  %v2199_v45 = vor.u32 %v2198_v31, %v2195_v19  ;;  %v6902_v19 = vld [vmem:[%s6677_s11 + $0x60] sm:$0xf] }
  0x59   : > { %v2208_v47 = vrot.slane %v2206_v35, 4  ;;  %v2214_v50 = vrot.slane %v2212_v43, 5  ;;  %v413_v51 = vshll.u32 %v6871_v24, 16  ;;  %v419_v52 = vshll.u32 %v6877_v37, 16  ;;  %v6908_v35 = vld [vmem:[%s6677_s11 + $0x64] sm:$0xf] }
  0x5a   : > { %5903 = vmatmul.mubr.msk.bf16.gmra.mrb[8].mxu0 %vm675_vm3, %v5293_v38  ;;  %v408_v49 = vsel %vm6703_vm4, %v403_v39, %v407_v18  ;;  %v2200_v56 = vrot.slane %v2199_v45, 4  ;;  %v412_v58 = vrot.slane %v410_v48, 4  ;;  %v423_v2 = vshrl.u32 %v6877_v37, 16 }
  0x5b   : > { %v5067_v55 = vcombine.low %v398_v44, %v408_v49  ;;  %v2209_v57 = vor.u32 %v2208_v47, %v2204_v42  ;;  %v415_v61 = vrot.slane %v413_v51, 5  ;;  %v421_v0 = vrot.slane %v419_v52, 5 }
  0x5c   : > { %v429_v5 = vshll.u32 %v229_v26, 16  ;;  %v2205_v6 = vsel %vm6703_vm4, %v2200_v56, %v2204_v42  ;;  %v2217_v17 = vshrl.u32 %v5260_v53, 16  ;;  %v2220_v10 = vshll.u32 %v5260_v53, 16 }
  0x5d   : > { %5770 = vmatprep.mubr.msk.bf16.mxu1 %vm675_vm3, %v5067_v55  ;;  %v2210_v7 = vrot.slane %v2209_v57, 4  ;;  %v416_v11 = vor.u32 %v415_v61, %v412_v58  ;;  %v425_v13 = vrot.slane %v423_v2, 4  ;;  %v2226_v18 = vshll.u32 %v6891_v59, 16  ;;  %v5320_v58 = vld [vmem:[%s6677_s11 + $0xc] sm:$0xe] }
  0x5e   : > { %v431_v14 = vrot.slane %v429_v5, 5  ;;  %v2219_v25 = vrot.slane %v2217_v17, 4  ;;  %v2222_v29 = vrot.slane %v2220_v10, 5  ;;  %v2230_v31 = vshrl.u32 %v6891_v59, 16 }
  0x5f   : > { %v2215_v21 = vsel %vm6703_vm4, %v2210_v7, %v2214_v50  ;;  %v417_v39 = vrot.slane %v416_v11, 4  ;;  %v426_v42 = vor.u32 %v425_v13, %v421_v0  ;;  %v2228_v43 = vrot.slane %v2226_v18, 5  ;;  %v230_v50 = vld [vmem:[%s6677_s11 + $0x68] sm:$0x1] }
  0x60   : > { %v5294_v38 = vcombine.low %v2205_v6, %v2215_v21  ;;  %v2223_v44 = vor.u32 %v2222_v29, %v2219_v25  ;;  %v2232_v45 = vrot.slane %v2230_v31, 4  ;;  %v2236_v47 = vshll.u32 %v6898_v9, 16  ;;  %v6936_v29 = vld [vmem:[%s6677_s11 + $0x70] sm:$0xf] }
  0x61   : > { %v434_v26 = vshrl.u32 %v6902_v19, 16  ;;  %v422_v48 = vsel %vm6703_vm4, %v417_v39, %v421_v0  ;;  %v427_v49 = vrot.slane %v426_v42, 4  ;;  %v437_v51 = vshll.u32 %v6902_v19, 16  ;;  %v6923_v0 = vld [vmem:[%s6677_s11 + $0x6c] sm:$0xf] }
  0x62   : > { %5906 = vmatprep.mubr.msk.bf16.mxu0 %vm675_vm3, %v5294_v38  ;;  %v443_v52 = vshll.u32 %v6908_v35, 16  ;;  %v2224_v53 = vrot.slane %v2223_v44, 4  ;;  %v2233_v55 = vor.u32 %v2232_v45, %v2228_v43  ;;  %v2238_v56 = vrot.slane %v2236_v47, 5 }
  0x63   : > { %v436_v57 = vrot.slane %v434_v26, 4  ;;  %v432_v61 = vsel %vm6703_vm4, %v427_v49, %v431_v14  ;;  %v439_v2 = vrot.slane %v437_v51, 5  ;;  %v447_v6 = vshrl.u32 %v6908_v35, 16  ;;  %v231_v26 = vld [vmem:[%s6677_s11 + $0x74] sm:$0x1] }
  0x64   : > { %v445_v5 = vrot.slane %v443_v52, 5  ;;  %v5068_v7 = vcombine.low %v422_v48, %v432_v61  ;;  %v2229_v17 = vsel %vm6703_vm4, %v2224_v53, %v2228_v43  ;;  %v2234_v10 = vrot.slane %v2233_v55, 4  ;;  %v5321_v48 = vld [vmem:[%s6677_s11 + $0x18] sm:$0xe] }
  0x65   : > { %v453_v11 = vshll.u32 %v230_v50, 16  ;;  %v440_v14 = vor.u32 %v439_v2, %v436_v57  ;;  %v449_v18 = vrot.slane %v447_v6, 4  ;;  %v5336_v21 = vrot.slane %v5320_v58, 9  ;;  %v6955_v53 = vld [vmem:[%s6677_s11 + $0x78] sm:$0xf] }
  0x66   : > { %v2794_v25 = vrot.slane %v2792_v62, 4  ;;  %5771 = vmatmul.mubr.msk.bf16.gmra.mrb[12].mxu1 %vm675_vm3, %v5068_v7  ;;  %v2239_v31 = vsel %vm6703_vm4, %v2234_v10, %v2238_v56  ;;  %v458_v39 = vshrl.u32 %v6923_v0, 16  ;;  %v461_v42 = vshll.u32 %v6923_v0, 16  ;;  %v232_v57 = vld [vmem:[%s6677_s11 + $0x80] sm:$0x1] }
  0x67   : > { %v455_v38 = vrot.slane %v453_v11, 5  ;;  %v5295_v43 = vcombine.low %v2229_v17, %v2239_v31  ;;  %v441_v44 = vrot.slane %v440_v14, 4  ;;  %v450_v45 = vor.u32 %v449_v18, %v445_v5  ;;  %v5322_v10 = vld [vmem:[%s6677_s11 + $0x24] sm:$0xe] }
  0x68   : > { %v2793_v47 = vsel %vm6929_vm7, %v5336_v21, %v2792_v62  ;;  %v2796_v49 = vsel %vm6929_vm7, %v2794_v25, %v2795_v63  ;;  %v460_v50 = vrot.slane %v458_v39, 4  ;;  %v463_v51 = vrot.slane %v461_v42, 5  ;;  %v6981_v39 = vld [vmem:[%s6677_s11 + $0x84] sm:$0xf] }
  0x69   : > { %v467_v52 = vshll.u32 %v6936_v29, 16  ;;  %5907 = vmatmul.mubr.msk.bf16.gmra.mrb[12].mxu0 %vm675_vm3, %v5295_v43  ;;  %v446_v15 = vsel %vm6703_vm4, %v441_v44, %v445_v5  ;;  %v451_v62 = vrot.slane %v450_v45, 4  ;;  %v5353_v55 = vcombine.low %v2793_v47, %v2796_v49  ;;  %v6989_v43 = vld [vmem:[%s6677_s11 + $0x88] sm:$0xf] }
  0x6a   : > { %v471_v56 = vshrl.u32 %v6936_v29, 16  ;;  %v464_v63 = vor.u32 %v463_v51, %v460_v50  ;;  %v477_v61 = vshll.u32 %v231_v26, 16  ;;  %v5337_v2 = vrot.slane %v5321_v48, 9 }
  0x6b   : > { %v469_v58 = vrot.slane %v467_v52, 5  ;;  %v456_v6 = vsel %vm6703_vm4, %v451_v62, %v455_v38  ;;  %5928 = vmatprep.mubr.msk.bf16.mxu0 %vm675_vm3, %v5353_v55  ;;  %v2803_v5 = vsel %vm6929_vm7, %v6746_v30, %v2802_v28  ;;  %v482_v17 = vshrl.u32 %v6955_v53, 16  ;;  %v233_v52 = vld [vmem:[%s6677_s11 + $0x8c] sm:$0x1] }
  0x6c   : > { %v473_v7 = vrot.slane %v471_v56, 4  ;;  %v5069_v11 = vcombine.low %v446_v15, %v456_v6  ;;  %v465_v14 = vrot.slane %v464_v63, 4  ;;  %v479_v18 = vrot.slane %v477_v61, 5 }
  0x6d   : > { %v2800_v21 = vsel %vm6929_vm7, %v5337_v2, %v2799_v22  ;;  %v484_v38 = vrot.slane %v482_v17, 4  ;;  %v485_v1 = vshll.u32 %v6955_v53, 16  ;;  %v491_v30 = vshll.u32 %v6962_v16, 16  ;;  %v6994_v22 = vld [vmem:[%s8541_s1 + $0xe] sm:$0x3] }
  0x6e   : > { %v474_v25 = vor.u32 %v473_v7, %v469_v58  ;;  %v5354_v31 = vcombine.low %v2800_v21, %v2803_v5  ;;  %5774 = vmatprep.mubr.msk.bf16.mxu1 %vm675_vm3, %v5069_v11  ;;  %v470_v28 = vsel %vm6703_vm4, %v465_v14, %v469_v58  ;;  %v495_v60 = vshrl.u32 %v6962_v16, 16  ;;  %v7013_v5 = vld [vmem:[%s6677_s11 + $0x90] sm:$0xf] }
  0x6f   : > { %v501_v42 = vshll.u32 %v232_v57, 16  ;;  %v487_v45 = vrot.slane %v485_v1, 5  ;;  %v5338_v47 = vrot.slane %v5322_v10, 9  ;;  %v2806_v26 = vrot.slane %v6753_v46, 5  ;;  %v5323_v57 = vld [vmem:[%s6677_s11 + $0x30] sm:$0xe] }
  0x70   : > { %v475_v44 = vrot.slane %v474_v25, 4  ;;  %v493_v48 = vrot.slane %v491_v30, 5  ;;  %v497_v49 = vrot.slane %v495_v60, 4  ;;  %v2809_v51 = vrot.slane %v6762_v54, 5  ;;  %v7025_v30 = vld [vmem:[%s6677_s11 + $0x94] sm:$0xf] }
  0x71   : > { %v503_v50 = vrot.slane %v501_v42, 5  ;;  %5929 = vmatmul.mubr.msk.bf16.vlgmr.msra.gmra.mrb[0].mxu0 %vm675_vm3, %v5354_v31  ;;  %v488_v62 = vor.u32 %v487_v45, %v484_v38  ;;  %v2807_v55 = vsel %vm6929_vm7, %v5338_v47, %v2806_v26  ;;  %v2808_v56 = vrot.slane %v2806_v26, 4  ;;  %v234_v60 = vld [vmem:[%s6677_s11 + $0x98] sm:$0x1]  ;;  %v5324_v26 = vld [vmem:[%s6677_s11 + $0x3c] sm:$0xe] }
  0x72   : > { %v480_v15 = vsel %vm6703_vm4, %v475_v44, %v479_v18  ;;  %5961 = vmatpush3.bf16.msra.mxu0 %v6713_v41  ;;  %v498_v46 = vor.u32 %v497_v49, %v493_v48  ;;  %v506_v58 = vshrl.u32 %v6981_v39, 16  ;;  %v509_v54 = vshll.u32 %v6981_v39, 16 }
  0x73   : > { %v5070_v63 = vcombine.low %v470_v28, %v480_v15  ;;  %v489_v61 = vrot.slane %v488_v62, 4  ;;  %v2810_v2 = vsel %vm6929_vm7, %v2808_v56, %v2809_v51  ;;  %v515_v6 = vshll.u32 %v6989_v43, 16  ;;  %6328 = vmatprep.subr.msk.bf16.mxu0 %vm724_vm0, %v6994_v22 }
  0x74   : > { %v519_v7 = vshrl.u32 %v6989_v43, 16  ;;  %v499_v41 = vrot.slane %v498_v46, 4  ;;  %v5355_v17 = vcombine.low %v2807_v55, %v2810_v2  ;;  %v508_v10 = vrot.slane %v506_v58, 4  ;;  %v7045_v46 = vld [vmem:[%s6677_s11 + $0xa0] sm:$0xf] }
  0x75   : > { %5775 = vmatmul.mubr.msk.bf16.gmra.mrb[16].mxu1 %vm675_vm3, %v5070_v63  ;;  %v511_v11 = vrot.slane %v509_v54, 5  ;;  %v494_v14 = vsel %vm6703_vm4, %v489_v61, %v493_v48  ;;  %v517_v18 = vrot.slane %v515_v6, 5  ;;  %v525_v25 = vshll.u32 %v233_v52, 16  ;;  %v7034_v52 = vld [vmem:[%s6677_s11 + $0x9c] sm:$0xf] }
  0x76   : > { %v521_v21 = vrot.slane %v519_v7, 4  ;;  %v504_v31 = vsel %vm6703_vm4, %v499_v41, %v503_v50  ;;  %5932 = vmatprep.mubr.msk.bf16.mxu0 %vm675_vm3, %v5355_v17  ;;  %v5339_v1 = vrot.slane %v5323_v57, 9  ;;  %v2813_v28 = vrot.slane %v6782_v33, 5 }
  0x77   : > { %v512_v38 = vor.u32 %v511_v11, %v508_v10  ;;  %v5071_v42 = vcombine.low %v494_v14, %v504_v31  ;;  %v527_v45 = vrot.slane %v525_v25, 5  ;;  %v2816_v47 = vrot.slane %v6790_v40, 5  ;;  %v235_v10 = vld [vmem:[%s6677_s11 + $0xa4] sm:$0x1]  ;;  %v5325_v11 = vld [vmem:[%s6677_s11 + $0x48] sm:$0xe] }
  0x78   : > { %v522_v44 = vor.u32 %v521_v21, %v517_v18  ;;  %v2814_v49 = vsel %vm6929_vm7, %v5339_v1, %v2813_v28  ;;  %v2815_v50 = vrot.slane %v2813_v28, 4  ;;  %v530_v51 = vshrl.u32 %v7013_v5, 16 }
  0x79   : > { %v513_v48 = vrot.slane %v512_v38, 4  ;;  %5778 = vmatprep.mubr.msk.bf16.mxu1 %vm675_vm3, %v5071_v42  ;;  %v533_v15 = vshll.u32 %v7013_v5, 16  ;;  %v539_v62 = vshll.u32 %v7025_v30, 16  ;;  %v543_v40 = vshrl.u32 %v7025_v30, 16 }
  0x7a   : > { %v523_v33 = vrot.slane %v522_v44, 4  ;;  %v2817_v56 = vsel %vm6929_vm7, %v2815_v50, %v2816_v47  ;;  %v532_v57 = vrot.slane %v530_v51, 4  ;;  %v549_v63 = vshll.u32 %v234_v60, 16 }
  0x7b   : > { %v518_v55 = vsel %vm6703_vm4, %v513_v48, %v517_v18  ;;  %v5356_v54 = vcombine.low %v2814_v49, %v2817_v56  ;;  %v535_v61 = vrot.slane %v533_v15, 5  ;;  %v541_v2 = vrot.slane %v539_v62, 5  ;;  %v7071_v56 = vld [vmem:[%s6677_s11 + $0xac] sm:$0xf] }
  0x7c   : > { %v528_v58 = vsel %vm6703_vm4, %v523_v33, %v527_v45  ;;  %v545_v7 = vrot.slane %v543_v40, 4  ;;  %v551_v41 = vrot.slane %v549_v63, 5  ;;  %v5340_v17 = vrot.slane %v5324_v26, 9  ;;  %v7066_v33 = vld [vmem:[%s6677_s11 + $0xa8] sm:$0xf] }
  0x7d   : > { %v5072_v6 = vcombine.low %v518_v55, %v528_v58  ;;  %5933 = vmatmul.mubr.msk.bf16.gmra.mrb[4].mxu0 %vm675_vm3, %v5356_v54  ;;  %v536_v14 = vor.u32 %v535_v61, %v532_v57  ;;  %v2820_v18 = vrot.slane %v6807_v20, 5  ;;  %v2823_v21 = vrot.slane %v6812_v34, 5  ;;  %v236_v61 = vld [vmem:[%s6677_s11 + $0xb0] sm:$0x1] }
  0x7e   : > { %v554_v25 = vshrl.u32 %v7034_v52, 16  ;;  %v546_v31 = vor.u32 %v545_v7, %v541_v2  ;;  %v557_v38 = vshll.u32 %v7034_v52, 16  ;;  %v563_v1 = vshll.u32 %v7045_v46, 16 }
  0x7f   : > { %5779 = vmatmul.mubr.msk.bf16.gmra.mrb[20].mxu1 %vm675_vm3, %v5072_v6  ;;  %v567_v28 = vshrl.u32 %v7045_v46, 16  ;;  %v537_v60 = vrot.slane %v536_v14, 4  ;;  %v2821_v42 = vsel %vm6929_vm7, %v5340_v17, %v2820_v18  ;;  %v2822_v20 = vrot.slane %v2820_v18, 4  ;;  %v7086_v14 = vld [vmem:[%s6677_s11 + $0xb4] sm:$0xf] }
  0x80   : > { %v556_v44 = vrot.slane %v554_v25, 4  ;;  %v547_v34 = vrot.slane %v546_v31, 4  ;;  %v559_v45 = vrot.slane %v557_v38, 5  ;;  %v565_v47 = vrot.slane %v563_v1, 5 }
  0x81   : > { %v569_v26 = vrot.slane %v567_v28, 4  ;;  %v542_v48 = vsel %vm6703_vm4, %v537_v60, %v541_v2  ;;  %v2824_v49 = vsel %vm6929_vm7, %v2822_v20, %v2823_v21  ;;  %v573_v50 = vshll.u32 %v235_v10, 16  ;;  %v5326_v2 = vld [vmem:[%s6677_s11 + $0x54] sm:$0xe] }
  0x82   : > { %v5341_v51 = vrot.slane %v5325_v11, 9  ;;  %v552_v15 = vsel %vm6703_vm4, %v547_v34, %v551_v41  ;;  %v5357_v62 = vcombine.low %v2821_v42, %v2824_v49  ;;  %v560_v40 = vor.u32 %v559_v45, %v556_v44  ;;  %v7095_v42 = vld [vmem:[%s6677_s11 + $0xb8] sm:$0xf]  ;;  %v237_v49 = vld [vmem:[%s6677_s11 + $0xbc] sm:$0x1] }
  0x83   : > { %v570_v55 = vor.u32 %v569_v26, %v565_v47  ;;  %v5073_v57 = vcombine.low %v542_v48, %v552_v15  ;;  %v575_v63 = vrot.slane %v573_v50, 5  ;;  %v2827_v58 = vrot.slane %v6830_v8, 5 }
  0x84   : > { %v2830_v54 = vrot.slane %v6838_v23, 5  ;;  %5936 = vmatprep.mubr.msk.bf16.mxu0 %vm675_vm3, %v5357_v62  ;;  %v561_v6 = vrot.slane %v560_v40, 4  ;;  %v578_v41 = vshrl.u32 %v7066_v33, 16  ;;  %v581_v17 = vshll.u32 %v7066_v33, 16 }
  0x85   : > { %v571_v7 = vrot.slane %v570_v55, 4  ;;  %5782 = vmatprep.mubr.msk.bf16.mxu1 %vm675_vm3, %v5073_v57  ;;  %v2828_v10 = vsel %vm6929_vm7, %v5341_v51, %v2827_v58  ;;  %v2829_v11 = vrot.slane %v2827_v58, 4  ;;  %v587_v8 = vshll.u32 %v7071_v56, 16  ;;  %v5327_v55 = vld [vmem:[%s6677_s11 + $0x60] sm:$0xe] }
  0x86   : > { %v591_v23 = vshrl.u32 %v7071_v56, 16  ;;  %v566_v18 = vsel %vm6703_vm4, %v561_v6, %v565_v47  ;;  %v580_v25 = vrot.slane %v578_v41, 4  ;;  %v583_v31 = vrot.slane %v581_v17, 5  ;;  %v5328_v6 = vld [vmem:[%s6677_s11 + $0x6c] sm:$0xe] }
  0x87   : > { %v576_v21 = vsel %vm6703_vm4, %v571_v7, %v575_v63  ;;  %v2831_v1 = vsel %vm6929_vm7, %v2829_v11, %v2830_v54  ;;  %v589_v28 = vrot.slane %v587_v8, 5  ;;  %v597_v34 = vshll.u32 %v236_v61, 16  ;;  %v5264_v11 = vld [vmem:[%s6677_s11 + $0x70] sm:$0xf]  ;;  %v5265_v8 = vld [vmem:[%s6677_s11 + $0x74] sm:$0x1] }
  0x88   : > { %v5074_v38 = vcombine.low %v566_v18, %v576_v21  ;;  %v593_v60 = vrot.slane %v591_v23, 4  ;;  %v5358_v20 = vcombine.low %v2828_v10, %v2831_v1  ;;  %v584_v44 = vor.u32 %v583_v31, %v580_v25 }
  0x89   : > { %v5342_v45 = vrot.slane %v5326_v2, 9  ;;  %v2834_v26 = vrot.slane %v6861_v4, 5  ;;  %v2837_v48 = vrot.slane %v6867_v12, 5  ;;  %v602_v50 = vshrl.u32 %v7086_v14, 16 }
  0x8a   : > { %5783 = vmatmul.mubr.msk.bf16.gmra.mrb[24].mxu1 %vm675_vm3, %v5074_v38  ;;  %v594_v47 = vor.u32 %v593_v60, %v589_v28  ;;  %5937 = vmatmul.mubr.msk.bf16.gmra.mrb[8].mxu0 %vm675_vm3, %v5358_v20  ;;  %v585_v51 = vrot.slane %v584_v44, 4  ;;  %v599_v15 = vrot.slane %v597_v34, 5  ;;  %v605_v62 = vshll.u32 %v7086_v14, 16 }
  0x8b   : > { %v611_v40 = vshll.u32 %v7095_v42, 16  ;;  %v2835_v4 = vsel %vm6929_vm7, %v5342_v45, %v2834_v26  ;;  %v2836_v12 = vrot.slane %v2834_v26, 4  ;;  %v604_v63 = vrot.slane %v602_v50, 4 }
  0x8c   : > { %v595_v57 = vrot.slane %v594_v47, 4  ;;  %v590_v58 = vsel %vm6703_vm4, %v585_v51, %v589_v28  ;;  %v607_v54 = vrot.slane %v605_v62, 5  ;;  %v615_v2 = vshrl.u32 %v7095_v42, 16  ;;  %v5329_v47 = vld [vmem:[%s6677_s11 + $0x78] sm:$0xe] }
  0x8d   : > { %v613_v61 = vrot.slane %v611_v40, 5  ;;  %v2838_v41 = vsel %vm6929_vm7, %v2836_v12, %v2837_v48  ;;  %v621_v17 = vshll.u32 %v237_v49, 16  ;;  %v5343_v10 = vrot.slane %v5327_v55, 9  ;;  %v6436_v51 = vld [vmem:[%s6677_s11] sm:$0xf] }
  0x8e   : > { %v600_v7 = vsel %vm6703_vm4, %v595_v57, %v599_v15  ;;  %v5359_v18 = vcombine.low %v2835_v4, %v2838_v41  ;;  %v608_v21 = vor.u32 %v607_v54, %v604_v63  ;;  %v617_v25 = vrot.slane %v615_v2, 4  ;;  %v7133_v15 = vld [vmem:[%s6677_s11 + $0x4] sm:$0xf]  ;;  %v7137_v40 = vld [vmem:[%s6677_s11 + $0x7c] sm:$0xf] }
  0x8f   : > { %v5075_v23 = vcombine.low %v590_v58, %v600_v7  ;;  %v623_v31 = vrot.slane %v621_v17, 5  ;;  %v2841_v38 = vrot.slane %v6891_v59, 5  ;;  %v2844_v1 = vrot.slane %v6898_v9, 5  ;;  %v7140_v55 = vld [vmem:[%s6677_s11 + $0x80] sm:$0x1] }
  0x90   : > { %v5344_v28 = vrot.slane %v5328_v6, 9  ;;  %5940 = vmatprep.mubr.msk.bf16.mxu0 %vm675_vm3, %v5359_v18  ;;  %v609_v60 = vrot.slane %v608_v21, 4  ;;  %v618_v20 = vor.u32 %v617_v25, %v613_v61  ;;  %v2848_v44 = vrot.slane %v5264_v11, 5  ;;  %v5270_v57 = vld [vmem:[%s6677_s11 + $0x88] sm:$0xf] }
  0x91   : > { %5786 = vmatprep.mubr.msk.bf16.mxu1 %vm675_vm3, %v5075_v23  ;;  %v2851_v34 = vrot.slane %v5265_v8, 5  ;;  %v2842_v45 = vsel %vm6929_vm7, %v5343_v10, %v2841_v38  ;;  %v2843_v59 = vrot.slane %v2841_v38, 4  ;;  %v5093_v62 = vcombine.low %v6436_v51, %v7133_v15  ;;  %v5271_v54 = vld [vmem:[%s6677_s11 + $0x8c] sm:$0x1]  ;;  %v5273_v17 = vld [vmem:[%s6677_s11 + $0x94] sm:$0xf] }
  0x92   : > { %v614_v9 = vsel %vm6703_vm4, %v609_v60, %v613_v61  ;;  %v619_v26 = vrot.slane %v618_v20, 4  ;;  %v2849_v48 = vsel %vm6929_vm7, %v5344_v28, %v2848_v44  ;;  %v2850_v49 = vrot.slane %v2848_v44, 4  ;;  %v5330_v61 = vld [vmem:[%s6677_s11 + $0x84] sm:$0xe]  ;;  %v5331_v23 = vld [vmem:[%s6677_s11 + $0x90] sm:$0xe] }
  0x93   : > { %v2845_v50 = vsel %vm6929_vm7, %v2843_v59, %v2844_v1  ;;  %v5345_v58 = vrot.slane %v5329_v47, 9  ;;  %v2855_v7 = vrot.slane %v7137_v40, 5  ;;  %v2858_v41 = vrot.slane %v7140_v55, 5  ;;  %v5274_v25 = vld [vmem:[%s6677_s11 + $0x98] sm:$0x1] }
  0x94   : > { %v624_v4 = vsel %vm6703_vm4, %v619_v26, %v623_v31  ;;  %v5360_v12 = vcombine.low %v2842_v45, %v2845_v50  ;;  %v2852_v63 = vsel %vm6929_vm7, %v2850_v49, %v2851_v34  ;;  %v5346_v10 = vrot.slane %v5330_v61, 9  ;;  %v5276_v31 = vld [vmem:[%s6677_s11 + $0xa0] sm:$0xf]  ;;  %v5277_v60 = vld [vmem:[%s6677_s11 + $0xa4] sm:$0x1] }
  0x95   : > { %v5076_v2 = vcombine.low %v614_v9, %v624_v4  ;;  %v5361_v6 = vcombine.low %v2849_v48, %v2852_v63  ;;  %v2862_v11 = vrot.slane %v5270_v57, 5  ;;  %v2865_v8 = vrot.slane %v5271_v54, 5  ;;  %v5332_v20 = vld [vmem:[%s6677_s11 + $0x9c] sm:$0xe]  ;;  %v6438_v44 = vld [vmem:[%s6677_s11 + $0xc] sm:$0xf] }
  0x96   : > { %5941 = vmatmul.mubr.msk.bf16.gmra.mrb[12].mxu0 %vm675_vm3, %v5360_v12  ;;  %v2856_v18 = vsel %vm6929_vm7, %v5345_v58, %v2855_v7  ;;  %v2857_v21 = vrot.slane %v2855_v7, 4  ;;  %v2869_v28 = vrot.slane %v5273_v17, 5  ;;  %v7167_v34 = vld [vmem:[%s6677_s11 + $0x10] sm:$0xf]  ;;  %v6440_v47 = vld [vmem:[%s6677_s11 + $0x18] sm:$0xf] }
  0x97   : > { %5787 = vmatmul.mubr.msk.bf16.gmra.mrb[28].mxu1 %vm675_vm3, %v5076_v2  ;;  %5944 = vmatprep.mubr.msk.bf16.mxu0 %vm675_vm3, %v5361_v6  ;;  %v2863_v38 = vsel %vm6929_vm7, %v5346_v10, %v2862_v11  ;;  %v2864_v1 = vrot.slane %v2862_v11, 4  ;;  %v5094_v45 = vcombine.low %v6438_v44, %v7167_v34  ;;  %v7174_v9 = vld [vmem:[%s6677_s11 + $0x1c] sm:$0xf]  ;;  %v5347_v48 = vrot.slane %v5331_v23, 9  ;;  %v5279_v57 = vld [vmem:[%s6677_s11 + $0xac] sm:$0xf] }
  0x98   : > { %5792 = vmatprep.mubr.msk.bf16.mxu1 %vm675_vm3, %v5093_v62  ;;  %v2859_v59 = vsel %vm6929_vm7, %v2857_v21, %v2858_v41  ;;  %v5095_v26 = vcombine.low %v6440_v47, %v7174_v9  ;;  %v2871_v51 = vrot.slane %v2869_v28, 4  ;;  %v2872_v62 = vrot.slane %v5274_v25, 5  ;;  %v6442_v54 = vld [vmem:[%s8541_s1 + $0x4] sm:$0x3]  ;;  %v5282_v2 = vld [vmem:[%s6677_s11 + $0xb8] sm:$0xf] }
  0x99   : > { %v5362_v49 = vcombine.low %v2856_v18, %v2859_v59  ;;  %v2866_v50 = vsel %vm6929_vm7, %v2864_v1, %v2865_v8  ;;  %v5348_v12 = vrot.slane %v5332_v20, 9  ;;  %v2876_v63 = vrot.slane %v5276_v31, 5  ;;  %v7189_v7 = vld [vmem:[%s8541_s1 + $0x6] sm:$0x3]  ;;  %v5280_v10 = vld [vmem:[%s6677_s11 + $0xb0] sm:$0x1] }
  0x9a   : > { %v5363_v4 = vcombine.low %v2863_v38, %v2866_v50  ;;  %v2879_v58 = vrot.slane %v5277_v60, 5  ;;  %v1443_v61 = vsel %vm724_vm0, %v6442_v54, 0  ;;  %v2870_v41 = vsel %vm6929_vm7, %v5347_v48, %v2869_v28  ;;  %v5333_v11 = vld [vmem:[%s6677_s11 + $0xa8] sm:$0xe]  ;;  %v5283_v25 = vld [vmem:[%s6677_s11 + $0xbc] sm:$0x1] }
  0x9b   : > { %v2878_v6 = vrot.slane %v2876_v63, 4  ;;  %v2873_v17 = vsel %vm6929_vm7, %v2871_v51, %v2872_v62  ;;  %v2883_v8 = vrot.slane %v5279_v57, 5  ;;  %v2877_v23 = vsel %vm6929_vm7, %v5348_v12, %v2876_v63  ;;  %v5334_v31 = vld [vmem:[%s6677_s11 + $0xb4] sm:$0xe]  ;;  %v6443_v38 = vld [vmem:[%s6677_s11 + $0x24] sm:$0xf] }
  0x9c   : > { %v2890_v21 = vrot.slane %v5282_v2, 5  ;;  %v7210_v1 = vld [vmem:[%s6677_s11 + $0x28] sm:$0xf]  ;;  %v5364_v60 = vcombine.low %v2870_v41, %v2873_v17  ;;  %v5349_v44 = vrot.slane %v5333_v11, 9  ;;  %v2886_v59 = vrot.slane %v5280_v10, 5 }
  0x9d   : > { %v2880_v18 = vsel %vm6929_vm7, %v2878_v6, %v2879_v58  ;;  %v5096_v28 = vcombine.low %v6443_v38, %v7210_v1  ;;  %v6445_v47 = vld [vmem:[%s6677_s11 + $0x30] sm:$0xf]  ;;  %v2893_v51 = vrot.slane %v5283_v25, 5  ;;  %v5285_v62 = vld [vmem:[%s6677_s11 + $0xc4] sm:$0xf]  ;;  %v2278_v25 = vshrl.u32 %v7137_v40, 16 }
  0x9e   : > { %5945 = vmatmul.mubr.msk.bf16.gmra.mrb[16].mxu0 %vm675_vm3, %v5362_v49  ;;  %v5365_v20 = vcombine.low %v2877_v23, %v2880_v18  ;;  %v5350_v49 = vrot.slane %v5334_v31, 9  ;;  %v2892_v50 = vrot.slane %v2890_v21, 4  ;;  %v2884_v57 = vsel %vm6929_vm7, %v5349_v44, %v2883_v8  ;;  %v5335_v12 = vld [vmem:[%s6677_s11 + $0xc0] sm:$0xe]  ;;  %v6447_v41 = vld [vmem:[%s6677_s11 + $0x3c] sm:$0xf] }
  0x9f   : > { %5793 = vmatmul.mubr.msk.bf16.vlgmr.msra.gmra.mrb[0].mxu1 %vm675_vm3, %v5094_v45  ;;  %5948 = vmatprep.mubr.msk.bf16.mxu0 %vm675_vm3, %v5363_v4  ;;  %v2885_v45 = vrot.slane %v2883_v8, 4  ;;  %v2897_v63 = vrot.slane %v5285_v62, 5  ;;  %v5351_v6 = vrot.slane %v5335_v12, 9  ;;  %v7235_v17 = vld [vmem:[%s6677_s11 + $0x40] sm:$0xf]  ;;  %v5099_v18 = vcombine.low %v6842_v27, %v6845_v36  ;;  %v6399_v62 = vld [vmem:[%s6677_s11 + $0x24] sm:$0xff]  }
  0xa0   : > { %5825 = vmatpush3.bf16.msra.mxu1 %v1443_v61  ;;  %5796 = vmatprep.mubr.msk.bf16.mxu1 %vm675_vm3, %v5095_v26  ;;  %v7215_v26 = vld [vmem:[%s6677_s11 + $0x34] sm:$0xf]  ;;  %v2891_v58 = vsel %vm6929_vm7, %v5350_v49, %v2890_v21  ;;  %v2894_v54 = vsel %vm6929_vm7, %v2892_v50, %v2893_v51  ;;  %v5286_v61 = vld [vmem:[%s6677_s11 + $0xc8] sm:$0x1]  ;;  %v5098_v10 = vcombine.low %v6447_v41, %v7235_v17  ;;  %v2274_v21 = vshll.u32 %v7137_v40, 16 }
  0xa1   : > { %6323 = vmatprep.subr.msk.bf16.mxu1 %vm724_vm0, %v7189_v7  ;;  %v5097_v48 = vcombine.low %v6445_v47, %v7215_v26  ;;  %v2887_v4 = vsel %vm6929_vm7, %v2885_v45, %v2886_v59  ;;  %v5367_v11 = vcombine.low %v2891_v58, %v2894_v54  ;;  %v2899_v8 = vrot.slane %v2897_v63, 4  ;;  %v1181_v45 = vld [vmem:[%s6677_s11] sm:$0xe]  ;;  %v1182_v59 = vld [vmem:[%s6677_s11 + $0xc] sm:$0xe] }
  0xa2   : > { %v5366_v2 = vcombine.low %v2884_v57, %v2887_v4  ;;  %v2900_v23 = vrot.slane %v5286_v61, 5  ;;  %v2898_v31 = vsel %vm6929_vm7, %v5351_v6, %v2897_v63  ;;  %v7250_v27 = vrot.slane %v2274_v21, 5  ;;  %v1185_v41 = vld [vmem:[%s6677_s11 + $0x30] sm:$0xe] }
  0xa3   : > { %v2280_v36 = vrot.slane %v2278_v25, 4  ;;  %v5101_v44 = vcombine.low %v6902_v19, %v6908_v35  ;;  %v2284_v47 = vshll.u32 %v7140_v55, 16  ;;  %v5125_v19 = vrot.slane %v1181_v45, 9 }
  0xa4   : > { %v2901_v38 = vsel %vm6929_vm7, %v2899_v8, %v2900_v23  ;;  %8564 = vst [vmem:[#allocation6_spill] sm:$0xff] %v7250_v27  ;;  %v5126_v35 = vrot.slane %v1182_v59, 9  ;;  %v1248_v4 = vrot.slane %v7174_v9, 5  ;;  %v1255_v12 = vrot.slane %v7210_v1, 5  ;;  %v1186_v8 = vld [vmem:[%s6677_s11 + $0x3c] sm:$0xe] }
  0xa5   : > { %v5368_v40 = vcombine.low %v2898_v31, %v2901_v38  ;;  %v2281_v49 = vor.u32 %v2280_v36, %v7250_v27  ;;  %v7270_v51 = vrot.slane %v2284_v47, 5  ;;  %v5102_v58 = vcombine.low %v6923_v0, %v6936_v29  ;;  %v1187_v31 = vld [vmem:[%s6677_s11 + $0x48] sm:$0xe]  ;;  %v6453_v59 = vld [vmem:[%s6677_s11 + $0x38] sm:$0x1] }
  0xa6   : > { %5949 = vmatmul.mubr.msk.bf16.gmra.mrb[20].mxu0 %vm675_vm3, %v5364_v60  ;;  %v5100_v60 = vcombine.low %v6871_v24, %v6877_v37  ;;  %v6450_v24 = vld [vmem:[%s6677_s11 + $0x14] sm:$0x1]  ;;  %v4089_v54 = vsel %vm724_vm0, %v6994_v22, 0  ;;  %v5103_v61 = vcombine.low %v6955_v53, %v6962_v16  ;;  %v5104_v6 = vcombine.low %v6981_v39, %v6989_v43  ;;  %v6451_v16 = vld [vmem:[%s6677_s11 + $0x20] sm:$0x1] }
  0xa7   : > { %5797 = vmatmul.mubr.msk.bf16.gmra.mrb[4].mxu1 %vm675_vm3, %v5096_v28  ;;  %5952 = vmatprep.mubr.msk.bf16.mxu0 %vm675_vm3, %v5365_v20  ;;  %v1241_v28 = vrot.slane %v7167_v34, 5  ;;  %v6397_v20 = vld [vmem:[%s6677_s11 + $0x18] sm:$0xff]   ;;  %v6449_v34 = vld [vmem:[%s6677_s11 + $0x8] sm:$0x1]  ;;  %v1244_v37 = vrot.slane %v6450_v24, 5  ;;  %8565 = vst [vmem:[#allocation7_spill] sm:$0xff] %v7270_v51  ;;  %v5105_v9 = vcombine.low %v7013_v5, %v7025_v30 }
  0xa8   : > { %5800 = vmatprep.mubr.msk.bf16.mxu1 %vm675_vm3, %v5097_v48  ;;  %v1234_v48 = vrot.slane %v7133_v15, 5  ;;  %v1237_v50 = vrot.slane %v6449_v34, 5  ;;  %v1183_v15 = vld [vmem:[%s6677_s11 + $0x18] sm:$0xe]  ;;  %v7275_v63 = vrot.slane %v2281_v49, 4  ;;  %v1251_v22 = vrot.slane %v6451_v16, 5 }
  0xa9   : > { %v1243_v55 = vrot.slane %v1241_v28, 4  ;;  %v5127_v1 = vrot.slane %v1183_v15, 9  ;;  %v7297_v29 = vsel %vm6929_vm7, %v5126_v35, %v1241_v28  ;;  %v1257_v25 = vrot.slane %v1255_v12, 4  ;;  %v5450_v24 = vld [vmem:[%s6677_s11 + $0x18] sm:$0xf] }
  0xaa   : > { %v1236_v57 = vrot.slane %v1234_v48, 4  ;;  %8566 = vst [vmem:[#allocation8_spill] sm:$0xff] %v7275_v63  ;;  %v7293_v0 = vsel %vm6929_vm7, %v5125_v19, %v1234_v48  ;;  %v1265_v47 = vrot.slane %v6453_v59, 5  ;;  %v7334_v49 = vsel %vm724_vm0, %v7189_v7, 0  ;;  %v5451_v7 = vld [vmem:[%s6677_s11 + $0x1c] sm:$0xf] }
  0xab   : > { %v7301_v53 = vsel %vm6929_vm7, %v1243_v55, %v1244_v37  ;;  %v7338_v34 = vsel %vm6929_vm7, %v5127_v1, %v1248_v4  ;;  %v6403_v37 = vld [vmem:[%s6677_s11 + $0x3c] sm:$0xff]   ;;  %v5130_v35 = vrot.slane %v1186_v8, 9  ;;  %v6454_v55 = vld [vmem:[%s6677_s11 + $0x44] sm:$0x1]  ;;  %v3610_v8 = vshll.u32 %v5450_v24, 16 }
  0xac   : > { %v7312_v23 = vsel %vm6929_vm7, %v1236_v57, %v1237_v50  ;;  %v1188_v50 = vld [vmem:[%s6677_s11 + $0x54] sm:$0xe]  ;;  %v1272_v15 = vrot.slane %v6454_v55, 5  ;;  %v5454_v39 = vld [vmem:[%s6677_s11 + $0x28] sm:$0xf] }
  0xad   : > { %v6461_v5 = vld [vmem:[%s6677_s11 + $0x70] sm:$0xf] }
  0xae   : > { %5953 = vmatmul.mubr.msk.bf16.gmra.mrb[24].mxu0 %vm675_vm3, %v5366_v2  ;;  %v1184_v2 = vld [vmem:[%s6677_s11 + $0x24] sm:$0xe]  ;;  %v1297_v30 = vrot.slane %v6461_v5, 5 }
  0xaf   : > { %5801 = vmatmul.mubr.msk.bf16.gmra.mrb[8].mxu1 %vm675_vm3, %v5098_v10  ;;  %5956 = vmatprep.mubr.msk.bf16.mxu0 %vm675_vm3, %v5367_v11  ;;  %v1262_v10 = vrot.slane %v7215_v26, 5  ;;  %v6401_v11 = vld [vmem:[%s6677_s11 + $0x30] sm:$0xff]   ;;  %v5128_v21 = vrot.slane %v1184_v2, 9 }
  0xb0   : > { %5804 = vmatprep.mubr.msk.bf16.mxu1 %vm675_vm3, %v5099_v18  ;;  %v7308_v26 = vld [vmem:[%s8541_s1 + $0x10] sm:$0x3]  ;;  %v1250_v18 = vrot.slane %v1248_v4, 4  ;;  %v1299_v48 = vrot.slane %v1297_v30, 4 }
  0xb1   : > { %v1264_v45 = vrot.slane %v1262_v10, 4  ;;  %v7345_v19 = vsel %vm6929_vm7, %v5128_v21, %v1255_v12  ;;  %v3620_v21 = vshrl.u32 %v5451_v7, 16 }
  0xb2   : > { %v7354_v4 = vsel %vm6929_vm7, %v1250_v18, %v1251_v22  ;;  %v3607_v22 = vshrl.u32 %v5450_v24, 16  ;;  %v3616_v18 = vshll.u32 %v5451_v7, 16  ;;  %v5453_v24 = vld [vmem:[%s6677_s11 + $0x24] sm:$0xf] }
  0xb3   : > { %v7367_v1 = vsel %vm6929_vm7, %v1264_v45, %v1265_v47 }
  0xb4   : > { %v3609_v43 = vrot.slane %v3607_v22, 4  ;;  %v7409_v7 = vrot.slane %v3616_v18, 5  ;;  %v3634_v22 = vshll.u32 %v5453_v24, 16  ;;  %v3644_v18 = vshrl.u32 %v5454_v39, 16 }
  0xb6   : > { %5957 = vmatmul.mubr.msk.bf16.gmra.mrb[28].mxu0 %vm675_vm3, %v5368_v40  ;;  %v6452_v40 = vld [vmem:[%s6677_s11 + $0x2c] sm:$0x1]  ;;  %v3636_v27 = vrot.slane %v3634_v22, 5 }
  0xb7   : > { %5805 = vmatmul.mubr.msk.bf16.gmra.mrb[12].mxu1 %vm675_vm3, %v5100_v60  ;;  %5962 = vmatprep.mubr.msk.bf16.mxu0 %vm675_vm3, %v6397_v20  ;;  %v1258_v28 = vrot.slane %v6452_v40, 5  ;;  %v1269_v60 = vrot.slane %v7235_v17, 5  ;;  %v6457_v40 = vld [vmem:[%s6677_s11 + $0x50] sm:$0x1]  ;;  %v6462_v17 = vld [vmem:[%s6677_s11 + $0x74] sm:$0x1] }
  0xb8   : > { %5808 = vmatprep.mubr.msk.bf16.mxu1 %vm675_vm3, %v5101_v44  ;;  %v5129_v44 = vrot.slane %v1185_v41, 9  ;;  %v5132_v41 = vrot.slane %v1188_v50, 9  ;;  %v1189_v50 = vld [vmem:[%s6677_s11 + $0x60] sm:$0xe]  ;;  %v5455_v20 = vld [vmem:[%s6677_s11 + $0x2c] sm:$0x1] }
  0xb9   : > { %v1271_v12 = vrot.slane %v1269_v60, 4  ;;  %v7380_v45 = vsel %vm6929_vm7, %v5130_v35, %v1269_v60  ;;  %v6458_v35 = vld [vmem:[%s6677_s11 + $0x5c] sm:$0x1] }
  0xba   : > { %v7363_v2 = vsel %vm6929_vm7, %v5129_v44, %v1262_v10  ;;  %v1286_v55 = vrot.slane %v6458_v35, 5  ;;  %v1190_v35 = vld [vmem:[%s6677_s11 + $0x6c] sm:$0xe] }
  0xbb   : > { %v7384_v59 = vsel %vm6929_vm7, %v1271_v12, %v1272_v15  ;;  %v6459_v15 = vld [vmem:[%s6677_s11 + $0x64] sm:$0xf]  ;;  %v3622_v12 = vrot.slane %v3620_v21, 4  ;;  %v5134_v5 = vrot.slane %v1190_v35, 9 }
  0xbc   : > { %v6409_v21 = vld [vmem:[%s6677_s11 + $0x60] sm:$0xff]  }
  0xbe   : > { %5963 = vmatmul.mubr.msk.bf16.vlgmr.msra.gmra.mrb[0].mxu0 %vm675_vm3, %v6399_v62  ;;  %v6455_v62 = vld [vmem:[%s6677_s11 + $0x4c] sm:$0xf] }
  0xbf   : > { %5809 = vmatmul.mubr.msk.bf16.gmra.mrb[16].mxu1 %vm675_vm3, %v5102_v58  ;;  %5995 = vmatpush3.bf16.msra.mxu0 %v4089_v54  ;;  %v1276_v57 = vrot.slane %v6455_v62, 5  ;;  %v7358_v58 = vsel %vm6929_vm7, %v1257_v25, %v1258_v28  ;;  %v5131_v54 = vrot.slane %v1187_v31, 9  ;;  %v1279_v28 = vrot.slane %v6457_v40, 5 }
  0xc0   : > { %5812 = vmatprep.mubr.msk.bf16.mxu1 %vm675_vm3, %v5103_v61  ;;  %5966 = vmatprep.mubr.msk.bf16.mxu0 %vm675_vm3, %v6401_v11  ;;  %v6405_v61 = vld [vmem:[%s6677_s11 + $0x48] sm:$0xff]   ;;  %v6456_v11 = vld [vmem:[%s6677_s11 + $0x58] sm:$0xf]  ;;  %v1290_v62 = vrot.slane %v6459_v15, 5  ;;  %v5457_v15 = vld [vmem:[%s6677_s11 + $0x34] sm:$0xf] }
  0xc1   : > { %6329 = vmatprep.subr.msk.bf16.mxu0 %vm724_vm0, %v7308_v26  ;;  %v1283_v16 = vrot.slane %v6456_v11, 5  ;;  %v1278_v31 = vrot.slane %v1276_v57, 4  ;;  %v7388_v47 = vsel %vm6929_vm7, %v5131_v54, %v1276_v57  ;;  %v5452_v57 = vld [vmem:[%s6677_s11 + $0x20] sm:$0x1]  ;;  %v5456_v54 = vld [vmem:[%s6677_s11 + $0x30] sm:$0xf] }
  0xc2   : > { %v5133_v11 = vrot.slane %v1189_v50, 9  ;;  %v3658_v50 = vshll.u32 %v5456_v54, 16  ;;  %v3626_v25 = vshll.u32 %v5452_v57, 16  ;;  %v3664_v36 = vshll.u32 %v5457_v15, 16 }
  0xc3   : > { %v7399_v60 = vsel %vm6929_vm7, %v5132_v41, %v1283_v16  ;;  %v7415_v41 = vsel %vm6929_vm7, %v1278_v31, %v1279_v28  ;;  %v1292_v31 = vrot.slane %v1290_v62, 4  ;;  %v3655_v28 = vshrl.u32 %v5456_v54, 16 }
  0xc4   : > { %v7457_v35 = vrot.slane %v3664_v36, 5 }
  0xc6   : > { %5967 = vmatmul.mubr.msk.bf16.gmra.mrb[4].mxu0 %vm675_vm3, %v6403_v37  ;;  %v1285_v37 = vrot.slane %v1283_v16, 4  ;;  %v6460_v16 = vld [vmem:[%s6677_s11 + $0x68] sm:$0x1] }
  0xc7   : > { %5813 = vmatmul.mubr.msk.bf16.gmra.mrb[20].mxu1 %vm675_vm3, %v5104_v6  ;;  %5970 = vmatprep.mubr.msk.bf16.mxu0 %vm675_vm3, %v6405_v61  ;;  %v3612_v6 = vrot.slane %v3610_v8, 5  ;;  %v6407_v61 = vld [vmem:[%s6677_s11 + $0x54] sm:$0xff]   ;;  %v1293_v40 = vrot.slane %v6460_v16, 5  ;;  %v3640_v8 = vshll.u32 %v5454_v39, 16  ;;  %v3623_v16 = vor.u32 %v3622_v12, %v7409_v7 }
  0xc8   : > { %5816 = vmatprep.mubr.msk.bf16.mxu1 %vm675_vm3, %v5105_v9  ;;  %v3631_v9 = vshrl.u32 %v5453_v24, 16  ;;  %v7424_v44 = vsel %vm6929_vm7, %v1285_v37, %v1286_v55  ;;  %v1300_v24 = vrot.slane %v6462_v17, 5  ;;  %v3668_v39 = vshrl.u32 %v5457_v15, 16 }
  0xc9   : > { %v3613_v10 = vor.u32 %v3612_v6, %v3609_v43  ;;  %v7430_v37 = vrot.slane %v3640_v8, 5  ;;  %v3646_v55 = vrot.slane %v3644_v18, 4  ;;  %v8567_v43 = vcombine.low %v7034_v52, %v7045_v46  ;;  %v6463_v8 = vld [vmem:[%s6677_s11 + $0x7c] sm:$0xf]  ;;  %v7466_v18 = vld [vmem:[%s6677_s11 + $0x38] sm:$0x1] }
  0xca   : > { %v3633_v38 = vrot.slane %v3631_v9, 4  ;;  %v7439_v17 = vsel %vm6929_vm7, %v5133_v11, %v1290_v62  ;;  %v7443_v57 = vsel %vm6929_vm7, %v1292_v31, %v1293_v40  ;;  %v3657_v6 = vrot.slane %v3655_v28, 4  ;;  %8569 = vst [vmem:[#allocation9_spill] sm:$0xff] %v7466_v18 }
  0xcb   : > { %v3660_v12 = vrot.slane %v3658_v50, 5  ;;  %v8568_v52 = vcombine.low %v7066_v33, %v7071_v56  ;;  %v3614_v46 = vrot.slane %v3613_v10, 4  ;;  %v3624_v54 = vrot.slane %v3623_v16, 4  ;;  %v6411_v33 = vld [vmem:[%s6677_s11 + $0x6c] sm:$0xff]   ;;  %v1192_v16 = vld [vmem:[%s6677_s11 + $0x84] sm:$0xe] }
  0xcc   : > { %v3650_v62 = vshll.u32 %v5455_v20, 16  ;;  %v7451_v11 = vsel %vm6929_vm7, %v5134_v5, %v1297_v30  ;;  %v7455_v40 = vsel %vm6929_vm7, %v1299_v48, %v1300_v24  ;;  %v3670_v9 = vrot.slane %v3668_v39, 4  ;;  %v6412_v48 = vld [vmem:[%s6677_s11 + $0x78] sm:$0xff]  }
  0xcd   : > { %v3637_v10 = vor.u32 %v3636_v27, %v3633_v38  ;;  %v3647_v20 = vor.u32 %v3646_v55, %v7430_v37  ;;  %v1304_v30 = vrot.slane %v6463_v8, 5  ;;  %v3661_v38 = vor.u32 %v3660_v12, %v3657_v6  ;;  %v5459_v5 = vld [vmem:[%s6677_s11 + $0x3c] sm:$0xf] }
  0xce   : > { %5971 = vmatmul.mubr.msk.bf16.gmra.mrb[8].mxu0 %vm675_vm3, %v6407_v61  ;;  %v3628_v61 = vrot.slane %v3626_v25, 5  ;;  %v1191_v25 = vld [vmem:[%s6677_s11 + $0x78] sm:$0xe]  ;;  %v7482_v50 = vrot.slane %v3650_v62, 5  ;;  %v3671_v39 = vor.u32 %v3670_v9, %v7457_v35  ;;  %v3674_v55 = vshll.u32 %v7466_v18, 16 }
  0xcf   : > { %5817 = vmatmul.mubr.msk.bf16.gmra.mrb[24].mxu1 %vm675_vm3, %v8567_v43  ;;  %5974 = vmatprep.mubr.msk.bf16.mxu0 %vm675_vm3, %v6409_v21  ;;  %v3619_v21 = vsel %vm6703_vm4, %v3614_v46, %v7409_v7  ;;  %v5135_v24 = vrot.slane %v1191_v25, 9  ;;  %v6464_v43 = vld [vmem:[%s6677_s11 + $0x88] sm:$0xf]  ;;  %v7490_v7 = vld [vmem:[%s6677_s11 + $0x40] sm:$0xf]  ;;  %v3638_v12 = vrot.slane %v3637_v10, 4  ;;  %v8571_v62 = vcombine.low %v7086_v14, %v7095_v42 }
  0xd0   : > { %5820 = vmatprep.mubr.msk.bf16.mxu1 %vm675_vm3, %v8568_v52  ;;  %v3629_v31 = vsel %vm6703_vm4, %v3624_v54, %v3628_v61  ;;  %v1311_v6 = vrot.slane %v6464_v43, 5  ;;  %8570 = vst [vmem:[#allocation10_spill] sm:$0xff] %v7490_v7  ;;  %v3648_v52 = vrot.slane %v3647_v20, 4  ;;  %v1306_v46 = vrot.slane %v1304_v30, 4  ;;  %v6465_v54 = vld [vmem:[%s6677_s11 + $0x80] sm:$0x1] }
  0xd1   : > { %v1307_v61 = vrot.slane %v6465_v54, 5  ;;  %v3662_v9 = vrot.slane %v3661_v38, 4  ;;  %v5136_v25 = vrot.slane %v1192_v16, 9  ;;  %v3679_v8 = vshrl.u32 %v5459_v5, 16  ;;  %v6413_v10 = vld [vmem:[%s6677_s11 + $0x84] sm:$0xff]  }
  0xd2   : > { %v3682_v43 = vshll.u32 %v5459_v5, 16  ;;  %v7504_v20 = vcombine.low %v3619_v21, %v3629_v31  ;;  %v7508_v14 = vsel %vm724_vm0, %v7308_v26, 0  ;;  %v3692_v38 = vshrl.u32 %v7490_v7, 16  ;;  %v6414_v21 = vld [vmem:[%s6677_s11 + $0x90] sm:$0xff]   ;;  %v6470_v18 = vld [vmem:[%s6677_s11 + $0xa0] sm:$0xf] }
  0xd3   : > { %v3672_v16 = vrot.slane %v3671_v39, 4  ;;  %v3676_v5 = vrot.slane %v3674_v55, 5  ;;  %v1313_v54 = vrot.slane %v1311_v6, 4  ;;  %v3643_v31 = vsel %vm6703_vm4, %v3638_v12, %v7430_v37 }
  0xd4   : > { %v3653_v26 = vsel %vm6703_vm4, %v3648_v52, %v7482_v50  ;;  %v7523_v39 = vsel %vm6929_vm7, %v5135_v24, %v1304_v30  ;;  %v7527_v55 = vsel %vm6929_vm7, %v1306_v46, %v1307_v61  ;;  %v3667_v37 = vsel %vm6703_vm4, %v3662_v9, %v7457_v35  ;;  %v5465_v30 = vld [vmem:[%s6677_s11 + $0x54] sm:$0xf]  ;;  %v7544_v24 = vld [vmem:[%s6677_s11 + $0x58] sm:$0xf]  ;;  %v7549_v61 = vld [vmem:[%s6677_s11 + $0x90] sm:$0xe] }
  0xd5   : > { %v7540_v12 = vsel %vm6929_vm7, %v5136_v25, %v1311_v6  ;;  %v3681_v50 = vrot.slane %v3679_v8, 4  ;;  %v3684_v52 = vrot.slane %v3682_v43, 5  ;;  %v3694_v46 = vrot.slane %v3692_v38, 4 }
  0xd6   : > { %5975 = vmatmul.mubr.msk.bf16.gmra.mrb[12].mxu0 %vm675_vm3, %v6411_v33  ;;  %v8572_v33 = vcombine.low %v7293_v0, %v7312_v23  ;;  %v6466_v0 = vld [vmem:[%s6677_s11 + $0x8c] sm:$0x1]  ;;  %v3677_v36 = vsel %vm6703_vm4, %v3672_v16, %v3676_v5  ;;  %v3727_v25 = vshrl.u32 %v5465_v30, 16  ;;  %v3730_v8 = vshll.u32 %v5465_v30, 16 }
  0xd7   : > { %5821 = vmatmul.mubr.msk.bf16.gmra.mrb[28].mxu1 %vm675_vm3, %v8571_v62  ;;  %5978 = vmatprep.mubr.msk.bf16.mxu0 %vm675_vm3, %v6412_v48  ;;  %v3688_v48 = vshll.u32 %v7490_v7, 16  ;;  %v1314_v23 = vrot.slane %v6466_v0, 5  ;;  %v5462_v62 = vld [vmem:[%s6677_s11 + $0x48] sm:$0xf]  ;;  %v7533_v0 = vld [vmem:[%s6677_s11 + $0x4c] sm:$0xf]  ;;  %v8574_v38 = vcombine.low %v7297_v29, %v7301_v53  ;;  %v7567_v16 = vcombine.low %v3643_v31, %v3653_v26 }
  0xd8   : > { %5826 = vmatprep.mubr.msk.bf16.mxu1 %vm675_vm3, %v8572_v33  ;;  %v7530_v33 = vld [vmem:[%s6677_s11 + $0x44] sm:$0x1]  ;;  %v3703_v27 = vshrl.u32 %v5462_v62, 16  ;;  %v3706_v15 = vshll.u32 %v5462_v62, 16  ;;  %v3712_v6 = vshll.u32 %v7533_v0, 16  ;;  %v3716_v9 = vshrl.u32 %v7533_v0, 16 }
  0xd9   : > { %8573 = vst [vmem:[#allocation11_spill] sm:$0xff] %v7530_v33  ;;  %v7546_v28 = vrot.slane %v3688_v48, 5  ;;  %v7555_v35 = vsel %vm6929_vm7, %v1313_v54, %v1314_v23  ;;  %v3736_v43 = vshll.u32 %v7544_v24, 16  ;;  %v3740_v48 = vshrl.u32 %v7544_v24, 16  ;;  %v5468_v31 = vld [vmem:[%s6677_s11 + $0x60] sm:$0xf] }
  0xda   : > { %v3698_v5 = vshll.u32 %v7530_v33, 16  ;;  %v5137_v54 = vrot.slane %v7549_v61, 9  ;;  %v8575_v23 = vcombine.low %v7338_v34, %v7354_v4  ;;  %v7578_v29 = vcombine.low %v3667_v37, %v3677_v36  ;;  %v6415_v26 = vld [vmem:[%s6677_s11 + $0x9c] sm:$0xff]   ;;  %v6416_v30 = vld [vmem:[%s6677_s11 + $0xa8] sm:$0xff]  }
  0xdb   : > { %v3685_v53 = vor.u32 %v3684_v52, %v3681_v50  ;;  %v3705_v62 = vrot.slane %v3703_v27, 4  ;;  %v7589_v34 = vrot.slane %v3712_v6, 5  ;;  %v3718_v4 = vrot.slane %v3716_v9, 4  ;;  %v6467_v36 = vld [vmem:[%s8541_s1 + $0x8] sm:$0x3] }
  0xdc   : > { %v3729_v27 = vrot.slane %v3727_v25, 4  ;;  %v3732_v37 = vrot.slane %v3730_v8, 5  ;;  %v7598_v50 = vrot.slane %v3736_v43, 5  ;;  %v3742_v52 = vrot.slane %v3740_v48, 4  ;;  %v6468_v6 = vld [vmem:[%s6677_s11 + $0x94] sm:$0xf] }
  0xdd   : > { %v7604_v9 = vld [vmem:[%s6677_s11 + $0x64] sm:$0xf]  ;;  %v3751_v61 = vshrl.u32 %v5468_v31, 16  ;;  %v7606_v22 = vrot.slane %v3685_v53, 4  ;;  %v1325_v25 = vrot.slane %v6470_v18, 5  ;;  %v3719_v43 = vor.u32 %v3718_v4, %v7589_v34 }
  0xde   : > { %5979 = vmatmul.mubr.msk.bf16.gmra.mrb[16].mxu0 %vm675_vm3, %v6413_v10  ;;  %8576 = vst [vmem:[#allocation12_spill] sm:$0xff] %v7604_v9  ;;  %v3754_v10 = vshll.u32 %v5468_v31, 16  ;;  %v3733_v31 = vor.u32 %v3732_v37, %v3729_v27  ;;  %v3743_v53 = vor.u32 %v3742_v52, %v7598_v50  ;;  %v8577_v18 = vcombine.low %v7345_v19, %v7358_v58  ;;  %v6417_v37 = vld [vmem:[%s6677_s11 + $0xb4] sm:$0xff]  }
  0xdf   : > { %5827 = vmatmul.mubr.msk.bf16.vlgmr.msra.gmra.mrb[0].mxu1 %vm675_vm3, %v8574_v38  ;;  %5982 = vmatprep.mubr.msk.bf16.mxu0 %vm675_vm3, %v6414_v21  ;;  %v3708_v21 = vrot.slane %v3706_v15, 5  ;;  %v7587_v38 = vld [vmem:[%s6677_s11 + $0x50] sm:$0x1]  ;;  %v7596_v15 = vld [vmem:[%s6677_s11 + $0x5c] sm:$0x1]  ;;  %v8578_v27 = vcombine.low %v7363_v2, %v7367_v1  ;;  %v1327_v52 = vrot.slane %v1325_v25, 4 }
  0xe0   : > { %5859 = vmatpush3.bf16.msra.mxu1 %v7334_v49  ;;  %5830 = vmatprep.mubr.msk.bf16.mxu1 %vm675_vm3, %v8575_v23  ;;  %v3695_v49 = vor.u32 %v3694_v46, %v7546_v28  ;;  %v7600_v46 = vrot.slane %v3698_v5, 5  ;;  %v1318_v23 = vrot.slane %v6468_v6, 5  ;;  %v3722_v48 = vshll.u32 %v7587_v38, 16  ;;  %v1194_v5 = vld [vmem:[%s6677_s11 + $0x9c] sm:$0xe] }
  0xe1   : > { %6325 = vmatprep.subr.msk.bf16.mxu1 %vm724_vm0, %v6467_v36  ;;  %v6469_v36 = vld [vmem:[%s6677_s11 + $0x98] sm:$0x1]  ;;  %v3709_v7 = vor.u32 %v3708_v21, %v3705_v62  ;;  %v3746_v6 = vshll.u32 %v7596_v15, 16  ;;  %v3764_v62 = vshrl.u32 %v7604_v9, 16  ;;  %v3756_v4 = vrot.slane %v3754_v10, 5 }
  0xe2   : > { %v1321_v33 = vrot.slane %v6469_v36, 5  ;;  %v3696_v8 = vrot.slane %v3695_v49, 4  ;;  %v3760_v36 = vshll.u32 %v7604_v9, 16  ;;  %v7625_v21 = vsel %vm6929_vm7, %v5137_v54, %v1318_v23  ;;  %v7636_v2 = vld [vmem:[%s6677_s11 + $0x68] sm:$0x1] }
  0xe3   : > { %v3753_v49 = vrot.slane %v3751_v61, 4  ;;  %v3710_v19 = vrot.slane %v3709_v7, 4  ;;  %v5138_v58 = vrot.slane %v1194_v5, 9  ;;  %v3720_v3 = vrot.slane %v3719_v43, 4  ;;  %8579 = vst [vmem:[#allocation13_spill] sm:$0xff] %v7636_v2  ;;  %v6418_v5 = vld [vmem:[%s6677_s11 + $0xc0] sm:$0xff]  }
  0xe4   : > { %v3724_v54 = vrot.slane %v3722_v48, 5  ;;  %v3748_v63 = vrot.slane %v3746_v6, 5  ;;  %v1332_v61 = vrot.slane %v7071_v56, 5  ;;  %v3734_v10 = vrot.slane %v3733_v31, 4  ;;  %v1196_v31 = vld [vmem:[%s6677_s11 + $0xb4] sm:$0xe] }
  0xe5   : > { %v3744_v51 = vrot.slane %v3743_v53, 4  ;;  %v7638_v1 = vrot.slane %v3760_v36, 5  ;;  %v3766_v7 = vrot.slane %v3764_v62, 4  ;;  %v3691_v43 = vsel %vm6703_vm4, %v7606_v22, %v7546_v28  ;;  %v6472_v62 = vld [vmem:[%s6677_s11 + $0xb0] sm:$0x1] }
  0xe6   : > { %5983 = vmatmul.mubr.msk.bf16.gmra.mrb[20].mxu0 %vm675_vm3, %v6415_v26  ;;  %v1320_v26 = vrot.slane %v1318_v23, 4  ;;  %v1195_v23 = vld [vmem:[%s6677_s11 + $0xa8] sm:$0xe]  ;;  %v3701_v48 = vsel %vm6703_vm4, %v3696_v8, %v7600_v46  ;;  %v3757_v6 = vor.u32 %v3756_v4, %v3753_v49  ;;  %v3715_v53 = vsel %vm6703_vm4, %v3710_v19, %v7589_v34  ;;  %v5471_v46 = vld [vmem:[%s6677_s11 + $0x6c] sm:$0xf] }
  0xe7   : > { %5831 = vmatmul.mubr.msk.bf16.gmra.mrb[4].mxu1 %vm675_vm3, %v8577_v18  ;;  %5986 = vmatprep.mubr.msk.bf16.mxu0 %vm675_vm3, %v6416_v30  ;;  %v6471_v18 = vld [vmem:[%s6677_s11 + $0xa4] sm:$0x1]  ;;  %v7658_v36 = vsel %vm6929_vm7, %v5138_v58, %v1325_v25  ;;  %v5139_v28 = vrot.slane %v1195_v23, 9  ;;  %v1334_v8 = vrot.slane %v1332_v61, 4  ;;  %v3770_v49 = vshll.u32 %v7636_v2, 16 }
  0xe8   : > { %5834 = vmatprep.mubr.msk.bf16.mxu1 %vm675_vm3, %v8578_v27  ;;  %v1328_v30 = vrot.slane %v6471_v18, 5  ;;  %v7650_v56 = vsel %vm6929_vm7, %v1320_v26, %v1321_v33  ;;  %v3725_v33 = vsel %vm6703_vm4, %v3720_v3, %v3724_v54  ;;  %v1335_v26 = vrot.slane %v6472_v62, 5  ;;  %v5474_v18 = vld [vmem:[%s6677_s11 + $0x78] sm:$0xf]  ;;  %v7713_v54 = vld [vmem:[%s6677_s11 + $0xbc] sm:$0x1] }
  0xe9   : > { %v3739_v34 = vsel %vm6703_vm4, %v3734_v10, %v7598_v50  ;;  %v3749_v25 = vsel %vm6703_vm4, %v3744_v51, %v3748_v63  ;;  %v3767_v4 = vor.u32 %v3766_v7, %v7638_v1  ;;  %v5140_v27 = vrot.slane %v1196_v31, 9  ;;  %v7687_v51 = vld [vmem:[%s6677_s11 + $0x70] sm:$0xf]  ;;  %v7717_v10 = vld [vmem:[%s6677_s11 + $0x7c] sm:$0xf] }
  0xea   : > { %v7662_v22 = vsel %vm6929_vm7, %v1327_v52, %v1328_v30  ;;  %v8581_v3 = vcombine.low %v7380_v45, %v7384_v59  ;;  %v7683_v19 = vrot.slane %v3757_v6, 4  ;;  %v1339_v50 = vrot.slane %v7095_v42, 5  ;;  %8582 = vst [vmem:[#allocation15_spill] sm:$0xff] %v7687_v51  ;;  %8584 = vst [vmem:[#allocation16_spill] sm:$0xff] %v7717_v10  ;;  %v5477_v7 = vld [vmem:[%s6677_s11 + $0x84] sm:$0xf] }
  0xeb   : > { %8580 = vst [vmem:[#allocation14_spill] sm:$0xff] %v7662_v22  ;;  %v3775_v63 = vshrl.u32 %v5471_v46, 16  ;;  %v8583_v45 = vcombine.low %v7388_v47, %v7415_v41  ;;  %v7695_v58 = vcombine.low %v3715_v53, %v3725_v33  ;;  %v7701_v42 = vsel %vm6929_vm7, %v5139_v28, %v1332_v61  ;;  %v6419_v61 = vld [vmem:[%s6677_s11 + $0xcc] sm:$0xff]   ;;  %v7729_v31 = vld [vmem:[%s6677_s11 + $0x88] sm:$0xf] }
  0xec   : > { %v7704_v30 = vcombine.low %v3739_v34, %v3749_v25  ;;  %v7708_v47 = vsel %vm6929_vm7, %v1334_v8, %v1335_v26  ;;  %v7710_v41 = vrot.slane %v3770_v49, 5  ;;  %v3784_v6 = vshll.u32 %v7687_v51, 16  ;;  %8585 = vst [vmem:[#allocation17_spill] sm:$0xff] %v7729_v31  ;;  %v5480_v62 = vld [vmem:[%s6677_s11 + $0x90] sm:$0xf] }
  0xed   : > { %v7735_v28 = vrot.slane %v1339_v50, 4  ;;  %v7737_v33 = vrot.slane %v3775_v63, 4  ;;  %v3788_v8 = vshrl.u32 %v7687_v51, 16  ;;  %v3799_v26 = vshrl.u32 %v5474_v18, 16  ;;  %v7744_v25 = vld [vmem:[%s6677_s11 + $0x94] sm:$0xf] }
  0xee   : > { %5987 = vmatmul.mubr.msk.bf16.gmra.mrb[24].mxu0 %vm675_vm3, %v6417_v37  ;;  %v7681_v37 = vcombine.low %v3691_v43, %v3701_v48  ;;  %v7725_v43 = vsel %vm6929_vm7, %v5140_v27, %v1339_v50  ;;  %v3778_v48 = vshll.u32 %v5471_v46, 16  ;;  %v3802_v49 = vshll.u32 %v5474_v18, 16  ;;  %8586 = vst [vmem:[#allocation18_spill] sm:$0xff] %v7744_v25  ;;  %v7782_v2 = vld [vmem:[%s6677_s11 + $0x8c] sm:$0x1] }
  0xef   : > { %5835 = vmatmul.mubr.msk.bf16.gmra.mrb[8].mxu1 %vm675_vm3, %v8581_v3  ;;  %5990 = vmatprep.mubr.msk.bf16.mxu0 %vm675_vm3, %v6418_v5  ;;  %v7721_v5 = vrot.slane %v3767_v4, 4  ;;  %v3808_v46 = vshll.u32 %v7717_v10, 16  ;;  %v3812_v34 = vshrl.u32 %v7717_v10, 16  ;;  %v3823_v4 = vshrl.u32 %v5477_v7, 16 }
  0xf0   : > { %5838 = vmatprep.mubr.msk.bf16.mxu1 %vm675_vm3, %v8583_v45  ;;  %v3826_v27 = vshll.u32 %v5477_v7, 16  ;;  %v3832_v3 = vshll.u32 %v7729_v31, 16  ;;  %v3836_v50 = vshrl.u32 %v7729_v31, 16  ;;  %v7754_v45 = vld [vmem:[%s6677_s11 + $0x74] sm:$0x1]  ;;  %v3780_v18 = vrot.slane %v3778_v48, 5 }
  0xf1   : > { %v3847_v52 = vshrl.u32 %v5480_v62, 16  ;;  %v3850_v53 = vshll.u32 %v5480_v62, 16  ;;  %v8587_v7 = vcombine.low %v7399_v60, %v7424_v44  ;;  %v3790_v59 = vrot.slane %v3788_v8, 4  ;;  %v5483_v48 = vld [vmem:[%s6677_s11 + $0x9c] sm:$0xf] }
  0xf2   : > { %v3856_v63 = vshll.u32 %v7744_v25, 16  ;;  %v3860_v23 = vshrl.u32 %v7744_v25, 16  ;;  %v8588_v62 = vcombine.low %v7439_v17, %v7443_v57  ;;  %v7772_v44 = vld [vmem:[%s6677_s11 + $0x80] sm:$0x1]  ;;  %v3801_v60 = vrot.slane %v3799_v26, 4 }
  0xf3   : > { %8589 = vst [vmem:[#allocation19_spill] sm:$0xff] %v7772_v44  ;;  %v3825_v31 = vrot.slane %v3823_v4, 4  ;;  %v3828_v8 = vrot.slane %v3826_v27, 5  ;;  %v7776_v10 = vrot.slane %v3832_v3, 5  ;;  %v3838_v51 = vrot.slane %v3836_v50, 4 }
  0xf4   : > { %v7779_v25 = vld [vmem:[%s6677_s11 + $0xa0] sm:$0xf]  ;;  %v3849_v17 = vrot.slane %v3847_v52, 4  ;;  %v3852_v57 = vrot.slane %v3850_v53, 5  ;;  %v3874_v9 = vshll.u32 %v5483_v48, 16  ;;  %v3781_v26 = vor.u32 %v3780_v18, %v7737_v33 }
  0xf5   : > { %v3818_v27 = vshll.u32 %v7772_v44, 16  ;;  %v7791_v3 = vld [vmem:[%s6677_s11 + $0x98] sm:$0x1]  ;;  %v3880_v50 = vshll.u32 %v7779_v25, 16  ;;  %v3884_v52 = vshrl.u32 %v7779_v25, 16  ;;  %v3829_v22 = vor.u32 %v3828_v8, %v3825_v31 }
  0xf6   : > { %5991 = vmatmul.mubr.msk.bf16.gmra.mrb[28].mxu0 %vm675_vm3, %v6419_v61  ;;  %v7762_v61 = vrot.slane %v3784_v6, 5  ;;  %v3814_v6 = vrot.slane %v3812_v34, 4  ;;  %v3862_v34 = vrot.slane %v3860_v23, 4  ;;  %v3842_v33 = vshll.u32 %v7782_v2, 16 }
  0xf7   : > { %5839 = vmatmul.mubr.msk.bf16.gmra.mrb[12].mxu1 %vm675_vm3, %v8587_v7  ;;  %5996 = vmatprep.mubr.msk.bf16.mxu0 %vm675_vm3, %v7504_v20  ;;  %v3804_v7 = vrot.slane %v3802_v49, 5  ;;  %v7774_v20 = vrot.slane %v3808_v46, 5  ;;  %v3794_v49 = vshll.u32 %v7754_v45, 16  ;;  %v7786_v46 = vrot.slane %v3856_v63, 5 }
  0xf8   : > { %5842 = vmatprep.mubr.msk.bf16.mxu1 %vm675_vm3, %v8588_v62  ;;  %v3871_v62 = vshrl.u32 %v5483_v48, 16  ;;  %v3791_v4 = vor.u32 %v3790_v59, %v7762_v61  ;;  %v3839_v23 = vor.u32 %v3838_v51, %v7776_v10  ;;  %v3853_v59 = vor.u32 %v3852_v57, %v3849_v17  ;;  %v7824_v57 = vld [vmem:[%s6677_s11 + $0xa4] sm:$0x1] }
  0xf9   : > { %v3805_v53 = vor.u32 %v3804_v7, %v3801_v60  ;;  %v3815_v48 = vor.u32 %v3814_v6, %v7774_v20  ;;  %v3876_v18 = vrot.slane %v3874_v9, 5  ;;  %v8590_v44 = vcombine.low %v7451_v11, %v7455_v40 }
  0xfa   : > { %v3873_v63 = vrot.slane %v3871_v62, 4  ;;  %v8591_v31 = vrot.slane %v7713_v54, 5  ;;  %v3796_v51 = vrot.slane %v3794_v49, 5  ;;  %v3863_v60 = vor.u32 %v3862_v34, %v7786_v46  ;;  %v7827_v34 = vld [vmem:[%s6677_s11 + $0xac] sm:$0xf] }
  0xfb   : > { %v3866_v9 = vshll.u32 %v7791_v3, 16  ;;  %v8592_v11 = vcombine.low %v7523_v39, %v7527_v55  ;;  %v3782_v40 = vrot.slane %v3781_v26, 4  ;;  %v7820_v54 = vrot.slane %v3880_v50, 5 }
  0xfc   : > { %v3806_v7 = vrot.slane %v3805_v53, 4  ;;  %v3816_v6 = vrot.slane %v3815_v48, 4  ;;  %v3820_v8 = vrot.slane %v3818_v27, 5  ;;  %v3844_v17 = vrot.slane %v3842_v33, 5  ;;  %v7837_v48 = vld [vmem:[%s6677_s11 + $0xb0] sm:$0x1] }
  0xfd   : > { %v3830_v39 = vrot.slane %v3829_v22, 4  ;;  %v3840_v55 = vrot.slane %v3839_v23, 4  ;;  %v3854_v62 = vrot.slane %v3853_v59, 4  ;;  %v3877_v49 = vor.u32 %v3876_v18, %v3873_v63 }
  0xfe   : > { %5997 = vmatmul.mubr.msk.bf16.vlgmr.msra.gmra.mrb[0].mxu0 %vm675_vm3, %v7567_v16  ;;  %v7810_v16 = vsel %vm6929_vm7, %v7735_v28, %v8591_v31  ;;  %v3886_v28 = vrot.slane %v3884_v52, 4  ;;  %v3868_v26 = vrot.slane %v3866_v9, 5  ;;  %v3787_v52 = vsel %vm6703_vm4, %v3782_v40, %v7762_v61 }
  0xff   : > { %5843 = vmatmul.mubr.msk.bf16.gmra.mrb[16].mxu1 %vm675_vm3, %v8590_v44  ;;  %6029 = vmatpush3.bf16.msra.mxu0 %v7508_v14  ;;  %v3792_v14 = vrot.slane %v3791_v4, 4  ;;  %v5486_v44 = vld [vmem:[%s6677_s11 + $0xa8] sm:$0xf]  ;;  %v3890_v22 = vshll.u32 %v7824_v57, 16  ;;  %v3811_v33 = vsel %vm6703_vm4, %v3806_v7, %v7774_v20  ;;  %v3821_v23 = vsel %vm6703_vm4, %v3816_v6, %v3820_v8 }
 0x100   : > { %5846 = vmatprep.mubr.msk.bf16.mxu1 %vm675_vm3, %v8592_v11  ;;  %6000 = vmatprep.mubr.msk.bf16.mxu0 %vm675_vm3, %v7578_v29  ;;  %v3864_v29 = vrot.slane %v3863_v60, 4  ;;  %v3895_v4 = vshrl.u32 %v5486_v44, 16  ;;  %v3898_v50 = vshll.u32 %v5486_v44, 16  ;;  %v3887_v53 = vor.u32 %v3886_v28, %v7820_v54  ;;  %v5535_v11 = vld [vmem:[%s6677_s11 + $0x48] sm:$0xe] }
 0x101   : > { %v3797_v27 = vsel %vm6703_vm4, %v3792_v14, %v3796_v51  ;;  %v3904_v59 = vshll.u32 %v7827_v34, 16  ;;  %v3908_v61 = vshrl.u32 %v7827_v34, 16  ;;  %v3835_v63 = vsel %vm6703_vm4, %v3830_v39, %v7776_v10  ;;  %v7902_v39 = vld [vmem:[%s6677_s11 + $0xb8] sm:$0xf] }
 0x102   : > { %v3845_v18 = vsel %vm6703_vm4, %v3840_v55, %v3844_v17  ;;  %v3859_v20 = vsel %vm6703_vm4, %v3854_v62, %v7786_v46  ;;  %v3878_v31 = vrot.slane %v3877_v49, 4  ;;  %v8593_v51 = vcombine.low %v7540_v12, %v7555_v35 }
 0x103   : > { %v3897_v10 = vrot.slane %v3895_v4, 4  ;;  %v3900_v60 = vrot.slane %v3898_v50, 5  ;;  %v3914_v9 = vshll.u32 %v7837_v48, 16  ;;  %v8594_v46 = vcombine.low %v7625_v21, %v7650_v56  ;;  %v5489_v21 = vld [vmem:[%s6677_s11 + $0xb4] sm:$0xf] }
 0x104   : > { %v5156_v12 = vcombine.low %v7701_v42, %v7708_v47  ;;  %v8595_v35 = vsel %vm6703_vm4, %v7721_v5, %v7710_v41  ;;  %v3888_v14 = vrot.slane %v3887_v53, 4  ;;  %v3892_v28 = vrot.slane %v3890_v22, 5  ;;  %v5537_v4 = vld [vmem:[%s6677_s11 + $0x60] sm:$0xe]  ;;  %v5538_v53 = vld [vmem:[%s6677_s11 + $0x6c] sm:$0xe] }
 0x105   : > { %v5157_v56 = vcombine.low %v7725_v43, %v7810_v16  ;;  %v7885_v44 = vcombine.low %v3787_v52, %v3797_v27  ;;  %v7887_v42 = vrot.slane %v3904_v59, 5  ;;  %v3910_v47 = vrot.slane %v3908_v61, 4  ;;  %v8604_v16 = vld [vmem:[#allocation7_spill] sm:$0xff] }
 0x106   : > { %6001 = vmatmul.mubr.msk.bf16.gmra.mrb[4].mxu0 %vm675_vm3, %v7681_v37  ;;  %v3869_v37 = vsel %vm6703_vm4, %v3864_v29, %v3868_v26  ;;  %v7889_v41 = vcombine.low %v3811_v33, %v3821_v23  ;;  %v7891_v5 = vcombine.low %v3835_v63, %v3845_v18  ;;  %v3883_v6 = vsel %vm6703_vm4, %v3878_v31, %v7820_v54  ;;  %v8597_v23 = vld [vmem:[#allocation14_spill] sm:$0xff]  ;;  %v5492_v63 = vld [vmem:[%s6677_s11 + $0xc0] sm:$0xf]  ;;  %v8599_v18 = vld [vmem:[#allocation12_spill] sm:$0xff] }
 0x107   : > { %5847 = vmatmul.mubr.msk.bf16.gmra.mrb[20].mxu1 %vm675_vm3, %v8593_v51  ;;  %6004 = vmatprep.mubr.msk.bf16.mxu0 %vm675_vm3, %v7695_v58  ;;  %v8596_v58 = vsel %vm6703_vm4, %v7683_v19, %v7638_v1  ;;  %v7893_v7 = vcombine.low %v3859_v20, %v3869_v37  ;;  %v5551_v1 = vrot.slane %v5535_v11, 9  ;;  %v5536_v19 = vld [vmem:[%s6677_s11 + $0x54] sm:$0xe]  ;;  %v3901_v8 = vor.u32 %v3900_v60, %v3897_v10  ;;  %v8600_v31 = vld [vmem:[#allocation13_spill] sm:$0xff] }
 0x108   : > { %5850 = vmatprep.mubr.msk.bf16.mxu1 %vm675_vm3, %v8594_v46  ;;  %v5505_v40 = vcombine.low %v8596_v58, %v8595_v35  ;;  %v7899_v17 = vrot.slane %v3914_v9, 5  ;;  %v3919_v55 = vshrl.u32 %v5489_v21, 16  ;;  %v3893_v62 = vsel %vm6703_vm4, %v3888_v14, %v3892_v28  ;;  %v8601_v9 = vld [vmem:[#allocation15_spill] sm:$0xff]  ;;  %v7951_v35 = vld [vmem:[%s6677_s11 + $0xbc] sm:$0x1] }
 0x109   : > { %v3922_v49 = vshll.u32 %v5489_v21, 16  ;;  %v4378_v29 = vrot.slane %v7533_v0, 5  ;;  %v4381_v26 = vrot.slane %v7587_v38, 5  ;;  %v3911_v50 = vor.u32 %v3910_v47, %v7887_v42  ;;  %v7954_v58 = vld [vmem:[%s6677_s11 + $0xc4] sm:$0xf] }
 0x10a   : > { %v5552_v52 = vrot.slane %v5536_v19, 9  ;;  %v4385_v54 = vrot.slane %v7544_v24, 5  ;;  %v4388_v27 = vrot.slane %v7596_v15, 5  ;;  %v3928_v22 = vshll.u32 %v7902_v39, 16  ;;  %v5539_v19 = vld [vmem:[%s6677_s11 + $0x78] sm:$0xe] }
 0x10b   : > { %v3932_v33 = vshrl.u32 %v7902_v39, 16  ;;  %v7919_v0 = vsel %vm6929_vm7, %v5551_v1, %v4378_v29  ;;  %v4380_v38 = vrot.slane %v4378_v29, 4  ;;  %v8598_v59 = vcombine.low %v7658_v36, %v8597_v23  ;;  %v8602_v23 = vld [vmem:[#allocation16_spill] sm:$0xff] }
 0x10c   : > { %v7926_v24 = vcombine.low %v3883_v6, %v3893_v62  ;;  %v7930_v15 = vsel %vm6929_vm7, %v5552_v52, %v4385_v54  ;;  %v5553_v61 = vrot.slane %v5537_v4, 9  ;;  %v4392_v20 = vrot.slane %v8599_v18, 5  ;;  %v6420_v6 = vld [vmem:[%s6677_s11 + $0xc] sm:$0xff]  }
 0x10d   : > { %v7936_v36 = vsel %vm6929_vm7, %v4380_v38, %v4381_v26  ;;  %v4395_v51 = vrot.slane %v8600_v31, 5  ;;  %v5554_v37 = vrot.slane %v5538_v53, 9  ;;  %v4399_v11 = vrot.slane %v8601_v9, 5 }
 0x10e   : > { %6005 = vmatmul.mubr.msk.bf16.gmra.mrb[8].mxu0 %vm675_vm3, %v7704_v30  ;;  %v4387_v30 = vrot.slane %v4385_v54, 4  ;;  %v5568_v10 = vcombine.low %v7919_v0, %v7936_v36  ;;  %v4402_v46 = vrot.slane %v7754_v45, 5  ;;  %v7960_v14 = vsel %vm6929_vm7, %v5553_v61, %v4392_v20 }
 0x10f   : > { %5851 = vmatmul.mubr.msk.bf16.gmra.mrb[24].mxu1 %vm675_vm3, %v8598_v59  ;;  %6008 = vmatprep.mubr.msk.bf16.mxu0 %vm675_vm3, %v5505_v40  ;;  %v4394_v28 = vrot.slane %v4392_v20, 4  ;;  %v7962_v21 = vrot.slane %v3919_v55, 4  ;;  %v3943_v47 = vshrl.u32 %v5492_v63, 16  ;;  %v7966_v45 = vsel %vm6929_vm7, %v5554_v37, %v4399_v11  ;;  %v5266_v55 = vld [vmem:[%s6677_s11 + $0x78] sm:$0xf]  ;;  %v8603_v59 = vld [vmem:[#allocation19_spill] sm:$0xff] }
 0x110   : > { %5854 = vmatprep.mubr.msk.bf16.mxu1 %vm675_vm3, %v5156_v12  ;;  %v7944_v60 = vsel %vm6929_vm7, %v4387_v30, %v4388_v27  ;;  %v7948_v12 = vrot.slane %v3901_v8, 4  ;;  %v4401_v1 = vrot.slane %v4399_v11, 4  ;;  %v7970_v8 = vrot.slane %v3911_v50, 4 }
 0x111   : > { %v5569_v40 = vcombine.low %v7930_v15, %v7944_v60  ;;  %v7972_v62 = vrot.slane %v3922_v49, 5  ;;  %v3946_v29 = vshll.u32 %v5492_v63, 16  ;;  %v7976_v26 = vsel %vm6929_vm7, %v4394_v28, %v4395_v51  ;;  %v8606_v28 = vld [vmem:[#allocation17_spill] sm:$0xff] }
 0x112   : > { %v7979_v4 = vrot.slane %v3928_v22, 5  ;;  %v7981_v52 = vrot.slane %v3932_v33, 4  ;;  %v5570_v54 = vcombine.low %v7960_v14, %v7976_v26  ;;  %v7987_v27 = vsel %vm6929_vm7, %v4401_v1, %v4402_v46  ;;  %v5540_v33 = vld [vmem:[%s6677_s11 + $0x84] sm:$0xe]  ;;  %v6421_v1 = vld [vmem:[%s6677_s11 + $0x18] sm:$0xff]  }
 0x113   : > { %v3938_v49 = vshll.u32 %v7951_v35, 16  ;;  %v3952_v50 = vshll.u32 %v7954_v58, 16  ;;  %v5571_v53 = vcombine.low %v7966_v45, %v7987_v27  ;;  %v5555_v22 = vrot.slane %v5539_v19, 9  ;;  %v6483_v60 = vld [vmem:[%s6677_s11 + $0xa0] sm:$0xf] }
 0x114   : > { %v3945_v38 = vrot.slane %v3943_v47, 4  ;;  %v4409_v30 = vrot.slane %v8603_v59, 5  ;;  %v2265_v61 = vshrl.u32 %v5266_v55, 16  ;;  %v3948_v63 = vrot.slane %v3946_v29, 5  ;;  %v5495_v29 = vld [vmem:[%s6677_s11 + $0xcc] sm:$0xf] }
 0x115   : > { %v3956_v18 = vshrl.u32 %v7954_v58, 16  ;;  %v2268_v43 = vshll.u32 %v5266_v55, 16  ;;  %v5556_v37 = vrot.slane %v5540_v33, 9  ;;  %v3907_v9 = vsel %vm6703_vm4, %v7948_v12, %v7887_v42  ;;  %v8030_v55 = vld [vmem:[%s6677_s11 + $0xd0] sm:$0xf] }
 0x116   : > { %6009 = vmatmul.mubr.msk.bf16.gmra.mrb[12].mxu0 %vm675_vm3, %v7885_v44  ;;  %v4406_v44 = vrot.slane %v8602_v23, 5  ;;  %v2267_v51 = vrot.slane %v2265_v61, 4  ;;  %v3925_v11 = vor.u32 %v7972_v62, %v7962_v21  ;;  %v4413_v47 = vrot.slane %v8606_v28, 5  ;;  %v6422_v21 = vld [vmem:[%s6677_s11 + $0x24] sm:$0xff]   ;;  %v6487_v27 = vld [vmem:[%s6677_s11 + $0xac] sm:$0xf] }
 0x117   : > { %5855 = vmatmul.mubr.msk.bf16.gmra.mrb[28].mxu1 %vm675_vm3, %v5157_v56  ;;  %6012 = vmatprep.mubr.msk.bf16.mxu0 %vm675_vm3, %v7889_v41  ;;  %v8605_v56 = vld [vmem:[#allocation8_spill] sm:$0xff]  ;;  %v2270_v46 = vrot.slane %v2268_v43, 5  ;;  %v3917_v19 = vsel %vm6703_vm4, %v7970_v8, %v7899_v17  ;;  %v4416_v12 = vrot.slane %v7782_v2, 5  ;;  %v8038_v62 = vrot.slane %v3952_v50, 5  ;;  %v5541_v8 = vld [vmem:[%s6677_s11 + $0x90] sm:$0xe] }
 0x118   : > { %5860 = vmatprep.mubr.msk.bf16.mxu1 %vm675_vm3, %v6420_v6  ;;  %v2287_v41 = vsel %vm6703_vm4, %v8605_v56, %v8604_v16  ;;  %v8012_v20 = vsel %vm6929_vm7, %v5555_v22, %v4406_v44  ;;  %v4408_v31 = vrot.slane %v4406_v44, 4  ;;  %v3935_v6 = vor.u32 %v7981_v52, %v7979_v4  ;;  %v8044_v52 = vld [vmem:[%s6677_s11 + $0xc8] sm:$0x1]  ;;  %v8608_v16 = vld [vmem:[#allocation5_spill] sm:$0xff] }
 0x119   : > { %v3958_v22 = vrot.slane %v3956_v18, 4  ;;  %v2271_v17 = vor.u32 %v2270_v46, %v2267_v51  ;;  %v3940_v23 = vrot.slane %v3938_v49, 5  ;;  %v3949_v44 = vor.u32 %v3948_v63, %v3945_v38  ;;  %v8609_v51 = vld [vmem:[#allocation6_spill] sm:$0xff] }
 0x11a   : > { %v8034_v42 = vsel %vm6929_vm7, %v4408_v31, %v4409_v30  ;;  %v8048_v59 = vsel %vm6929_vm7, %v5556_v37, %v4413_v47  ;;  %v4415_v30 = vrot.slane %v4413_v47, 4  ;;  %v3967_v2 = vshrl.u32 %v5495_v29, 16 }
 0x11b   : > { %v5572_v33 = vcombine.low %v8012_v20, %v8034_v42  ;;  %v3970_v50 = vshll.u32 %v5495_v29, 16  ;;  %v3976_v61 = vshll.u32 %v8030_v55, 16  ;;  %v2272_v18 = vrot.slane %v2271_v17, 4  ;;  %v6423_v29 = vld [vmem:[%s6677_s11 + $0x30] sm:$0xff]  }
 0x11c   : > { %v3980_v49 = vshrl.u32 %v8030_v55, 16  ;;  %v8059_v38 = vsel %vm6929_vm7, %v4415_v30, %v4416_v12  ;;  %v5557_v63 = vrot.slane %v5541_v8, 9  ;;  %v3959_v56 = vor.u32 %v3958_v22, %v8038_v62 }
 0x11d   : > { %v3962_v31 = vshll.u32 %v8044_v52, 16  ;;  %v5573_v37 = vcombine.low %v8048_v59, %v8059_v38  ;;  %v5511_v46 = vcombine.low %v3907_v9, %v3917_v19  ;;  %v3926_v28 = vrot.slane %v3925_v11, 4  ;;  %v5542_v11 = vld [vmem:[%s6677_s11 + $0x9c] sm:$0xe] }
 0x11e   : > { %6013 = vmatmul.mubr.msk.bf16.gmra.mrb[16].mxu0 %vm675_vm3, %v7891_v5  ;;  %v8607_v5 = vld [vmem:[#allocation18_spill] sm:$0xff]  ;;  %v3936_v47 = vrot.slane %v3935_v6, 4  ;;  %v3950_v12 = vrot.slane %v3949_v44, 4  ;;  %v4423_v8 = vrot.slane %v7791_v3, 5  ;;  %v3969_v30 = vrot.slane %v3967_v2, 4  ;;  %v6424_v19 = vld [vmem:[%s6677_s11 + $0x3c] sm:$0xff]  }
 0x11f   : > { %5861 = vmatmul.mubr.msk.bf16.vlgmr.msra.gmra.mrb[0].mxu1 %vm675_vm3, %v6421_v1  ;;  %6016 = vmatprep.mubr.msk.bf16.mxu0 %vm675_vm3, %v7893_v7  ;;  %v4420_v43 = vrot.slane %v8607_v5, 5  ;;  %v2277_v7 = vsel %vm6703_vm4, %v2272_v18, %v8609_v51  ;;  %v3972_v18 = vrot.slane %v3970_v50, 5  ;;  %v8082_v5 = vrot.slane %v3976_v61, 5 }
 0x120   : > { %6063 = vmatpush3.bf16.msra.mxu1 %v8608_v16  ;;  %5864 = vmatprep.mubr.msk.bf16.mxu1 %vm675_vm3, %v6422_v21  ;;  %v8071_v1 = vcombine.low %v2277_v7, %v2287_v41  ;;  %v8075_v21 = vld [vmem:[%s6677_s11 + $0xd4] sm:$0x1]  ;;  %v3982_v9 = vrot.slane %v3980_v49, 4  ;;  %v3960_v41 = vrot.slane %v3959_v56, 4  ;;  %v3964_v6 = vrot.slane %v3962_v31, 5 }
 0x121   : > { %v8079_v22 = vsel %vm6929_vm7, %v5557_v63, %v4420_v43  ;;  %v4422_v17 = vrot.slane %v4420_v43, 4  ;;  %v3931_v63 = vsel %vm6703_vm4, %v3926_v28, %v7979_v4  ;;  %v3941_v2 = vsel %vm6703_vm4, %v3936_v47, %v3940_v23  ;;  %v6474_v16 = vld [vmem:[%s6677_s11 + $0x1c] sm:$0xf]  ;;  %v5543_v28 = vld [vmem:[%s6677_s11 + $0xa8] sm:$0xe] }
 0x122   : > { %v3986_v50 = vshll.u32 %v8075_v21, 16  ;;  %v5558_v61 = vrot.slane %v5542_v11, 9  ;;  %v4427_v49 = vrot.slane %v7779_v25, 5  ;;  %v3955_v4 = vsel %vm6703_vm4, %v3950_v12, %v8038_v62  ;;  %v5531_v62 = vld [vmem:[%s6677_s11 + $0x18] sm:$0xe]  ;;  %v6425_v47 = vld [vmem:[%s6677_s11 + $0x48] sm:$0xff]  }
 0x123   : > { %v8088_v44 = vsel %vm6929_vm7, %v4422_v17, %v4423_v8  ;;  %v3983_v43 = vor.u32 %v3982_v9, %v8082_v5  ;;  %v4430_v23 = vrot.slane %v7824_v57, 5  ;;  %v3965_v25 = vsel %vm6703_vm4, %v3960_v41, %v3964_v6  ;;  %v6475_v11 = vld [vmem:[%s6677_s11 + $0x20] sm:$0x1] }
 0x124   : > { %v5574_v3 = vcombine.low %v8079_v22, %v8088_v44  ;;  %v4350_v56 = vrot.slane %v6474_v16, 5  ;;  %v8114_v31 = vsel %vm6929_vm7, %v5558_v61, %v4427_v49  ;;  %v4429_v51 = vrot.slane %v4427_v49, 4  ;;  %v5544_v49 = vld [vmem:[%s6677_s11 + $0xb4] sm:$0xe] }
 0x125   : > { %v5512_v7 = vcombine.low %v3931_v63, %v3941_v2  ;;  %v3984_v17 = vrot.slane %v3983_v43, 4  ;;  %v5559_v41 = vrot.slane %v5543_v28, 9  ;;  %v4434_v6 = vrot.slane %v7827_v34, 5  ;;  %v5532_v2 = vld [vmem:[%s6677_s11 + $0x24] sm:$0xe] }
 0x126   : > { %6017 = vmatmul.mubr.msk.bf16.gmra.mrb[20].mxu0 %vm675_vm3, %v7926_v24  ;;  %v3973_v24 = vor.u32 %v3972_v18, %v3969_v30  ;;  %v8119_v57 = vsel %vm6929_vm7, %v4429_v51, %v4430_v23  ;;  %v6426_v30 = vld [vmem:[%s6677_s11 + $0x54] sm:$0xff]   ;;  %v5547_v18 = vrot.slane %v5531_v62, 9  ;;  %v4352_v9 = vrot.slane %v4350_v56, 4  ;;  %v6478_v28 = vld [vmem:[%s6677_s11 + $0x2c] sm:$0x1] }
 0x127   : > { %5865 = vmatmul.mubr.msk.bf16.gmra.mrb[4].mxu1 %vm675_vm3, %v6423_v29  ;;  %6020 = vmatprep.mubr.msk.bf16.mxu0 %vm675_vm3, %v5511_v46  ;;  %v3988_v46 = vrot.slane %v3986_v50, 5  ;;  %v5513_v29 = vcombine.low %v3955_v4, %v3965_v25  ;;  %v5575_v8 = vcombine.low %v8114_v31, %v8119_v57  ;;  %v4437_v63 = vrot.slane %v7837_v48, 5  ;;  %v6476_v50 = vld [vmem:[%s6677_s11 + $0x28] sm:$0xf]  ;;  %v5533_v25 = vld [vmem:[%s6677_s11 + $0x30] sm:$0xe] }
 0x128   : > { %5868 = vmatprep.mubr.msk.bf16.mxu1 %vm675_vm3, %v6424_v19  ;;  %v3974_v12 = vrot.slane %v3973_v24, 4  ;;  %v4353_v19 = vrot.slane %v6475_v11, 5  ;;  %v4357_v61 = vrot.slane %v6476_v50, 5  ;;  %v8142_v48 = vsel %vm6929_vm7, %v5559_v41, %v4434_v6  ;;  %v6428_v11 = vld [vmem:[%s6677_s11 + $0x6c] sm:$0xff]   ;;  %v8610_v41 = vld [vmem:[#allocation9_spill] sm:$0xff] }
 0x129   : > { %v3989_v34 = vsel %vm6703_vm4, %v3984_v17, %v3988_v46  ;;  %v4436_v24 = vrot.slane %v4434_v6, 4  ;;  %v4351_v43 = vsel %vm6929_vm7, %v5547_v18, %v4350_v56  ;;  %v5548_v51 = vrot.slane %v5532_v2, 9  ;;  %v5545_v50 = vld [vmem:[%s6677_s11 + $0xc0] sm:$0xe]  ;;  %v6492_v31 = vld [vmem:[%s6677_s11 + $0xc8] sm:$0x1] }
 0x12a   : > { %v3979_v4 = vsel %vm6703_vm4, %v3974_v12, %v8082_v5  ;;  %v4354_v23 = vsel %vm6929_vm7, %v4352_v9, %v4353_v19  ;;  %v6477_v5 = vld [vmem:[%s6677_s11 + $0x34] sm:$0xf]  ;;  %v6427_v12 = vld [vmem:[%s6677_s11 + $0x60] sm:$0xff]   ;;  %v5549_v18 = vrot.slane %v5533_v25, 9  ;;  %v4444_v9 = vrot.slane %v7951_v35, 5 }
 0x12b   : > { %v4364_v16 = vrot.slane %v6477_v5, 5  ;;  %v8153_v62 = vsel %vm6929_vm7, %v4436_v24, %v4437_v63  ;;  %v5514_v46 = vcombine.low %v3979_v4, %v3989_v34  ;;  %v5564_v17 = vcombine.low %v4351_v43, %v4354_v23  ;;  %v5534_v24 = vld [vmem:[%s6677_s11 + $0x3c] sm:$0xe] }
 0x12c   : > { %v5576_v56 = vcombine.low %v8142_v48, %v8153_v62  ;;  %v4367_v6 = vrot.slane %v8610_v41, 5  ;;  %v4358_v35 = vsel %vm6929_vm7, %v5548_v51, %v4357_v61  ;;  %v5561_v5 = vrot.slane %v5545_v50, 9 }
 0x12d   : > { %v4366_v19 = vrot.slane %v4364_v16, 4  ;;  %v4365_v23 = vsel %vm6929_vm7, %v5549_v18, %v4364_v16  ;;  %v4451_v51 = vrot.slane %v8044_v52, 5  ;;  %v2428_v57 = vshll.u32 %v6492_v31, 16 }
 0x12e   : > { %6021 = vmatmul.mubr.msk.bf16.gmra.mrb[24].mxu0 %vm675_vm3, %v5512_v7  ;;  %v5560_v7 = vrot.slane %v5544_v49, 9 }
 0x12f   : > { %5869 = vmatmul.mubr.msk.bf16.gmra.mrb[8].mxu1 %vm675_vm3, %v6425_v47  ;;  %6024 = vmatprep.mubr.msk.bf16.mxu0 %vm675_vm3, %v5513_v29  ;;  %v4360_v47 = vrot.slane %v6478_v28, 5  ;;  %v4441_v29 = vrot.slane %v7902_v39, 5  ;;  %v8611_v39 = vld [vmem:[#allocation10_spill] sm:$0xff]  ;;  %v4368_v25 = vsel %vm6929_vm7, %v4366_v19, %v4367_v6  ;;  %v5550_v28 = vrot.slane %v5534_v24, 9 }
 0x130   : > { %5872 = vmatprep.mubr.msk.bf16.mxu1 %vm675_vm3, %v6426_v30  ;;  %v4359_v30 = vrot.slane %v4357_v61, 4  ;;  %v4371_v49 = vrot.slane %v8611_v39, 5  ;;  %v4448_v61 = vrot.slane %v7954_v58, 5  ;;  %v6479_v39 = vld [vmem:[%s6677_s11 + $0x70] sm:$0xf]  ;;  %v4455_v24 = vrot.slane %v8030_v55, 5 }
 0x131   : > { %v8165_v63 = vsel %vm6929_vm7, %v5560_v7, %v4441_v29  ;;  %v4443_v2 = vrot.slane %v4441_v29, 4  ;;  %v5263_v7 = vld [vmem:[%s6677_s11 + $0x6c] sm:$0xf]  ;;  %v8612_v29 = vld [vmem:[#allocation11_spill] sm:$0xff] }
 0x132   : > { %v4361_v34 = vsel %vm6929_vm7, %v4359_v30, %v4360_v47  ;;  %v4373_v47 = vrot.slane %v4371_v49, 4  ;;  %v6429_v30 = vld [vmem:[%s6677_s11 + $0x78] sm:$0xff]   ;;  %v8196_v16 = vsel %vm6929_vm7, %v5561_v5, %v4448_v61  ;;  %v4450_v18 = vrot.slane %v4448_v61, 4 }
 0x133   : > { %v8172_v4 = vsel %vm6929_vm7, %v4443_v2, %v4444_v9  ;;  %v5566_v9 = vcombine.low %v4365_v23, %v4368_v25  ;;  %v2241_v19 = vshrl.u32 %v5263_v7, 16  ;;  %v2244_v41 = vshll.u32 %v5263_v7, 16 }
 0x134   : > { %v5577_v43 = vcombine.low %v8165_v63, %v8172_v4  ;;  %v8201_v58 = vsel %vm6929_vm7, %v4450_v18, %v4451_v51  ;;  %v4372_v6 = vsel %vm6929_vm7, %v5550_v28, %v4371_v49  ;;  %v4458_v49 = vrot.slane %v8075_v21, 5  ;;  %v6431_v51 = vld [vmem:[%s6677_s11 + $0x90] sm:$0xff]   ;;  %v6432_v21 = vld [vmem:[%s6677_s11 + $0x9c] sm:$0xff]  }
 0x135   : > { %v5578_v50 = vcombine.low %v8196_v16, %v8201_v58  ;;  %v2243_v23 = vrot.slane %v2241_v19, 4  ;;  %v2246_v25 = vrot.slane %v2244_v41, 5  ;;  %v4457_v7 = vrot.slane %v4455_v24, 4 }
 0x136   : > { %6025 = vmatmul.mubr.msk.bf16.gmra.mrb[28].mxu0 %vm675_vm3, %v5514_v46  ;;  %v5565_v46 = vcombine.low %v4358_v35, %v4361_v34  ;;  %v2250_v35 = vshll.u32 %v6479_v39, 16  ;;  %v2254_v34 = vshrl.u32 %v6479_v39, 16 }
 0x137   : > { %5873 = vmatmul.mubr.msk.bf16.gmra.mrb[12].mxu1 %vm675_vm3, %v6427_v12  ;;  %6030 = vmatprep.mubr.msk.bf16.mxu0 %vm675_vm3, %v5564_v17  ;;  %v4374_v12 = vrot.slane %v8612_v29, 5  ;;  %v5546_v17 = vld [vmem:[%s6677_s11 + $0xcc] sm:$0xe]  ;;  %v8223_v55 = vsel %vm6929_vm7, %v4457_v7, %v4458_v49 }
 0x138   : > { %5876 = vmatprep.mubr.msk.bf16.mxu1 %vm675_vm3, %v6428_v11  ;;  %v6430_v11 = vld [vmem:[%s6677_s11 + $0x84] sm:$0xff]   ;;  %v5562_v52 = vrot.slane %v5546_v17, 9  ;;  %v2256_v28 = vrot.slane %v2254_v34, 4  ;;  %v6480_v17 = vld [vmem:[%s6677_s11 + $0x74] sm:$0x1] }
 0x139   : > { %v4375_v2 = vsel %vm6929_vm7, %v4373_v47, %v4374_v12  ;;  %v5269_v47 = vld [vmem:[%s6677_s11 + $0x84] sm:$0xf]  ;;  %v2247_v12 = vor.u32 %v2246_v25, %v2243_v23  ;;  %v6434_v34 = vld [vmem:[%s6677_s11 + $0xb4] sm:$0xff]  }
 0x13a   : > { %v8218_v5 = vsel %vm6929_vm7, %v5562_v52, %v4455_v24  ;;  %v5567_v61 = vcombine.low %v4372_v6, %v4375_v2  ;;  %v2292_v18 = vshll.u32 %v5269_v47, 16  ;;  %v5272_v6 = vld [vmem:[%s6677_s11 + $0x90] sm:$0xf]  ;;  %v6433_v2 = vld [vmem:[%s6677_s11 + $0xa8] sm:$0xff]  }
 0x13b   : > { %v5579_v29 = vcombine.low %v8218_v5, %v8223_v55  ;;  %v2248_v52 = vrot.slane %v2247_v12, 4  ;;  %v2313_v23 = vshrl.u32 %v5272_v6, 16  ;;  %v2316_v25 = vshll.u32 %v5272_v6, 16 }
 0x13c   : > { %v2346_v12 = vshll.u32 %v6483_v60, 16 }
 0x13d   : > { %v2318_v14 = vrot.slane %v2316_v25, 5  ;;  %v6486_v25 = vld [vmem:[%s6677_s11 + $0xa4] sm:$0x1] }
 0x13e   : > { %6031 = vmatmul.mubr.msk.bf16.vlgmr.msra.gmra.mrb[0].mxu0 %vm675_vm3, %v5565_v46  ;;  %v2252_v46 = vrot.slane %v2250_v35, 5  ;;  %v5275_v35 = vld [vmem:[%s6677_s11 + $0x9c] sm:$0xf]  ;;  %v8265_v6 = vrot.slane %v2346_v12, 5 }
 0x13f   : > { %5877 = vmatmul.mubr.msk.bf16.gmra.mrb[16].mxu1 %vm675_vm3, %v6429_v30  ;;  %6034 = vmatprep.mubr.msk.bf16.mxu0 %vm675_vm3, %v5566_v9  ;;  %v2260_v30 = vshll.u32 %v6480_v17, 16  ;;  %v2289_v9 = vshrl.u32 %v5269_v47, 16  ;;  %v2340_v47 = vshll.u32 %v5275_v35, 16  ;;  %v6484_v17 = vld [vmem:[%s6677_s11 + $0x8c] sm:$0x1] }
 0x140   : > { %5880 = vmatprep.mubr.msk.bf16.mxu1 %vm675_vm3, %v6430_v11  ;;  %v2257_v13 = vor.u32 %v2256_v28, %v2252_v46  ;;  %v6481_v11 = vld [vmem:[%s6677_s11 + $0x88] sm:$0xf]  ;;  %v2253_v7 = vsel %vm6703_vm4, %v2248_v52, %v2252_v46 }
 0x141   : > { %v2298_v19 = vshll.u32 %v6481_v11, 16  ;;  %v2302_v41 = vshrl.u32 %v6481_v11, 16  ;;  %v2262_v0 = vrot.slane %v2260_v30, 5  ;;  %v2291_v36 = vrot.slane %v2289_v9, 4 }
 0x142   : > { %v2258_v39 = vrot.slane %v2257_v13, 4  ;;  %v2308_v30 = vshll.u32 %v6484_v17, 16  ;;  %v2315_v9 = vrot.slane %v2313_v23, 4  ;;  %v2342_v11 = vrot.slane %v2340_v47, 5 }
 0x143   : > { %v8242_v24 = vrot.slane %v2298_v19, 5  ;;  %v2304_v49 = vrot.slane %v2302_v41, 4  ;;  %v6435_v19 = vld [vmem:[%s6677_s11 + $0xc0] sm:$0xff]  }
 0x144   : > { %v2263_v46 = vsel %vm6703_vm4, %v2258_v39, %v2262_v0  ;;  %v5278_v39 = vld [vmem:[%s6677_s11 + $0xa8] sm:$0xf] }
 0x145   : > { %v2305_v13 = vor.u32 %v2304_v49, %v8242_v24  ;;  %v5296_v41 = vcombine.low %v2253_v7, %v2263_v46  ;;  %v2356_v7 = vshll.u32 %v6486_v25, 16  ;;  %v2364_v45 = vshll.u32 %v5278_v39, 16 }
 0x146   : > { %6035 = vmatmul.mubr.msk.bf16.gmra.mrb[4].mxu0 %vm675_vm3, %v5567_v61  ;;  %v6482_v61 = vld [vmem:[%s6677_s11 + $0x94] sm:$0xf] }
 0x147   : > { %5881 = vmatmul.mubr.msk.bf16.gmra.mrb[20].mxu1 %vm675_vm3, %v6431_v51  ;;  %6038 = vmatprep.mubr.msk.bf16.mxu0 %vm675_vm3, %v5568_v10  ;;  %v2294_v10 = vrot.slane %v2292_v18, 5  ;;  %v2322_v51 = vshll.u32 %v6482_v61, 16  ;;  %v2326_v28 = vshrl.u32 %v6482_v61, 16  ;;  %v2306_v0 = vrot.slane %v2305_v13, 4 }
 0x148   : > { %5884 = vmatprep.mubr.msk.bf16.mxu1 %vm675_vm3, %v6432_v21  ;;  %v2337_v21 = vshrl.u32 %v5275_v35, 16  ;;  %v6485_v35 = vld [vmem:[%s6677_s11 + $0x98] sm:$0x1]  ;;  %v2361_v61 = vshrl.u32 %v5278_v39, 16  ;;  %v5284_v39 = vld [vmem:[%s6677_s11 + $0xc0] sm:$0xf] }
 0x149   : > { %v2295_v15 = vor.u32 %v2294_v10, %v2291_v36  ;;  %v8262_v26 = vrot.slane %v2322_v51, 5  ;;  %v2310_v36 = vrot.slane %v2308_v30, 5  ;;  %v2319_v10 = vor.u32 %v2318_v14, %v2315_v9  ;;  %v5281_v51 = vld [vmem:[%s6677_s11 + $0xb4] sm:$0xf] }
 0x14a   : > { %v2339_v18 = vrot.slane %v2337_v21, 4  ;;  %v2374_v21 = vshrl.u32 %v6487_v27, 16  ;;  %v2385_v20 = vshrl.u32 %v5281_v51, 16  ;;  %v2388_v42 = vshll.u32 %v5281_v51, 16 }
 0x14b   : > { %v2296_v52 = vrot.slane %v2295_v15, 4  ;;  %v2311_v46 = vsel %vm6703_vm4, %v2306_v0, %v2310_v36  ;;  %v2320_v15 = vrot.slane %v2319_v10, 4  ;;  %v2358_v30 = vrot.slane %v2356_v7, 5 }
 0x14c   : > { %v2343_v23 = vor.u32 %v2342_v11, %v2339_v18  ;;  %v2363_v9 = vrot.slane %v2361_v61, 4  ;;  %v2376_v11 = vrot.slane %v2374_v21, 4  ;;  %v6491_v61 = vld [vmem:[%s6677_s11 + $0xbc] sm:$0x1] }
 0x14d   : > { %v2301_v47 = vsel %vm6703_vm4, %v2296_v52, %v8242_v24  ;;  %v2325_v0 = vsel %vm6703_vm4, %v2320_v15, %v8262_v26  ;;  %v2404_v22 = vshll.u32 %v6491_v61, 16 }
 0x14e   : > { %6039 = vmatmul.mubr.msk.bf16.gmra.mrb[8].mxu0 %vm675_vm3, %v5569_v40  ;;  %v2350_v40 = vshrl.u32 %v6483_v60, 16  ;;  %v2344_v17 = vrot.slane %v2343_v23, 4  ;;  %v5298_v24 = vcombine.low %v2301_v47, %v2311_v46 }
 0x14f   : > { %5885 = vmatmul.mubr.msk.bf16.gmra.mrb[24].mxu1 %vm675_vm3, %v6433_v2  ;;  %6042 = vmatprep.mubr.msk.bf16.mxu0 %vm675_vm3, %v5570_v54  ;;  %v2328_v54 = vrot.slane %v2326_v28, 4 }
 0x150   : > { %5888 = vmatprep.mubr.msk.bf16.mxu1 %vm675_vm3, %v6434_v34  ;;  %v2352_v2 = vrot.slane %v2350_v40, 4  ;;  %v2332_v34 = vshll.u32 %v6485_v35, 16  ;;  %v2349_v10 = vsel %vm6703_vm4, %v2344_v17, %v8265_v6  ;;  %v2430_v17 = vrot.slane %v2428_v57, 5 }
 0x151   : > { %v2329_v49 = vor.u32 %v2328_v54, %v8262_v26  ;;  %v2366_v54 = vrot.slane %v2364_v45, 5  ;;  %v6489_v26 = vld [vmem:[%s6677_s11 + $0xb0] sm:$0x1] }
 0x152   : > { %v2353_v28 = vor.u32 %v2352_v2, %v8265_v6  ;;  %v2334_v60 = vrot.slane %v2332_v34, 5  ;;  %v2380_v35 = vshll.u32 %v6489_v26, 16  ;;  %v2409_v34 = vshrl.u32 %v5284_v39, 16 }
 0x153   : > { %v2330_v13 = vrot.slane %v2329_v49, 4  ;;  %v2367_v38 = vor.u32 %v2366_v54, %v2363_v9  ;;  %v2412_v6 = vshll.u32 %v5284_v39, 16  ;;  %v6490_v49 = vld [vmem:[%s6677_s11 + $0xc4] sm:$0xf] }
 0x154   : > { %v2354_v14 = vrot.slane %v2353_v28, 4  ;;  %v2418_v23 = vshll.u32 %v6490_v49, 16  ;;  %v2422_v25 = vshrl.u32 %v6490_v49, 16  ;;  %v2382_v45 = vrot.slane %v2380_v35, 5 }
 0x155   : > { %v2335_v36 = vsel %vm6703_vm4, %v2330_v13, %v2334_v60  ;;  %v2368_v51 = vrot.slane %v2367_v38, 4  ;;  %v2406_v60 = vrot.slane %v2404_v22, 5 }
 0x156   : > { %6043 = vmatmul.mubr.msk.bf16.gmra.mrb[12].mxu0 %vm675_vm3, %v5571_v53  ;;  %v2370_v53 = vshll.u32 %v6487_v27, 16  ;;  %v2359_v59 = vsel %vm6703_vm4, %v2354_v14, %v2358_v30  ;;  %v5299_v44 = vcombine.low %v2325_v0, %v2335_v36  ;;  %v2411_v27 = vrot.slane %v2409_v34, 4 }
 0x157   : > { %5889 = vmatmul.mubr.msk.bf16.gmra.mrb[28].mxu1 %vm675_vm3, %v6435_v19  ;;  %6046 = vmatprep.mubr.msk.bf16.mxu0 %vm675_vm3, %v5572_v33  ;;  %v6488_v33 = vld [vmem:[%s6677_s11 + $0xb8] sm:$0xf]  ;;  %v2387_v19 = vrot.slane %v2385_v20, 4  ;;  %v2420_v21 = vrot.slane %v2418_v23, 5  ;;  %v2424_v47 = vrot.slane %v2422_v25, 4  ;;  %s175_s11 = sand.u32 1, %s6555_s13  }
 0x158   : > { %5910 = vmatprep.mubr.msk.bf16.mxu1 %vm675_vm3, %v5296_v41  ;;  %v2394_v12 = vshll.u32 %v6488_v33, 16  ;;  %v2398_v40 = vshrl.u32 %v6488_v33, 16  ;;  %v2372_v18 = vrot.slane %v2370_v53, 5  ;;  %v2390_v41 = vrot.slane %v2388_v42, 5  ;;  %s5058_s18 = sshll.u32 %s175_s11, 8  ;;  %s8494_s15 = scalar_lea.sflag [#allocation3], %s175_s11 }
 0x159   : > { %v2414_v53 = vrot.slane %v2412_v6, 5  ;;  %s8381_s19 = scalar_lea.vmem [#allocation2], %s5058_s18 }
 0x15a   : > { %v2396_v52 = vrot.slane %v2394_v12, 5  ;;  %v2400_v2 = vrot.slane %v2398_v40, 4  ;;  %v2373_v20 = vsel %vm6703_vm4, %v2368_v51, %v2372_v18  ;;  %v2425_v12 = vor.u32 %v2424_v47, %v2420_v21  ;;  %s4970_s23 = sshll.u32 %s8381_s19, 4  ;;  %s8484_s23 = int_to_ptr.vmem [resolvable:$true] %s4970_s23 }
 0x15b   : > { %v2415_v33 = vor.u32 %v2414_v53, %v2411_v27  ;;  %s6493_s29 = scalar_lea.vmem %s8484_s23, 4096  ;;  %p6500_p1 = scmp.lt.s32.totalorder %s8484_s23, %s6498_s4 }
 0x15c   : > { %v2401_v7 = vor.u32 %v2400_v2, %v2396_v52  ;;  %v2426_v13 = vrot.slane %v2425_v12, 4  ;;  %v8372_v2 = vld [vmem:[%s8542_s2] ss:$0 sm:$0xff]  ;;  %p6494_p12 = scmp.ne.s32.totalorder %s8484_s23, %s6493_s29  ;;  %p6501_p2 = scmp.lt.s32.totalorder %s6499_s5, %s6493_s29 }
 0x15d   : > { %v2416_v40 = vrot.slane %v2415_v33, 4 }
 0x15e   : > { %6047 = vmatmul.mubr.msk.bf16.gmra.mrb[16].mxu0 %vm675_vm3, %v5573_v37  ;;  %v2377_v37 = vor.u32 %v2376_v11, %v2372_v18  ;;  %v2402_v15 = vrot.slane %v2401_v7, 4  ;;  %v2431_v9 = vsel %vm6703_vm4, %v2426_v13, %v2430_v17  ;;  %p6495_p13 = pnand %p6494_p12, %p6636_p4  ;;  %p6502_p3 = por %p6501_p2, %p6500_p1 }
 0x15f   : > { %5911 = vmatmul.mubr.msk.bf16.vlgmr.msra.gmra.mrb[16].mxu1 %vm675_vm3, %v8071_v1  ;;  %6050 = vmatprep.mubr.msk.bf16.mxu0 %vm675_vm3, %v5574_v3  ;;  %v2391_v1 = vor.u32 %v2390_v41, %v2387_v19  ;;  %v5300_v3 = vcombine.low %v2349_v10, %v2359_v59  ;;  %v2421_v30 = vsel %vm6703_vm4, %v2416_v40, %v2420_v21 }
 0x160   : > { %5914 = vmatprep.mubr.msk.bf16.mxu1 %vm675_vm3, %v5298_v24  ;;  %v2378_v28 = vrot.slane %v2377_v37, 4  ;;  %v2407_v48 = vsel %vm6703_vm4, %v2402_v15, %v2406_v60  ;;  %v5303_v14 = vcombine.low %v2421_v30, %v2431_v9  ;;  %p6496_p0 = pneg %p6495_p13 }
 0x161   : > { %v2392_v46 = vrot.slane %v2391_v1, 4 }
 0x162   : > { %v2383_v42 = vsel %vm6703_vm4, %v2378_v28, %v2382_v45  ;;  %p6503_p5 = pnand %p6502_p3, %p6496_p0 }
 0x163   : > { %v5301_v62 = vcombine.low %v2373_v20, %v2383_v42 }
 0x166   : > { %6051 = vmatmul.mubr.msk.bf16.gmra.mrb[20].mxu0 %vm675_vm3, %v5575_v8  ;;  %v2397_v8 = vsel %vm6703_vm4, %v2392_v46, %v2396_v52 }
 0x167   : > { %5915 = vmatmul.mubr.msk.bf16.gmra.mrb[20].mxu1 %vm675_vm3, %v5299_v44  ;;  %6054 = vmatprep.mubr.msk.bf16.mxu0 %vm675_vm3, %v5576_v56  ;;  %v5302_v56 = vcombine.low %v2397_v8, %v2407_v48 }
 0x168   : > { %5918 = vmatprep.mubr.msk.bf16.mxu1 %vm675_vm3, %v5300_v3 }
 0x16e   : > { %6055 = vmatmul.mubr.msk.bf16.gmra.mrb[24].mxu0 %vm675_vm3, %v5577_v43 }
 0x16f   : > { %5919 = vmatmul.mubr.msk.bf16.gmra.mrb[24].mxu1 %vm675_vm3, %v5301_v62  ;;  %6058 = vmatprep.mubr.msk.bf16.mxu0 %vm675_vm3, %v5578_v50 }
 0x170   : > { %5922 = vmatprep.mubr.msk.bf16.mxu1 %vm675_vm3, %v5302_v56 }
 0x176   : > { %6059 = vmatmul.mubr.msk.bf16.gmra.mrb[28].mxu0 %vm675_vm3, %v5579_v29 }
 0x177   : > { %5923 = vmatmul.mubr.msk.bf16.gmra.mrb[28].mxu1 %vm675_vm3, %v5303_v14 }
 0x1f2   : > { %v5862_v63 = vpop.f32.mrb[0].mxu1 }
 0x1f3   : > { %v1841_v4 = vpop.f32.mrb[1].mxu1 }
 0x1f4   : > { %v5863_v43 = vpop.f32.mrb[2].mxu1 }
 0x1f5   : > { %v1844_v16 = vpop.f32.mrb[3].mxu1 }
 0x1fa   : > { %v5866_v58 = vpop.f32.mrb[4].mxu1 }
 0x1fb   : > { %v1857_v50 = vpop.f32.mrb[5].mxu1 }
 0x1fc   : > { %v5867_v54 = vpop.f32.mrb[6].mxu1 }
 0x1fd   : > { %v1860_v18 = vpop.f32.mrb[7].mxu1 }
 0x202   : > { %v8353_v11 = vpop.f32.mrb[8].mxu1 }
 0x203   : > { %v8355_v32 = vpop.f32.mrb[9].mxu1 }
 0x204   : > { %v8357_v24 = vpop.f32.mrb[10].mxu1 }
 0x205   : > { %v8359_v5 = vpop.f32.mrb[11].mxu1 }
 0x20a   : > { %v8361_v55 = vpop.f32.mrb[12].mxu1 }
 0x20b   : > { %v8363_v29 = vpop.f32.mrb[13].mxu1 }
 0x20c   : > { %v8365_v19 = vpop.f32.mrb[14].mxu1 }
 0x20d   : > { %v8367_v41 = vpop.f32.mrb[15].mxu1 }
 0x211   : > { %v6032_v52 = vpop.f32.mrb[0].mxu0 }
 0x212   : > { %v6064_v39 = vadd.f32 %v6032_v52, %v5862_v63  ;;  %v4595_v0 = vpop.f32.mrb[1].mxu0 }
 0x213   : > { %v6065_v36 = vadd.f32 %v4595_v0, %v1841_v4  ;;  %v6033_v10 = vpop.f32.mrb[2].mxu0 }
 0x214   : > { %v4763_v59 = vadd.f32 %v6064_v39, %v8372_v2  ;;  %v6066_v38 = vadd.f32 %v6033_v10, %v5863_v43  ;;  %v4598_v37 = vpop.f32.mrb[3].mxu0 }
 0x215   : > { %v4761_v26 = vadd.f32 %v6065_v36, %v8372_v2  ;;  %v6067_v35 = vadd.f32 %v4598_v37, %v1844_v16 }
 0x216   : > { %vm4795_vm8 = vcmp.ge.f32.partialorder %v4763_v59, 0.0  ;;  %v4827_v34 = vmul.f32 0.2, %v4763_v59  ;;  %v4764_v6 = vadd.f32 %v6066_v38, %v8372_v2 }
 0x217   : > { %vm4793_vm9 = vcmp.ge.f32.partialorder %v4761_v26, 0.0  ;;  %v4825_v49 = vmul.f32 0.2, %v4761_v26  ;;  %v4762_v23 = vadd.f32 %v6067_v35, %v8372_v2 }
 0x218   : > { %v4859_v25 = vsel %vm4795_vm8, %v4763_v59, %v4827_v34  ;;  %vm4796_vm11 = vcmp.ge.f32.partialorder %v4764_v6, 0.0  ;;  %v4828_v1 = vmul.f32 0.2, %v4764_v6 }
 0x219   : > { %v4891_v7 = vmul.f32 1.4142135, %v4859_v25  ;;  %v4857_v61 = vsel %vm4793_vm9, %v4761_v26, %v4825_v49  ;;  %vm4794_vm12 = vcmp.ge.f32.partialorder %v4762_v23, 0.0  ;;  %v4826_v22 = vmul.f32 0.2, %v4762_v23  ;;  %v6036_v44 = vpop.f32.mrb[4].mxu0 }
 0x21a   : > { %v4889_v3 = vmul.f32 1.4142135, %v4857_v61  ;;  %v4860_v51 = vsel %vm4796_vm11, %v4764_v6, %v4828_v1  ;;  %v6068_v28 = vadd.f32 %v6036_v44, %v5866_v58  ;;  %v4611_v45 = vpop.f32.mrb[5].mxu0 }
 0x21b   : > { %4924 = vst.msk [vmem:[%s8381_s19 + $0x10] sm:$0xff] %vm4921_vm10, %v4891_v7  ;;  %v4892_v27 = vmul.f32 1.4142135, %v4860_v51  ;;  %v4858_v53 = vsel %vm4794_vm12, %v4762_v23, %v4826_v22  ;;  %v6069_v21 = vadd.f32 %v4611_v45, %v1857_v50  ;;  %v6037_v47 = vpop.f32.mrb[6].mxu0 }
 0x21c   : > { %4922 = vst.msk [vmem:[%s8381_s19] sm:$0xff] %vm4921_vm10, %v4889_v3  ;;  %v4890_v46 = vmul.f32 1.4142135, %v4858_v53  ;;  %v4767_v15 = vadd.f32 %v6068_v28, %v8372_v2  ;;  %v6070_v60 = vadd.f32 %v6037_v47, %v5867_v54  ;;  %v4614_v20 = vpop.f32.mrb[7].mxu0 }
 0x21d   : > { %4925 = vst.msk [vmem:[%s8381_s19 + $0x18] sm:$0xff] %vm4921_vm10, %v4892_v27  ;;  %v4765_v42 = vadd.f32 %v6069_v21, %v8372_v2  ;;  %v6071_v33 = vadd.f32 %v4614_v20, %v1860_v18 }
 0x21e   : > { %4923 = vst.msk [vmem:[%s8381_s19 + $0x8] sm:$0xff] %vm4921_vm10, %v4890_v46  ;;  %vm4799_vm13 = vcmp.ge.f32.partialorder %v4767_v15, 0.0  ;;  %v4831_v12 = vmul.f32 0.2, %v4767_v15  ;;  %v4768_v31 = vadd.f32 %v6070_v60, %v8372_v2 }
 0x21f   : > { %vm4797_vm14 = vcmp.ge.f32.partialorder %v4765_v42, 0.0  ;;  %v4829_v57 = vmul.f32 0.2, %v4765_v42  ;;  %v4766_v8 = vadd.f32 %v6071_v33, %v8372_v2 }
 0x220   : > { %v4863_v48 = vsel %vm4799_vm13, %v4767_v15, %v4831_v12  ;;  %vm4800_vm15 = vcmp.ge.f32.partialorder %v4768_v31, 0.0  ;;  %v4832_v62 = vmul.f32 0.2, %v4768_v31 }
 0x221   : > { %v4895_v56 = vmul.f32 1.4142135, %v4863_v48  ;;  %v4861_v40 = vsel %vm4797_vm14, %v4765_v42, %v4829_v57  ;;  %vm4798_vm0 = vcmp.ge.f32.partialorder %v4766_v8, 0.0  ;;  %v4830_v13 = vmul.f32 0.2, %v4766_v8  ;;  %v6040_v17 = vpop.f32.mrb[8].mxu0 }
 0x222   : > { %v4893_v30 = vmul.f32 1.4142135, %v4861_v40  ;;  %v4864_v9 = vsel %vm4800_vm15, %v4768_v31, %v4832_v62  ;;  %v6072_v14 = vadd.f32 %v6040_v17, %v8353_v11  ;;  %v4627_v63 = vpop.f32.mrb[9].mxu0 }
 0x223   : > { %4928 = vst.msk [vmem:[%s8381_s19 + $0x30] sm:$0xff] %vm4921_vm10, %v4895_v56  ;;  %v4896_v4 = vmul.f32 1.4142135, %v4864_v9  ;;  %v4862_v43 = vsel %vm4798_vm0, %v4766_v8, %v4830_v13  ;;  %v6073_v16 = vadd.f32 %v4627_v63, %v8355_v32  ;;  %v6041_v58 = vpop.f32.mrb[10].mxu0 }
 0x224   : > { %4926 = vst.msk [vmem:[%s8381_s19 + $0x20] sm:$0xff] %vm4921_vm10, %v4893_v30  ;;  %v4894_v50 = vmul.f32 1.4142135, %v4862_v43  ;;  %v4771_v54 = vadd.f32 %v6072_v14, %v8372_v2  ;;  %v6074_v18 = vadd.f32 %v6041_v58, %v8357_v24  ;;  %v4630_v52 = vpop.f32.mrb[11].mxu0 }
 0x225   : > { %4929 = vst.msk [vmem:[%s8381_s19 + $0x38] sm:$0xff] %vm4921_vm10, %v4896_v4  ;;  %v4769_v11 = vadd.f32 %v6073_v16, %v8372_v2  ;;  %v6075_v39 = vadd.f32 %v4630_v52, %v8359_v5 }
 0x226   : > { %4927 = vst.msk [vmem:[%s8381_s19 + $0x28] sm:$0xff] %vm4921_vm10, %v4894_v50  ;;  %vm4803_vm1 = vcmp.ge.f32.partialorder %v4771_v54, 0.0  ;;  %v4835_v0 = vmul.f32 0.2, %v4771_v54  ;;  %v4772_v32 = vadd.f32 %v6074_v18, %v8372_v2 }
 0x227   : > { %vm4801_vm2 = vcmp.ge.f32.partialorder %v4769_v11, 0.0  ;;  %v4833_v36 = vmul.f32 0.2, %v4769_v11  ;;  %v4770_v10 = vadd.f32 %v6075_v39, %v8372_v2 }
 0x228   : > { %v4867_v59 = vsel %vm4803_vm1, %v4771_v54, %v4835_v0  ;;  %vm4804_vm3 = vcmp.ge.f32.partialorder %v4772_v32, 0.0  ;;  %v4836_v24 = vmul.f32 0.2, %v4772_v32 }
 0x229   : > { %v4899_v38 = vmul.f32 1.4142135, %v4867_v59  ;;  %v4865_v37 = vsel %vm4801_vm2, %v4769_v11, %v4833_v36  ;;  %vm4802_vm4 = vcmp.ge.f32.partialorder %v4770_v10, 0.0  ;;  %v4834_v26 = vmul.f32 0.2, %v4770_v10  ;;  %v6044_v5 = vpop.f32.mrb[12].mxu0 }
 0x22a   : > { %v4897_v35 = vmul.f32 1.4142135, %v4865_v37  ;;  %v4868_v34 = vsel %vm4804_vm3, %v4772_v32, %v4836_v24  ;;  %v6076_v6 = vadd.f32 %v6044_v5, %v8361_v55  ;;  %v4643_v49 = vpop.f32.mrb[13].mxu0 }
 0x22b   : > { %4932 = vst.msk [vmem:[%s8381_s19 + $0x50] sm:$0xff] %vm4921_vm10, %v4899_v38  ;;  %v4900_v23 = vmul.f32 1.4142135, %v4868_v34  ;;  %v4866_v25 = vsel %vm4802_vm4, %v4770_v10, %v4834_v26  ;;  %v6077_v1 = vadd.f32 %v4643_v49, %v8363_v29  ;;  %v6045_v7 = vpop.f32.mrb[14].mxu0 }
 0x22c   : > { %4930 = vst.msk [vmem:[%s8381_s19 + $0x40] sm:$0xff] %vm4921_vm10, %v4897_v35  ;;  %v4898_v61 = vmul.f32 1.4142135, %v4866_v25  ;;  %v4775_v22 = vadd.f32 %v6076_v6, %v8372_v2  ;;  %v6078_v44 = vadd.f32 %v6045_v7, %v8365_v19  ;;  %v4646_v3 = vpop.f32.mrb[15].mxu0 }
 0x22d   : > { %4933 = vst.msk [vmem:[%s8381_s19 + $0x58] sm:$0xff] %vm4921_vm10, %v4900_v23  ;;  %v4773_v55 = vadd.f32 %v6077_v1, %v8372_v2  ;;  %v6079_v51 = vadd.f32 %v4646_v3, %v8367_v41 }
 0x22e   : > { %4931 = vst.msk [vmem:[%s8381_s19 + $0x48] sm:$0xff] %vm4921_vm10, %v4898_v61  ;;  %vm4807_vm5 = vcmp.ge.f32.partialorder %v4775_v22, 0.0  ;;  %v4839_v28 = vmul.f32 0.2, %v4775_v22  ;;  %v4776_v29 = vadd.f32 %v6078_v44, %v8372_v2 }
 0x22f   : > { %vm4805_vm6 = vcmp.ge.f32.partialorder %v4773_v55, 0.0  ;;  %v4837_v45 = vmul.f32 0.2, %v4773_v55  ;;  %v4774_v27 = vadd.f32 %v6079_v51, %v8372_v2 }
 0x230   : > { %v4871_v53 = vsel %vm4807_vm5, %v4775_v22, %v4839_v28  ;;  %vm4808_vm7 = vcmp.ge.f32.partialorder %v4776_v29, 0.0  ;;  %v4840_v19 = vmul.f32 0.2, %v4776_v29 }
 0x231   : > { %v4903_v21 = vmul.f32 1.4142135, %v4871_v53  ;;  %v4869_v47 = vsel %vm4805_vm6, %v4773_v55, %v4837_v45  ;;  %vm4806_vm8 = vcmp.ge.f32.partialorder %v4774_v27, 0.0  ;;  %v4838_v46 = vmul.f32 0.2, %v4774_v27  ;;  %v6048_v41 = vpop.f32.mrb[16].mxu0 }
 0x232   : > { %v4901_v15 = vmul.f32 1.4142135, %v4869_v47  ;;  %v4872_v60 = vsel %vm4808_vm7, %v4776_v29, %v4840_v19  ;;  %v5912_v20 = vpop.f32.mrb[16].mxu1  ;;  %v4659_v42 = vpop.f32.mrb[17].mxu0 }
 0x233   : > { %4936 = vst.msk [vmem:[%s8381_s19 + $0x70] sm:$0xff] %vm4921_vm10, %v4903_v21  ;;  %v4904_v33 = vmul.f32 1.4142135, %v4872_v60  ;;  %v4870_v12 = vsel %vm4806_vm8, %v4774_v27, %v4838_v46  ;;  %v6080_v31 = vadd.f32 %v6048_v41, %v5912_v20  ;;  %v2631_v57 = vpop.f32.mrb[17].mxu1  ;;  %v6049_v8 = vpop.f32.mrb[18].mxu0 }
 0x234   : > { %4934 = vst.msk [vmem:[%s8381_s19 + $0x60] sm:$0xff] %vm4921_vm10, %v4901_v15  ;;  %v4902_v48 = vmul.f32 1.4142135, %v4870_v12  ;;  %v6081_v62 = vadd.f32 %v4659_v42, %v2631_v57  ;;  %v5913_v56 = vpop.f32.mrb[18].mxu1  ;;  %v4662_v40 = vpop.f32.mrb[19].mxu0 }
 0x235   : > { %4937 = vst.msk [vmem:[%s8381_s19 + $0x78] sm:$0xff] %vm4921_vm10, %v4904_v33  ;;  %v4779_v13 = vadd.f32 %v6080_v31, %v8372_v2  ;;  %v6082_v17 = vadd.f32 %v6049_v8, %v5913_v56  ;;  %v2634_v30 = vpop.f32.mrb[19].mxu1 }
 0x236   : > { %4935 = vst.msk [vmem:[%s8381_s19 + $0x68] sm:$0xff] %vm4921_vm10, %v4902_v48  ;;  %v4777_v9 = vadd.f32 %v6081_v62, %v8372_v2  ;;  %v6083_v14 = vadd.f32 %v4662_v40, %v2634_v30 }
 0x237   : > { %vm4811_vm9 = vcmp.ge.f32.partialorder %v4779_v13, 0.0  ;;  %v4843_v63 = vmul.f32 0.2, %v4779_v13  ;;  %v4780_v4 = vadd.f32 %v6082_v17, %v8372_v2 }
 0x238   : > { %vm4809_vm11 = vcmp.ge.f32.partialorder %v4777_v9, 0.0  ;;  %v4841_v43 = vmul.f32 0.2, %v4777_v9  ;;  %v4778_v16 = vadd.f32 %v6083_v14, %v8372_v2 }
 0x239   : > { %v4875_v58 = vsel %vm4811_vm9, %v4779_v13, %v4843_v63  ;;  %vm4812_vm12 = vcmp.ge.f32.partialorder %v4780_v4, 0.0  ;;  %v4844_v50 = vmul.f32 0.2, %v4780_v4  ;;  %v6052_v54 = vpop.f32.mrb[20].mxu0 }
 0x23a   : > { %v4907_v18 = vmul.f32 1.4142135, %v4875_v58  ;;  %v4873_v52 = vsel %vm4809_vm11, %v4777_v9, %v4841_v43  ;;  %vm4810_vm13 = vcmp.ge.f32.partialorder %v4778_v16, 0.0  ;;  %v4842_v11 = vmul.f32 0.2, %v4778_v16  ;;  %v5916_v39 = vpop.f32.mrb[20].mxu1 }
 0x23b   : > { %v4905_v0 = vmul.f32 1.4142135, %v4873_v52  ;;  %v4876_v32 = vsel %vm4812_vm12, %v4780_v4, %v4844_v50  ;;  %v6084_v36 = vadd.f32 %v6052_v54, %v5916_v39  ;;  %v2647_v10 = vpop.f32.mrb[21].mxu1  ;;  %v4675_v59 = vpop.f32.mrb[21].mxu0 }
 0x23c   : > { %4940 = vst.msk [vmem:[%s8381_s19 + $0x90] sm:$0xff] %vm4921_vm10, %v4907_v18  ;;  %v4908_v24 = vmul.f32 1.4142135, %v4876_v32  ;;  %v4874_v38 = vsel %vm4810_vm13, %v4778_v16, %v4842_v11  ;;  %v6085_v37 = vadd.f32 %v4675_v59, %v2647_v10  ;;  %v5917_v26 = vpop.f32.mrb[22].mxu1  ;;  %v6053_v5 = vpop.f32.mrb[22].mxu0 }
 0x23d   : > { %4938 = vst.msk [vmem:[%s8381_s19 + $0x80] sm:$0xff] %vm4921_vm10, %v4905_v0  ;;  %v4906_v35 = vmul.f32 1.4142135, %v4874_v38  ;;  %v4783_v34 = vadd.f32 %v6084_v36, %v8372_v2  ;;  %v6086_v6 = vadd.f32 %v6053_v5, %v5917_v26  ;;  %v2650_v49 = vpop.f32.mrb[23].mxu1  ;;  %v4678_v23 = vpop.f32.mrb[23].mxu0 }
 0x23e   : > { %4941 = vst.msk [vmem:[%s8381_s19 + $0x98] sm:$0xff] %vm4921_vm10, %v4908_v24  ;;  %v4781_v25 = vadd.f32 %v6085_v37, %v8372_v2  ;;  %v6087_v1 = vadd.f32 %v4678_v23, %v2650_v49 }
 0x23f   : > { %4939 = vst.msk [vmem:[%s8381_s19 + $0x88] sm:$0xff] %vm4921_vm10, %v4906_v35  ;;  %vm4815_vm14 = vcmp.ge.f32.partialorder %v4783_v34, 0.0  ;;  %v4847_v7 = vmul.f32 0.2, %v4783_v34  ;;  %v4784_v61 = vadd.f32 %v6086_v6, %v8372_v2 }
 0x240   : > { %vm4813_vm15 = vcmp.ge.f32.partialorder %v4781_v25, 0.0  ;;  %v4845_v22 = vmul.f32 0.2, %v4781_v25  ;;  %v4782_v44 = vadd.f32 %v6087_v1, %v8372_v2 }
 0x241   : > { %v4879_v3 = vsel %vm4815_vm14, %v4783_v34, %v4847_v7  ;;  %vm4816_vm0 = vcmp.ge.f32.partialorder %v4784_v61, 0.0  ;;  %v4848_v55 = vmul.f32 0.2, %v4784_v61  ;;  %v6056_v51 = vpop.f32.mrb[24].mxu0 }
 0x242   : > { %v4911_v28 = vmul.f32 1.4142135, %v4879_v3  ;;  %v4877_v29 = vsel %vm4813_vm15, %v4781_v25, %v4845_v22  ;;  %vm4814_vm1 = vcmp.ge.f32.partialorder %v4782_v44, 0.0  ;;  %v4846_v45 = vmul.f32 0.2, %v4782_v44  ;;  %v5920_v27 = vpop.f32.mrb[24].mxu1 }
 0x243   : > { %v4909_v53 = vmul.f32 1.4142135, %v4877_v29  ;;  %v4880_v19 = vsel %vm4816_vm0, %v4784_v61, %v4848_v55  ;;  %v6088_v21 = vadd.f32 %v6056_v51, %v5920_v27  ;;  %v2663_v47 = vpop.f32.mrb[25].mxu1  ;;  %v4691_v46 = vpop.f32.mrb[25].mxu0 }
 0x244   : > { %4944 = vst.msk [vmem:[%s8381_s19 + $0xb0] sm:$0xff] %vm4921_vm10, %v4911_v28  ;;  %v4912_v41 = vmul.f32 1.4142135, %v4880_v19  ;;  %v4878_v15 = vsel %vm4814_vm1, %v4782_v44, %v4846_v45  ;;  %v6089_v60 = vadd.f32 %v4691_v46, %v2663_v47  ;;  %v5921_v20 = vpop.f32.mrb[26].mxu1  ;;  %v6057_v42 = vpop.f32.mrb[26].mxu0 }
 0x245   : > { %4942 = vst.msk [vmem:[%s8381_s19 + $0xa0] sm:$0xff] %vm4921_vm10, %v4909_v53  ;;  %v4910_v33 = vmul.f32 1.4142135, %v4878_v15  ;;  %v4787_v12 = vadd.f32 %v6088_v21, %v8372_v2  ;;  %v6090_v31 = vadd.f32 %v6057_v42, %v5921_v20  ;;  %v2666_v57 = vpop.f32.mrb[27].mxu1  ;;  %v4694_v8 = vpop.f32.mrb[27].mxu0 }
 0x246   : > { %4945 = vst.msk [vmem:[%s8381_s19 + $0xb8] sm:$0xff] %vm4921_vm10, %v4912_v41  ;;  %v4785_v48 = vadd.f32 %v6089_v60, %v8372_v2  ;;  %v6091_v62 = vadd.f32 %v4694_v8, %v2666_v57 }
 0x247   : > { %4943 = vst.msk [vmem:[%s8381_s19 + $0xa8] sm:$0xff] %vm4921_vm10, %v4910_v33  ;;  %vm4819_vm2 = vcmp.ge.f32.partialorder %v4787_v12, 0.0  ;;  %v4851_v56 = vmul.f32 0.2, %v4787_v12  ;;  %v4788_v40 = vadd.f32 %v6090_v31, %v8372_v2 }
 0x248   : > { %vm4817_vm3 = vcmp.ge.f32.partialorder %v4785_v48, 0.0  ;;  %v4849_v13 = vmul.f32 0.2, %v4785_v48  ;;  %v4786_v17 = vadd.f32 %v6091_v62, %v8372_v2 }
 0x249   : > { %v4883_v30 = vsel %vm4819_vm2, %v4787_v12, %v4851_v56  ;;  %vm4820_vm4 = vcmp.ge.f32.partialorder %v4788_v40, 0.0  ;;  %v4852_v9 = vmul.f32 0.2, %v4788_v40  ;;  %v6060_v14 = vpop.f32.mrb[28].mxu0 }
 0x24a   : > { %v4915_v63 = vmul.f32 1.4142135, %v4883_v30  ;;  %v4881_v4 = vsel %vm4817_vm3, %v4785_v48, %v4849_v13  ;;  %vm4818_vm5 = vcmp.ge.f32.partialorder %v4786_v17, 0.0  ;;  %v4850_v43 = vmul.f32 0.2, %v4786_v17  ;;  %v5924_v16 = vpop.f32.mrb[28].mxu1 }
 0x24b   : > { %v4913_v58 = vmul.f32 1.4142135, %v4881_v4  ;;  %v4884_v50 = vsel %vm4820_vm4, %v4788_v40, %v4852_v9  ;;  %v6092_v54 = vadd.f32 %v6060_v14, %v5924_v16  ;;  %v2679_v18 = vpop.f32.mrb[29].mxu1  ;;  %v4707_v52 = vpop.f32.mrb[29].mxu0 }
 0x24c   : > { %4948 = vst.msk [vmem:[%s8381_s19 + $0xd0] sm:$0xff] %vm4921_vm10, %v4915_v63  ;;  %v4916_v11 = vmul.f32 1.4142135, %v4884_v50  ;;  %v4882_v39 = vsel %vm4818_vm5, %v4786_v17, %v4850_v43  ;;  %v6093_v0 = vadd.f32 %v4707_v52, %v2679_v18  ;;  %v5925_v32 = vpop.f32.mrb[30].mxu1  ;;  %v6061_v36 = vpop.f32.mrb[30].mxu0 }
 0x24d   : > { %4946 = vst.msk [vmem:[%s8381_s19 + $0xc0] sm:$0xff] %vm4921_vm10, %v4913_v58  ;;  %v4914_v10 = vmul.f32 1.4142135, %v4882_v39  ;;  %v4791_v59 = vadd.f32 %v6092_v54, %v8372_v2  ;;  %v6094_v24 = vadd.f32 %v6061_v36, %v5925_v32  ;;  %v2682_v38 = vpop.f32.mrb[31].mxu1  ;;  %v4710_v37 = vpop.f32.mrb[31].mxu0 }
 0x24e   : > { %4949 = vst.msk [vmem:[%s8381_s19 + $0xd8] sm:$0xff] %vm4921_vm10, %v4916_v11  ;;  %v4789_v26 = vadd.f32 %v6093_v0, %v8372_v2  ;;  %v6095_v5 = vadd.f32 %v4710_v37, %v2682_v38 }
 0x24f   : > { %4947 = vst.msk [vmem:[%s8381_s19 + $0xc8] sm:$0xff] %vm4921_vm10, %v4914_v10  ;;  %vm4823_vm6 = vcmp.ge.f32.partialorder %v4791_v59, 0.0  ;;  %v4855_v35 = vmul.f32 0.2, %v4791_v59  ;;  %v4792_v34 = vadd.f32 %v6094_v24, %v8372_v2 }
 0x250   : > { %vm4821_vm7 = vcmp.ge.f32.partialorder %v4789_v26, 0.0  ;;  %v4853_v6 = vmul.f32 0.2, %v4789_v26  ;;  %v4790_v49 = vadd.f32 %v6095_v5, %v8372_v2 }
 0x251   : > { %v4887_v23 = vsel %vm4823_vm6, %v4791_v59, %v4855_v35  ;;  %vm4824_vm8 = vcmp.ge.f32.partialorder %v4792_v34, 0.0  ;;  %v4856_v25 = vmul.f32 0.2, %v4792_v34 }
 0x252   : > { %v4919_v1 = vmul.f32 1.4142135, %v4887_v23  ;;  %v4885_v7 = vsel %vm4821_vm7, %v4789_v26, %v4853_v6  ;;  %vm4822_vm9 = vcmp.ge.f32.partialorder %v4790_v49, 0.0  ;;  %v4854_v61 = vmul.f32 0.2, %v4790_v49 }
 0x253   : > { %v4917_v22 = vmul.f32 1.4142135, %v4885_v7  ;;  %v4888_v44 = vsel %vm4824_vm8, %v4792_v34, %v4856_v25 }
 0x254   : > { %4952 = vst.msk [vmem:[%s8381_s19 + $0xf0] sm:$0xff] %vm4921_vm10, %v4919_v1  ;;  %v4920_v3 = vmul.f32 1.4142135, %v4888_v44  ;;  %v4886_v2 = vsel %vm4822_vm9, %v4790_v49, %v4854_v61 }
 0x255   : > { %4950 = vst.msk [vmem:[%s8381_s19 + $0xe0] sm:$0xff] %vm4921_vm10, %v4917_v22  ;;  %v4918_v55 = vmul.f32 1.4142135, %v4886_v2 }
 0x256   : > { %4953 = vst.msk [vmem:[%s8381_s19 + $0xf8] sm:$0xff] %vm4921_vm10, %v4920_v3 }
 0x257   : > { %4951 = vst.msk [vmem:[%s8381_s19 + $0xe8] sm:$0xff] %vm4921_vm10, %v4918_v55 }
 0x258   : > { %6506 = shalt.err (!%p6503_p5)
}
 0x259   : > { %s6507_s6 = scalar_lea.hbm %s8482_s28, 4096  ;;  %s6511_s9 = scalar_lea.hbm %s8543_s3, 8192 }
 0x25a   : > { %p6508_p6 = scmp.ne.s32.totalorder %s8482_s28, %s6507_s6  ;;  %p6512_p10 = scmp.lt.u32.totalorder %s8482_s28, %s8543_s3 }
 0x25b   : > { %p6513_p11 = scmp.lt.u32.totalorder %s6511_s9, %s6507_s6  ;;  %p6515_p13 = scmp.lt.u32.totalorder %s6507_s6, %s8482_s28 }
 0x25c   : > { %p6509_p7 = pnand %p6508_p6, %p6636_p4 }
 0x25d   : > { %p6514_p12 = por %p6513_p11, %p6512_p10 }
 0x25e   : > { %p6510_p9 = pneg %p6509_p7 }
 0x25f   : > { %p6516_p0 = por %p6515_p13, %p6514_p12 }
 0x261   : > { %p6517_p1 = pnand %p6516_p0, %p6510_p9 }
 0x263   : > { %6520 = shalt.err (!%p6517_p1)
}
 0x264   : > { %s6574_s18 = smov 128   ;;  %s6575_s19 = smov 8  }
 0x265   : > { %6331 = dma.vmem_to_hbm [thread:$0]  (%p6636_p4), %s8484_s23, 4096, %s8482_s28, %s8494_s15, %s6574_s18, %s6574_s18, %s6575_s19  }
 0x266 PF: > { %p6337_p2 = scmp.ge.s32.totalorder %s6571_s17, 2  ;;  %s4985_s21 = sand.u32 1, %s6551_s12  }
 0x267   : > { %s4986_s26 = scalar_lea.sflag [#allocation3], %s4985_s21 }
 0x268   : > { %p6334_p3 = pnand %p6337_p2, %p6643_p8 }
 0x26a   : > { %6546 = dma.done.wait (!%p6334_p3), %s4986_s26, 4096  }
 0x26b   : > { %6548 = vsyncadd (!%p6334_p3), %s4986_s26, 4294963200  ;;  %s16_s17 = sadd.s32 1, %s6571_s17   ;;  %s8613_s12 = smov %s6555_s13 }
 0x26c   : > { %p13_p5 = scmp.ge.s32.totalorder %s16_s17, 4   ;;  %s8614_s13 = smov %s6559_s14 }
 0x26d   : > { %s8615_s14 = smov %s6649_s25  ;;  %s8616_s15 = smov %s6567_s16 }
 0x26e   : > { %s8617_s16 = smov %s8619_s20  ;;  %15 = sbr.rel (!%p13_p5) target bundleno = 4 (0x4), region = 78 }
 0x275   :  { %4991 = vsyncpa [#allocation3], 1 }
 0x276   :  { %4993 = vsyncpa [#allocation3 + $0x1], 1 }

</bundles_post_ra>
